<compile_context>
chip_gen: v7x
topology: tpu7x:2x2x1
jax: 0.10.0
libtpu: 0.0.40
codegen_flags: <defaults>
</compile_context>

<pallas_src>
import functools

import numpy as np
import jax
import jax.numpy as jnp
from jax.experimental import pallas as pl
from jax.experimental.pallas import tpu as pltpu


# ----------------------------- linear / projection kernels ------------------------------

def _matmul_kernel(x_ref, w_ref, o_ref):
    o_ref[...] = jnp.dot(x_ref[...], w_ref[...],
                         preferred_element_type=jnp.float32).astype(o_ref.dtype)


def _matmul_bias_kernel(x_ref, w_ref, b_ref, o_ref):
    o_ref[...] = (jnp.dot(x_ref[...], w_ref[...],
                          preferred_element_type=jnp.float32)
                  + b_ref[...]).astype(o_ref.dtype)


def linear(x, w, b=None, out_dtype=jnp.bfloat16):
    """x: (M, Cin) @ w: (Cin, Cout) [+ b] -> (M, Cout); bf16 operands, f32 accumulate."""
    M, Cin = x.shape
    Cout = w.shape[1]
    tm = next((t for t in (512, 256, 128) if M % t == 0), M)
    tn = next((t for t in (512, 256) if Cout % t == 0), Cout)   # MXU-shaped Cout tiles
    in_specs = [pl.BlockSpec((tm, Cin), lambda i, j: (i, 0)),
                pl.BlockSpec((Cin, tn), lambda i, j: (0, j))]
    args = [x, w]
    kernel = _matmul_kernel
    if b is not None:
        in_specs.append(pl.BlockSpec((1, tn), lambda i, j: (0, j)))
        args.append(b.reshape(1, Cout).astype(jnp.float32))
        kernel = _matmul_bias_kernel
    return pl.pallas_call(
        kernel,
        out_shape=jax.ShapeDtypeStruct((M, Cout), out_dtype),
        grid=(M // tm, Cout // tn),
        in_specs=in_specs,
        out_specs=pl.BlockSpec((tm, tn), lambda i, j: (i, j)),
        compiler_params=pltpu.CompilerParams(
            dimension_semantics=("parallel", "parallel")),
    )(*args)


def _qkv_proj_kernel(x_ref, w_ref, q_ref, kv_ref, *, dim):
    o = jnp.dot(x_ref[...], w_ref[...], preferred_element_type=jnp.float32)
    q_ref[...] = o[:, :dim].astype(q_ref.dtype)
    kv_ref[...] = o[:, dim:].astype(kv_ref.dtype)


def qkv_projection(x, wqkv, dim):
    """Fused QKV projection; q and k|v emitted as two bf16 outputs (no wrapper slice)."""
    M, Cin = x.shape
    tm = next((t for t in (512, 256, 128) if M % t == 0), M)
    return pl.pallas_call(
        functools.partial(_qkv_proj_kernel, dim=dim),
        out_shape=(jax.ShapeDtypeStruct((M, dim), jnp.bfloat16),
                   jax.ShapeDtypeStruct((M, 2 * dim), jnp.bfloat16)),
        grid=(M // tm,),
        in_specs=[pl.BlockSpec((tm, Cin), lambda i: (i, 0)),
                  pl.BlockSpec((Cin, 3 * dim), lambda i: (0, 0))],
        out_specs=(pl.BlockSpec((tm, dim), lambda i: (i, 0)),
                   pl.BlockSpec((tm, 2 * dim), lambda i: (i, 0))),
        compiler_params=pltpu.CompilerParams(dimension_semantics=("parallel",)),
    )(x, wqkv)


# ----------------------------- depthwise conv pooling ------------------------------

def _dwconv_kernel(x_ref, w_ref, o_ref, *, stride, out_hw, cp):
    # x_ref: (Tp, Hp/sh, sh, Wp/sw, sw*Cp) padded, phase-split input (resident across
    #        the grid); w_ref: (27, Cp) tap weights; o_ref: (1, Ho, Wo, Cp) output plane.
    st, sh, sw = stride
    Ho, Wo = out_hw
    t = pl.program_id(0)
    w = w_ref[...].astype(jnp.float32)
    acc = jnp.zeros((Ho, Wo, cp), jnp.float32)
    for kt in range(3):
        plane = x_ref[t * st + kt]                                  # (Hq, sh, Wq, sw*Cp)
        for kh in range(3):
            hrow = plane[kh // sh: kh // sh + Ho, kh % sh]          # (Ho, Wq, sw*Cp)
            for kw in range(3):
                lo = (kw % sw) * cp
                patch = hrow[:, kw // sw: kw // sw + Wo, lo: lo + cp]   # (Ho, Wo, Cp)
                wtap = jnp.reshape(w[kt * 9 + kh * 3 + kw], (1, 1, cp))
                acc = acc + patch.astype(jnp.float32) * wtap
    o_ref[0] = acc.astype(o_ref.dtype)


def depthwise_conv_pool(x_sp, w_taps, stride, out_thw):
    """Depthwise 3x3x3 conv (padding 1, no bias), channels lane-packed.

    x_sp:   (T, H, W, Cp) bf16 with Cp = batch*heads*head_dim (weights pre-tiled).
    w_taps: (27, Cp) f32, tap-major (kt*9 + kh*3 + kw).
    Returns (To, Ho, Wo, Cp) bf16.
    """
    st, sh, sw = stride
    To, Ho, Wo = out_thw
    T, H, W, Cp = x_sp.shape

    def padded_extent(d, s, out):
        # Big enough for: low pad 1 + data + standard high pad, the per-tap windows
        # [k//s, k//s + out) after the phase split, and divisibility by s.
        return s * max(out + 2 // s, -(-(d + 2) // s))

    Tp = T + 2
    Hp = padded_extent(H, sh, Ho)
    Wp = padded_extent(W, sw, Wo)
    xp = jnp.pad(x_sp, ((1, 1), (1, Hp - H - 1), (1, Wp - W - 1), (0, 0)))
    # Row-major reshape (free, no data movement): h -> (h//sh, h%sh); w%sw is folded
    # into the lane axis, so every conv tap in the kernel is a unit-stride slice.
    xr = xp.reshape(Tp, Hp // sh, sh, Wp // sw, sw * Cp)

    # TODO(synk): tile H (and stream the resident input) at real MViT spatial sizes;
    #             pad Cp up to a multiple of 128 lanes when batch*dim < 128.
    return pl.pallas_call(
        functools.partial(_dwconv_kernel, stride=(st, sh, sw), out_hw=(Ho, Wo), cp=Cp),
        out_shape=jax.ShapeDtypeStruct((To, Ho, Wo, Cp), jnp.bfloat16),
        grid=(To,),
        in_specs=[pl.BlockSpec((Tp, Hp // sh, sh, Wp // sw, sw * Cp),
                               lambda t: (0, 0, 0, 0, 0)),
                  pl.BlockSpec((27, Cp), lambda t: (0, 0))],
        out_specs=pl.BlockSpec((1, Ho, Wo, Cp), lambda t: (t, 0, 0, 0)),
        compiler_params=pltpu.CompilerParams(dimension_semantics=("parallel",)),
    )(xr, w_taps)


# ----------------------------- attention kernel ------------------------------

def _attn_kernel(q_ref, k_ref, v_ref, ln_ref, o_ref):
    # q_ref: (1, Nq, hd), k_ref/v_ref: (1, Nk, hd) for this (batch, head) group.
    # ln_ref: (6, hd) rows = (gq, bq, gk*scale, bk*scale, gv, bv).
    # LayerNorm / softmax math in f32; MXU operands bf16 with f32 accumulation.
    ln = ln_ref[...]

    def layer_norm(x, g, b):
        mu = jnp.mean(x, axis=-1, keepdims=True)
        var = jnp.mean(jnp.square(x - mu), axis=-1, keepdims=True)
        return (x - mu) * jax.lax.rsqrt(var + 1e-5) * g + b

    qn = layer_norm(q_ref[0].astype(jnp.float32), ln[0:1], ln[1:2])
    kn = layer_norm(k_ref[0].astype(jnp.float32), ln[2:3], ln[3:4])   # scale folded in
    vn = layer_norm(v_ref[0].astype(jnp.float32), ln[4:5], ln[5:6])

    # q . k^T without an explicit transpose: contract dim 1 of both operands.
    s = jax.lax.dot_general(qn.astype(jnp.bfloat16), kn.astype(jnp.bfloat16),
                            (((1,), (1,)), ((), ())),
                            preferred_element_type=jnp.float32)        # (Nq, Nk)
    s = s - jnp.max(s, axis=-1, keepdims=True)
    e = jnp.exp(s)
    p = e * pl.reciprocal(jnp.sum(e, axis=-1, keepdims=True), approx=True)
    o = jnp.dot(p.astype(jnp.bfloat16), vn.astype(jnp.bfloat16),
                preferred_element_type=jnp.float32) + qn               # residual_pool
    o_ref[0] = o.astype(o_ref.dtype)


def attention(q_seq, k_seq, v_seq, ln_packed):
    """q_seq: (G, Nq, hd), k/v_seq: (G, Nk, hd) bf16, ln_packed: (6, hd) f32.

    One grid step per (batch, head) group: pipelined per-group DMA, megacore sharding
    of groups on v7x, and no per-group lane-column slicing inside the kernel.
    """
    G, Nq, hd = q_seq.shape
    Nk = k_seq.shape[1]
    gmap = lambda g: (g, 0, 0)
    # TODO(synk): at real MViT sizes add a KV grid axis (flash-style online softmax)
    #             and set vmem_limit_bytes explicitly for v7x's 64 MiB VMEM.
    return pl.pallas_call(
        _attn_kernel,
        out_shape=jax.ShapeDtypeStruct((G, Nq, hd), jnp.bfloat16),
        grid=(G,),
        in_specs=[pl.BlockSpec((1, Nq, hd), gmap),
                  pl.BlockSpec((1, Nk, hd), gmap),
                  pl.BlockSpec((1, Nk, hd), gmap),
                  pl.BlockSpec((6, hd), lambda g: (0, 0))],
        out_specs=pl.BlockSpec((1, Nq, hd), gmap),
        compiler_params=pltpu.CompilerParams(dimension_semantics=("parallel",)),
    )(q_seq, k_seq, v_seq, ln_packed)


# ----------------------------- parameters & forward ------------------------------

def init_params(key, dim, num_heads):
    hd = dim // num_heads
    ks = jax.random.split(key, 8)
    s = 0.02
    return {
        "wq": jax.random.normal(ks[0], (dim, dim), jnp.float32) * s,   # torch (out, in)
        "wk": jax.random.normal(ks[1], (dim, dim), jnp.float32) * s,
        "wv": jax.random.normal(ks[2], (dim, dim), jnp.float32) * s,
        "wp": jax.random.normal(ks[3], (dim, dim), jnp.float32) * s,
        "bp": jax.random.normal(ks[4], (dim,), jnp.float32) * s,
        "conv_q": jax.random.normal(ks[5], (hd, 1, 3, 3, 3), jnp.float32) * s,
        "conv_k": jax.random.normal(ks[6], (hd, 1, 3, 3, 3), jnp.float32) * s,
        "conv_v": jax.random.normal(ks[7], (hd, 1, 3, 3, 3), jnp.float32) * s,
        "ln_q_g": jnp.ones((hd,), jnp.float32), "ln_q_b": jnp.zeros((hd,), jnp.float32),
        "ln_k_g": jnp.ones((hd,), jnp.float32), "ln_k_b": jnp.zeros((hd,), jnp.float32),
        "ln_v_g": jnp.ones((hd,), jnp.float32), "ln_v_b": jnp.zeros((hd,), jnp.float32),
    }


def multiscale_attention_forward(params, x, thw_shape, num_heads, stride_q, stride_kv):
    B, N, C = x.shape
    hd = C // num_heads
    G = B * num_heads
    scale = hd ** -0.5
    T, H, W = thw_shape
    cdt = jnp.bfloat16

    # Token-major / batch-minor rows: the non-cls rows reshape straight into a
    # channels-last (T, H, W, B*C) volume for the depthwise conv (no transpose).
    xf = jnp.transpose(x, (1, 0, 2)).reshape(N * B, C).astype(cdt)

    # Fused QKV projection (separate_qkv weights, qkv_bias=False -> no bias input).
    wqkv = jnp.concatenate([params["wq"].T, params["wk"].T, params["wv"].T],
                           axis=1).astype(cdt)
    q_all, kv_all = qkv_projection(xf, wqkv, dim=C)          # (N*B, C), (N*B, 2C) bf16

    # cls rows (token 0 of every batch) straight into the head-major attention layout.
    q_cls = q_all[:B].reshape(G, 1, hd)
    kv_cls = kv_all[:B].reshape(B, 2, num_heads, hd)
    k_cls = kv_cls[:, 0].reshape(G, 1, hd)
    v_cls = kv_cls[:, 1].reshape(G, 1, hd)

    q_sp = q_all[B:].reshape(T, H, W, B * C)                 # lane-packed channels
    kv_sp = kv_all[B:].reshape(T, H, W, B * 2 * C)

    # Depthwise-conv tap weights, tiled across batch & heads to match the lane packing.
    def taps(wconv):                                         # (hd,1,3,3,3) -> (27, hd)
        return wconv.reshape(hd, 27).T
    wq_taps = jnp.tile(taps(params["conv_q"]), (1, B * num_heads))          # (27, B*C)
    wkv_taps = jnp.tile(
        jnp.concatenate([jnp.tile(taps(params["conv_k"]), (1, num_heads)),
                         jnp.tile(taps(params["conv_v"]), (1, num_heads))], axis=1),
        (1, B))                                                             # (27, B*2C)

    out_q = [(d - 1) // st + 1 for d, st in zip((T, H, W), stride_q)]   # k=3, pad=1
    out_kv = [(d - 1) // st + 1 for d, st in zip((T, H, W), stride_kv)]

    q_pool = depthwise_conv_pool(q_sp, wq_taps, stride_q, out_q)        # (.., B*C)
    kv_pool = depthwise_conv_pool(kv_sp, wkv_taps, stride_kv, out_kv)   # (.., B*2C)

    Lq = out_q[0] * out_q[1] * out_q[2]
    Lk = out_kv[0] * out_kv[1] * out_kv[2]
    Nq = Lq + 1

    # Head-major (G, N, hd) layout for the per-group attention grid; the cls row is
    # prepended in the same relayout pass (fused with the transpose by XLA).
    q_seq = jnp.concatenate(
        [q_cls,
         q_pool.reshape(Lq, B, num_heads, hd).transpose(1, 2, 0, 3).reshape(G, Lq, hd)],
        axis=1)
    kv_h = kv_pool.reshape(Lk, B, 2, num_heads, hd).transpose(2, 1, 3, 0, 4)
    k_seq = jnp.concatenate([k_cls, kv_h[0].reshape(G, Lk, hd)], axis=1)
    v_seq = jnp.concatenate([v_cls, kv_h[1].reshape(G, Lk, hd)], axis=1)

    # LayerNorm params packed as (6, hd); the softmax scale is folded into the K rows
    # ((scale*q) @ k^T == q @ (scale*k)^T) so the residual still adds the unscaled q.
    ln_packed = jnp.stack(
        [params["ln_q_g"], params["ln_q_b"],
         params["ln_k_g"] * scale, params["ln_k_b"] * scale,
         params["ln_v_g"], params["ln_v_b"]], axis=0).astype(jnp.float32)

    out_att = attention(q_seq, k_seq, v_seq, ln_packed)                 # (G, Nq, hd)

    # Output projection (bias_on=True); final result in f32.
    out_tok = out_att.reshape(B, num_heads, Nq, hd).transpose(0, 2, 1, 3)
    out_tok = out_tok.reshape(B * Nq, C)
    out = linear(out_tok, params["wp"].T.astype(cdt), params["bp"],
                 out_dtype=jnp.float32)
    out = out.reshape(B, Nq, C)
    # TODO(synk): proj dropout (rate=0.0 -> Identity) intentionally omitted.
    return out, out_q


# ----------------------------- pure-JAX reference ------------------------------

def reference_forward(params, x, thw_shape, num_heads, stride_q, stride_kv):
    B, N, C = x.shape
    hd = C // num_heads
    scale = hd ** -0.5
    T, H, W = thw_shape

    q = (x @ params["wq"].T).reshape(B, N, num_heads, hd).transpose(0, 2, 1, 3)
    k = (x @ params["wk"].T).reshape(B, N, num_heads, hd).transpose(0, 2, 1, 3)
    v = (x @ params["wv"].T).reshape(B, N, num_heads, hd).transpose(0, 2, 1, 3)

    def pool(t, wconv, gamma, beta, stride):
        cls_tok = t[:, :, :1, :]
        rest = t[:, :, 1:, :].reshape(B * num_heads, T, H, W, hd)
        rhs = jnp.transpose(wconv, (2, 3, 4, 1, 0))       # (3,3,3,1,hd) DHWIO
        out = jax.lax.conv_general_dilated(
            rest, rhs, window_strides=stride, padding=((1, 1), (1, 1), (1, 1)),
            dimension_numbers=("NDHWC", "DHWIO", "NDHWC"),
            feature_group_count=hd)
        To, Ho, Wo = out.shape[1:4]
        out = out.reshape(B, num_heads, To * Ho * Wo, hd)
        out = jnp.concatenate([cls_tok, out], axis=2)
        mu = out.mean(-1, keepdims=True)
        var = ((out - mu) ** 2).mean(-1, keepdims=True)
        out = (out - mu) / jnp.sqrt(var + 1e-5) * gamma + beta
        return out, [To, Ho, Wo]

    q, q_shape = pool(q, params["conv_q"], params["ln_q_g"], params["ln_q_b"], stride_q)
    k, _ = pool(k, params["conv_k"], params["ln_k_g"], params["ln_k_b"], stride_kv)
    v, _ = pool(v, params["conv_v"], params["ln_v_g"], params["ln_v_b"], stride_kv)

    attn = jax.nn.softmax((q * scale) @ jnp.swapaxes(k, -2, -1), axis=-1)
    out = attn @ v + q
    Nq = out.shape[2]
    out = out.transpose(0, 2, 1, 3).reshape(B, Nq, C)
    out = out @ params["wp"].T + params["bp"]
    return out, q_shape


# ----------------------------- main ------------------------------

if __name__ == "__main__":
    key = jax.random.PRNGKey(0)
    B, num_heads, dim = 2, 4, 32
    thw = [4, 4, 4]
    N = 1 + thw[0] * thw[1] * thw[2]       # cls token + T*H*W
    stride_q = (1, 1, 1)
    stride_kv = (2, 2, 2)

    kx, kp = jax.random.split(key)
    x = jax.random.normal(kx, (B, N, dim), jnp.float32)
    params = init_params(kp, dim, num_heads)

    fwd = jax.jit(functools.partial(
        multiscale_attention_forward, thw_shape=tuple(thw), num_heads=num_heads,
        stride_q=stride_q, stride_kv=stride_kv))
    out, q_shape = fwd(params, x)
    out = jax.block_until_ready(out)
    q_shape = [int(v) for v in q_shape]

    ref, ref_shape = reference_forward(params, x, thw, num_heads, stride_q, stride_kv)
    assert out.shape == ref.shape == (B, N, dim), (out.shape, ref.shape)
    assert q_shape == [int(v) for v in ref_shape], (q_shape, ref_shape)
    # bf16 MXU operands + bf16 inter-kernel activations + approx reciprocal (all f32
    # accumulation / LN / softmax math) vs. the all-f32 reference.
    np.testing.assert_allclose(np.asarray(out), np.asarray(ref), rtol=5e-3, atol=5e-3)

    print("KERNEL_OK")
</pallas_src>

<mosaic_0001>
module attributes {stable_mosaic.version = 11 : i64} {
  func.func @_qkv_proj_kernel(%arg0: i32, %arg1: memref<130x32xbf16, #tpu.memory_space<vmem>>, %arg2: memref<32x96xbf16, #tpu.memory_space<vmem>>, %arg3: memref<130x32xbf16, #tpu.memory_space<vmem>>, %arg4: memref<130x64xbf16, #tpu.memory_space<vmem>>) attributes {dimension_semantics = [#tpu.dimension_semantics<parallel>], iteration_bounds = array<i64: 1>, scalar_prefetch = 0 : i64, scratch_operands = 0 : i64, tpu.core_type = #tpu.core_type<tc>, window_params = [{transform_indices = @transform_0, window_bounds = array<i64: 130, 32>}, {pipeline_mode = #tpu.pipeline_mode<synchronous>, transform_indices = @transform_1, window_bounds = array<i64: 32, 96>}, {transform_indices = @transform_2, window_bounds = array<i64: 130, 32>}, {transform_indices = @transform_3, window_bounds = array<i64: 130, 64>}]} {
    %c0 = arith.constant 0 : index
    %c0_0 = arith.constant 0 : index
    %0 = vector.load %arg1[%c0, %c0_0] : memref<130x32xbf16, #tpu.memory_space<vmem>>, vector<130x32xbf16>
    %c0_1 = arith.constant 0 : index
    %c0_2 = arith.constant 0 : index
    %1 = vector.load %arg2[%c0_1, %c0_2] : memref<32x96xbf16, #tpu.memory_space<vmem>>, vector<32x96xbf16>
    %cst = arith.constant dense<0.000000e+00> : vector<130x96xf32>
    %2 = tpu.matmul %0, %1, %cst {dimension_numbers = #tpu.dot_dimension_numbers<[1], [0], [0], [1], [0, 0, 1, 1], [], []>} : vector<130x32xbf16>, vector<32x96xbf16>, vector<130x96xf32> -> vector<130x96xf32>
    %3 = vector.extract_strided_slice %2 {offsets = [0, 0], sizes = [130, 32], strides = [1, 1]} : vector<130x96xf32> to vector<130x32xf32>
    %4 = arith.truncf %3 : vector<130x32xf32> to vector<130x32xbf16>
    %c0_3 = arith.constant 0 : index
    %c0_4 = arith.constant 0 : index
    %5 = vector.load %arg3[%c0_3, %c0_4] : memref<130x32xbf16, #tpu.memory_space<vmem>>, vector<130x32xbf16>
    tpu.vector_store %arg3[%c0_3, %c0_4], %4 {strides = array<i32>} : memref<130x32xbf16, #tpu.memory_space<vmem>>, vector<130x32xbf16>,
    %6 = vector.extract_strided_slice %2 {offsets = [0, 32], sizes = [130, 64], strides = [1, 1]} : vector<130x96xf32> to vector<130x64xf32>
    %7 = arith.truncf %6 : vector<130x64xf32> to vector<130x64xbf16>
    %c0_5 = arith.constant 0 : index
    %c0_6 = arith.constant 0 : index
    %8 = vector.load %arg4[%c0_5, %c0_6] : memref<130x64xbf16, #tpu.memory_space<vmem>>, vector<130x64xbf16>
    tpu.vector_store %arg4[%c0_5, %c0_6], %7 {strides = array<i32>} : memref<130x64xbf16, #tpu.memory_space<vmem>>, vector<130x64xbf16>,
    return
  }
  func.func @transform_0(%arg0: i32) -> (i32, i32) {
    %c0_i32 = arith.constant 0 : i32
    %c0_i32_0 = arith.constant 0 : i32
    return %arg0, %c0_i32 : i32, i32
  }
  func.func @transform_1(%arg0: i32) -> (i32, i32) {
    %c0_i32 = arith.constant 0 : i32
    %c0_i32_0 = arith.constant 0 : i32
    %c0_i32_1 = arith.constant 0 : i32
    return %c0_i32, %c0_i32_0 : i32, i32
  }
  func.func @transform_2(%arg0: i32) -> (i32, i32) {
    %c0_i32 = arith.constant 0 : i32
    %c0_i32_0 = arith.constant 0 : i32
    return %arg0, %c0_i32 : i32, i32
  }
  func.func @transform_3(%arg0: i32) -> (i32, i32) {
    %c0_i32 = arith.constant 0 : i32
    %c0_i32_0 = arith.constant 0 : i32
    return %arg0, %c0_i32 : i32, i32
  }
}

module attributes {stable_mosaic.version = 11 : i64} {
  func.func @_dwconv_kernel(%arg0: i32, %arg1: memref<6x3x2x3x256xbf16, #tpu.memory_space<vmem>>, %arg2: memref<27x128xf32, #tpu.memory_space<vmem>>, %arg3: memref<1x2x2x128xbf16, #tpu.memory_space<vmem>>) attributes {dimension_semantics = [#tpu.dimension_semantics<parallel>], iteration_bounds = array<i64: 2>, scalar_prefetch = 0 : i64, scratch_operands = 0 : i64, tpu.core_type = #tpu.core_type<tc>, window_params = [{pipeline_mode = #tpu.pipeline_mode<synchronous>, transform_indices = @transform_0, window_bounds = array<i64: 6, 3, 2, 3, 256>}, {pipeline_mode = #tpu.pipeline_mode<synchronous>, transform_indices = @transform_1, window_bounds = array<i64: 27, 128>}, {transform_indices = @transform_2, window_bounds = array<i64: 1, 2, 2, 128>}]} {
    %c0 = arith.constant 0 : index
    %c0_0 = arith.constant 0 : index
    %0 = vector.load %arg2[%c0, %c0_0] : memref<27x128xf32, #tpu.memory_space<vmem>>, vector<27x128xf32>
    %cst = arith.constant 0.000000e+00 : f32
    %1 = vector.broadcast %cst : f32 to vector<2x2x128xf32>
    %c2_i32 = arith.constant 2 : i32
    %2 = arith.muli %arg0, %c2_i32 : i32
    %c0_i32 = arith.constant 0 : i32
    %3 = arith.addi %2, %c0_i32 : i32
    %4 = arith.index_cast %3 : i32 to index
    %c0_1 = arith.constant 0 : index
    %c0_2 = arith.constant 0 : index
    %c0_3 = arith.constant 0 : index
    %c0_4 = arith.constant 0 : index
    %5 = vector.load %arg1[%4, %c0_1, %c0_2, %c0_3, %c0_4] : memref<6x3x2x3x256xbf16, #tpu.memory_space<vmem>>, vector<1x3x2x3x256xbf16>
    %6 = vector.shape_cast %5 : vector<1x3x2x3x256xbf16> to vector<3x2x3x256xbf16>
    %7 = vector.extract_strided_slice %6 {offsets = [0, 0, 0, 0], sizes = [2, 1, 3, 256], strides = [1, 1, 1, 1]} : vector<3x2x3x256xbf16> to vector<2x1x3x256xbf16>
    %8 = vector.shape_cast %7 : vector<2x1x3x256xbf16> to vector<2x3x256xbf16>
    %9 = vector.extract_strided_slice %8 {offsets = [0, 0, 0], sizes = [2, 2, 128], strides = [1, 1, 1]} : vector<2x3x256xbf16> to vector<2x2x128xbf16>
    %10 = vector.extract_strided_slice %0 {offsets = [0, 0], sizes = [1, 128], strides = [1, 1]} : vector<27x128xf32> to vector<1x128xf32>
    %11 = vector.shape_cast %10 : vector<1x128xf32> to vector<128xf32>
    %12 = vector.shape_cast %11 : vector<128xf32> to vector<1x1x128xf32>
    %13 = arith.extf %9 : vector<2x2x128xbf16> to vector<2x2x128xf32>
    %14 = vector.broadcast %12 : vector<1x1x128xf32> to vector<2x2x128xf32>
    %15 = arith.mulf %13, %14 : vector<2x2x128xf32>
    %16 = arith.addf %1, %15 : vector<2x2x128xf32>
    %17 = vector.extract_strided_slice %8 {offsets = [0, 0, 128], sizes = [2, 2, 128], strides = [1, 1, 1]} : vector<2x3x256xbf16> to vector<2x2x128xbf16>
    %18 = vector.extract_strided_slice %0 {offsets = [1, 0], sizes = [1, 128], strides = [1, 1]} : vector<27x128xf32> to vector<1x128xf32>
    %19 = vector.shape_cast %18 : vector<1x128xf32> to vector<128xf32>
    %20 = vector.shape_cast %19 : vector<128xf32> to vector<1x1x128xf32>
    %21 = arith.extf %17 : vector<2x2x128xbf16> to vector<2x2x128xf32>
    %22 = vector.broadcast %20 : vector<1x1x128xf32> to vector<2x2x128xf32>
    %23 = arith.mulf %21, %22 : vector<2x2x128xf32>
    %24 = arith.addf %16, %23 : vector<2x2x128xf32>
    %25 = vector.extract_strided_slice %8 {offsets = [0, 1, 0], sizes = [2, 2, 128], strides = [1, 1, 1]} : vector<2x3x256xbf16> to vector<2x2x128xbf16>
    %26 = vector.extract_strided_slice %0 {offsets = [2, 0], sizes = [1, 128], strides = [1, 1]} : vector<27x128xf32> to vector<1x128xf32>
    %27 = vector.shape_cast %26 : vector<1x128xf32> to vector<128xf32>
    %28 = vector.shape_cast %27 : vector<128xf32> to vector<1x1x128xf32>
    %29 = arith.extf %25 : vector<2x2x128xbf16> to vector<2x2x128xf32>
    %30 = vector.broadcast %28 : vector<1x1x128xf32> to vector<2x2x128xf32>
    %31 = arith.mulf %29, %30 : vector<2x2x128xf32>
    %32 = arith.addf %24, %31 : vector<2x2x128xf32>
    %33 = vector.extract_strided_slice %6 {offsets = [0, 1, 0, 0], sizes = [2, 1, 3, 256], strides = [1, 1, 1, 1]} : vector<3x2x3x256xbf16> to vector<2x1x3x256xbf16>
    %34 = vector.shape_cast %33 : vector<2x1x3x256xbf16> to vector<2x3x256xbf16>
    %35 = vector.extract_strided_slice %34 {offsets = [0, 0, 0], sizes = [2, 2, 128], strides = [1, 1, 1]} : vector<2x3x256xbf16> to vector<2x2x128xbf16>
    %36 = vector.extract_strided_slice %0 {offsets = [3, 0], sizes = [1, 128], strides = [1, 1]} : vector<27x128xf32> to vector<1x128xf32>
    %37 = vector.shape_cast %36 : vector<1x128xf32> to vector<128xf32>
    %38 = vector.shape_cast %37 : vector<128xf32> to vector<1x1x128xf32>
    %39 = arith.extf %35 : vector<2x2x128xbf16> to vector<2x2x128xf32>
    %40 = vector.broadcast %38 : vector<1x1x128xf32> to vector<2x2x128xf32>
    %41 = arith.mulf %39, %40 : vector<2x2x128xf32>
    %42 = arith.addf %32, %41 : vector<2x2x128xf32>
    %43 = vector.extract_strided_slice %34 {offsets = [0, 0, 128], sizes = [2, 2, 128], strides = [1, 1, 1]} : vector<2x3x256xbf16> to vector<2x2x128xbf16>
    %44 = vector.extract_strided_slice %0 {offsets = [4, 0], sizes = [1, 128], strides = [1, 1]} : vector<27x128xf32> to vector<1x128xf32>
    %45 = vector.shape_cast %44 : vector<1x128xf32> to vector<128xf32>
    %46 = vector.shape_cast %45 : vector<128xf32> to vector<1x1x128xf32>
    %47 = arith.extf %43 : vector<2x2x128xbf16> to vector<2x2x128xf32>
    %48 = vector.broadcast %46 : vector<1x1x128xf32> to vector<2x2x128xf32>
    %49 = arith.mulf %47, %48 : vector<2x2x128xf32>
    %50 = arith.addf %42, %49 : vector<2x2x128xf32>
    %51 = vector.extract_strided_slice %34 {offsets = [0, 1, 0], sizes = [2, 2, 128], strides = [1, 1, 1]} : vector<2x3x256xbf16> to vector<2x2x128xbf16>
    %52 = vector.extract_strided_slice %0 {offsets = [5, 0], sizes = [1, 128], strides = [1, 1]} : vector<27x128xf32> to vector<1x128xf32>
    %53 = vector.shape_cast %52 : vector<1x128xf32> to vector<128xf32>
    %54 = vector.shape_cast %53 : vector<128xf32> to vector<1x1x128xf32>
    %55 = arith.extf %51 : vector<2x2x128xbf16> to vector<2x2x128xf32>
    %56 = vector.broadcast %54 : vector<1x1x128xf32> to vector<2x2x128xf32>
    %57 = arith.mulf %55, %56 : vector<2x2x128xf32>
    %58 = arith.addf %50, %57 : vector<2x2x128xf32>
    %59 = vector.extract_strided_slice %6 {offsets = [1, 0, 0, 0], sizes = [2, 1, 3, 256], strides = [1, 1, 1, 1]} : vector<3x2x3x256xbf16> to vector<2x1x3x256xbf16>
    %60 = vector.shape_cast %59 : vector<2x1x3x256xbf16> to vector<2x3x256xbf16>
    %61 = vector.extract_strided_slice %60 {offsets = [0, 0, 0], sizes = [2, 2, 128], strides = [1, 1, 1]} : vector<2x3x256xbf16> to vector<2x2x128xbf16>
    %62 = vector.extract_strided_slice %0 {offsets = [6, 0], sizes = [1, 128], strides = [1, 1]} : vector<27x128xf32> to vector<1x128xf32>
    %63 = vector.shape_cast %62 : vector<1x128xf32> to vector<128xf32>
    %64 = vector.shape_cast %63 : vector<128xf32> to vector<1x1x128xf32>
    %65 = arith.extf %61 : vector<2x2x128xbf16> to vector<2x2x128xf32>
    %66 = vector.broadcast %64 : vector<1x1x128xf32> to vector<2x2x128xf32>
    %67 = arith.mulf %65, %66 : vector<2x2x128xf32>
    %68 = arith.addf %58, %67 : vector<2x2x128xf32>
    %69 = vector.extract_strided_slice %60 {offsets = [0, 0, 128], sizes = [2, 2, 128], strides = [1, 1, 1]} : vector<2x3x256xbf16> to vector<2x2x128xbf16>
    %70 = vector.extract_strided_slice %0 {offsets = [7, 0], sizes = [1, 128], strides = [1, 1]} : vector<27x128xf32> to vector<1x128xf32>
    %71 = vector.shape_cast %70 : vector<1x128xf32> to vector<128xf32>
    %72 = vector.shape_cast %71 : vector<128xf32> to vector<1x1x128xf32>
    %73 = arith.extf %69 : vector<2x2x128xbf16> to vector<2x2x128xf32>
    %74 = vector.broadcast %72 : vector<1x1x128xf32> to vector<2x2x128xf32>
    %75 = arith.mulf %73, %74 : vector<2x2x128xf32>
    %76 = arith.addf %68, %75 : vector<2x2x128xf32>
    %77 = vector.extract_strided_slice %60 {offsets = [0, 1, 0], sizes = [2, 2, 128], strides = [1, 1, 1]} : vector<2x3x256xbf16> to vector<2x2x128xbf16>
    %78 = vector.extract_strided_slice %0 {offsets = [8, 0], sizes = [1, 128], strides = [1, 1]} : vector<27x128xf32> to vector<1x128xf32>
    %79 = vector.shape_cast %78 : vector<1x128xf32> to vector<128xf32>
    %80 = vector.shape_cast %79 : vector<128xf32> to vector<1x1x128xf32>
    %81 = arith.extf %77 : vector<2x2x128xbf16> to vector<2x2x128xf32>
    %82 = vector.broadcast %80 : vector<1x1x128xf32> to vector<2x2x128xf32>
    %83 = arith.mulf %81, %82 : vector<2x2x128xf32>
    %84 = arith.addf %76, %83 : vector<2x2x128xf32>
    %c2_i32_5 = arith.constant 2 : i32
    %85 = arith.muli %arg0, %c2_i32_5 : i32
    %c1_i32 = arith.constant 1 : i32
    %86 = arith.addi %85, %c1_i32 : i32
    %87 = arith.index_cast %86 : i32 to index
    %c0_6 = arith.constant 0 : index
    %c0_7 = arith.constant 0 : index
    %c0_8 = arith.constant 0 : index
    %c0_9 = arith.constant 0 : index
    %88 = vector.load %arg1[%87, %c0_6, %c0_7, %c0_8, %c0_9] : memref<6x3x2x3x256xbf16, #tpu.memory_space<vmem>>, vector<1x3x2x3x256xbf16>
    %89 = vector.shape_cast %88 : vector<1x3x2x3x256xbf16> to vector<3x2x3x256xbf16>
    %90 = vector.extract_strided_slice %89 {offsets = [0, 0, 0, 0], sizes = [2, 1, 3, 256], strides = [1, 1, 1, 1]} : vector<3x2x3x256xbf16> to vector<2x1x3x256xbf16>
    %91 = vector.shape_cast %90 : vector<2x1x3x256xbf16> to vector<2x3x256xbf16>
    %92 = vector.extract_strided_slice %91 {offsets = [0, 0, 0], sizes = [2, 2, 128], strides = [1, 1, 1]} : vector<2x3x256xbf16> to vector<2x2x128xbf16>
    %93 = vector.extract_strided_slice %0 {offsets = [9, 0], sizes = [1, 128], strides = [1, 1]} : vector<27x128xf32> to vector<1x128xf32>
    %94 = vector.shape_cast %93 : vector<1x128xf32> to vector<128xf32>
    %95 = vector.shape_cast %94 : vector<128xf32> to vector<1x1x128xf32>
    %96 = arith.extf %92 : vector<2x2x128xbf16> to vector<2x2x128xf32>
    %97 = vector.broadcast %95 : vector<1x1x128xf32> to vector<2x2x128xf32>
    %98 = arith.mulf %96, %97 : vector<2x2x128xf32>
    %99 = arith.addf %84, %98 : vector<2x2x128xf32>
    %100 = vector.extract_strided_slice %91 {offsets = [0, 0, 128], sizes = [2, 2, 128], strides = [1, 1, 1]} : vector<2x3x256xbf16> to vector<2x2x128xbf16>
    %101 = vector.extract_strided_slice %0 {offsets = [10, 0], sizes = [1, 128], strides = [1, 1]} : vector<27x128xf32> to vector<1x128xf32>
    %102 = vector.shape_cast %101 : vector<1x128xf32> to vector<128xf32>
    %103 = vector.shape_cast %102 : vector<128xf32> to vector<1x1x128xf32>
    %104 = arith.extf %100 : vector<2x2x128xbf16> to vector<2x2x128xf32>
    %105 = vector.broadcast %103 : vector<1x1x128xf32> to vector<2x2x128xf32>
    %106 = arith.mulf %104, %105 : vector<2x2x128xf32>
    %107 = arith.addf %99, %106 : vector<2x2x128xf32>
    %108 = vector.extract_strided_slice %91 {offsets = [0, 1, 0], sizes = [2, 2, 128], strides = [1, 1, 1]} : vector<2x3x256xbf16> to vector<2x2x128xbf16>
    %109 = vector.extract_strided_slice %0 {offsets = [11, 0], sizes = [1, 128], strides = [1, 1]} : vector<27x128xf32> to vector<1x128xf32>
    %110 = vector.shape_cast %109 : vector<1x128xf32> to vector<128xf32>
    %111 = vector.shape_cast %110 : vector<128xf32> to vector<1x1x128xf32>
    %112 = arith.extf %108 : vector<2x2x128xbf16> to vector<2x2x128xf32>
    %113 = vector.broadcast %111 : vector<1x1x128xf32> to vector<2x2x128xf32>
    %114 = arith.mulf %112, %113 : vector<2x2x128xf32>
    %115 = arith.addf %107, %114 : vector<2x2x128xf32>
    %116 = vector.extract_strided_slice %89 {offsets = [0, 1, 0, 0], sizes = [2, 1, 3, 256], strides = [1, 1, 1, 1]} : vector<3x2x3x256xbf16> to vector<2x1x3x256xbf16>
    %117 = vector.shape_cast %116 : vector<2x1x3x256xbf16> to vector<2x3x256xbf16>
    %118 = vector.extract_strided_slice %117 {offsets = [0, 0, 0], sizes = [2, 2, 128], strides = [1, 1, 1]} : vector<2x3x256xbf16> to vector<2x2x128xbf16>
    %119 = vector.extract_strided_slice %0 {offsets = [12, 0], sizes = [1, 128], strides = [1, 1]} : vector<27x128xf32> to vector<1x128xf32>
    %120 = vector.shape_cast %119 : vector<1x128xf32> to vector<128xf32>
    %121 = vector.shape_cast %120 : vector<128xf32> to vector<1x1x128xf32>
    %122 = arith.extf %118 : vector<2x2x128xbf16> to vector<2x2x128xf32>
    %123 = vector.broadcast %121 : vector<1x1x128xf32> to vector<2x2x128xf32>
    %124 = arith.mulf %122, %123 : vector<2x2x128xf32>
    %125 = arith.addf %115, %124 : vector<2x2x128xf32>
    %126 = vector.extract_strided_slice %117 {offsets = [0, 0, 128], sizes = [2, 2, 128], strides = [1, 1, 1]} : vector<2x3x256xbf16> to vector<2x2x128xbf16>
    %127 = vector.extract_strided_slice %0 {offsets = [13, 0], sizes = [1, 128], strides = [1, 1]} : vector<27x128xf32> to vector<1x128xf32>
    %128 = vector.shape_cast %127 : vector<1x128xf32> to vector<128xf32>
    %129 = vector.shape_cast %128 : vector<128xf32> to vector<1x1x128xf32>
    %130 = arith.extf %126 : vector<2x2x128xbf16> to vector<2x2x128xf32>
    %131 = vector.broadcast %129 : vector<1x1x128xf32> to vector<2x2x128xf32>
    %132 = arith.mulf %130, %131 : vector<2x2x128xf32>
    %133 = arith.addf %125, %132 : vector<2x2x128xf32>
    %134 = vector.extract_strided_slice %117 {offsets = [0, 1, 0], sizes = [2, 2, 128], strides = [1, 1, 1]} : vector<2x3x256xbf16> to vector<2x2x128xbf16>
    %135 = vector.extract_strided_slice %0 {offsets = [14, 0], sizes = [1, 128], strides = [1, 1]} : vector<27x128xf32> to vector<1x128xf32>
    %136 = vector.shape_cast %135 : vector<1x128xf32> to vector<128xf32>
    %137 = vector.shape_cast %136 : vector<128xf32> to vector<1x1x128xf32>
    %138 = arith.extf %134 : vector<2x2x128xbf16> to vector<2x2x128xf32>
    %139 = vector.broadcast %137 : vector<1x1x128xf32> to vector<2x2x128xf32>
    %140 = arith.mulf %138, %139 : vector<2x2x128xf32>
    %141 = arith.addf %133, %140 : vector<2x2x128xf32>
    %142 = vector.extract_strided_slice %89 {offsets = [1, 0, 0, 0], sizes = [2, 1, 3, 256], strides = [1, 1, 1, 1]} : vector<3x2x3x256xbf16> to vector<2x1x3x256xbf16>
    %143 = vector.shape_cast %142 : vector<2x1x3x256xbf16> to vector<2x3x256xbf16>
    %144 = vector.extract_strided_slice %143 {offsets = [0, 0, 0], sizes = [2, 2, 128], strides = [1, 1, 1]} : vector<2x3x256xbf16> to vector<2x2x128xbf16>
    %145 = vector.extract_strided_slice %0 {offsets = [15, 0], sizes = [1, 128], strides = [1, 1]} : vector<27x128xf32> to vector<1x128xf32>
    %146 = vector.shape_cast %145 : vector<1x128xf32> to vector<128xf32>
    %147 = vector.shape_cast %146 : vector<128xf32> to vector<1x1x128xf32>
    %148 = arith.extf %144 : vector<2x2x128xbf16> to vector<2x2x128xf32>
    %149 = vector.broadcast %147 : vector<1x1x128xf32> to vector<2x2x128xf32>
    %150 = arith.mulf %148, %149 : vector<2x2x128xf32>
    %151 = arith.addf %141, %150 : vector<2x2x128xf32>
    %152 = vector.extract_strided_slice %143 {offsets = [0, 0, 128], sizes = [2, 2, 128], strides = [1, 1, 1]} : vector<2x3x256xbf16> to vector<2x2x128xbf16>
    %153 = vector.extract_strided_slice %0 {offsets = [16, 0], sizes = [1, 128], strides = [1, 1]} : vector<27x128xf32> to vector<1x128xf32>
    %154 = vector.shape_cast %153 : vector<1x128xf32> to vector<128xf32>
    %155 = vector.shape_cast %154 : vector<128xf32> to vector<1x1x128xf32>
    %156 = arith.extf %152 : vector<2x2x128xbf16> to vector<2x2x128xf32>
    %157 = vector.broadcast %155 : vector<1x1x128xf32> to vector<2x2x128xf32>
    %158 = arith.mulf %156, %157 : vector<2x2x128xf32>
    %159 = arith.addf %151, %158 : vector<2x2x128xf32>
    %160 = vector.extract_strided_slice %143 {offsets = [0, 1, 0], sizes = [2, 2, 128], strides = [1, 1, 1]} : vector<2x3x256xbf16> to vector<2x2x128xbf16>
    %161 = vector.extract_strided_slice %0 {offsets = [17, 0], sizes = [1, 128], strides = [1, 1]} : vector<27x128xf32> to vector<1x128xf32>
    %162 = vector.shape_cast %161 : vector<1x128xf32> to vector<128xf32>
    %163 = vector.shape_cast %162 : vector<128xf32> to vector<1x1x128xf32>
    %164 = arith.extf %160 : vector<2x2x128xbf16> to vector<2x2x128xf32>
    %165 = vector.broadcast %163 : vector<1x1x128xf32> to vector<2x2x128xf32>
    %166 = arith.mulf %164, %165 : vector<2x2x128xf32>
    %167 = arith.addf %159, %166 : vector<2x2x128xf32>
    %c2_i32_10 = arith.constant 2 : i32
    %168 = arith.muli %arg0, %c2_i32_10 : i32
    %c2_i32_11 = arith.constant 2 : i32
    %169 = arith.addi %168, %c2_i32_11 : i32
    %170 = arith.index_cast %169 : i32 to index
    %c0_12 = arith.constant 0 : index
    %c0_13 = arith.constant 0 : index
    %c0_14 = arith.constant 0 : index
    %c0_15 = arith.constant 0 : index
    %171 = vector.load %arg1[%170, %c0_12, %c0_13, %c0_14, %c0_15] : memref<6x3x2x3x256xbf16, #tpu.memory_space<vmem>>, vector<1x3x2x3x256xbf16>
    %172 = vector.shape_cast %171 : vector<1x3x2x3x256xbf16> to vector<3x2x3x256xbf16>
    %173 = vector.extract_strided_slice %172 {offsets = [0, 0, 0, 0], sizes = [2, 1, 3, 256], strides = [1, 1, 1, 1]} : vector<3x2x3x256xbf16> to vector<2x1x3x256xbf16>
    %174 = vector.shape_cast %173 : vector<2x1x3x256xbf16> to vector<2x3x256xbf16>
    %175 = vector.extract_strided_slice %174 {offsets = [0, 0, 0], sizes = [2, 2, 128], strides = [1, 1, 1]} : vector<2x3x256xbf16> to vector<2x2x128xbf16>
    %176 = vector.extract_strided_slice %0 {offsets = [18, 0], sizes = [1, 128], strides = [1, 1]} : vector<27x128xf32> to vector<1x128xf32>
    %177 = vector.shape_cast %176 : vector<1x128xf32> to vector<128xf32>
    %178 = vector.shape_cast %177 : vector<128xf32> to vector<1x1x128xf32>
    %179 = arith.extf %175 : vector<2x2x128xbf16> to vector<2x2x128xf32>
    %180 = vector.broadcast %178 : vector<1x1x128xf32> to vector<2x2x128xf32>
    %181 = arith.mulf %179, %180 : vector<2x2x128xf32>
    %182 = arith.addf %167, %181 : vector<2x2x128xf32>
    %183 = vector.extract_strided_slice %174 {offsets = [0, 0, 128], sizes = [2, 2, 128], strides = [1, 1, 1]} : vector<2x3x256xbf16> to vector<2x2x128xbf16>
    %184 = vector.extract_strided_slice %0 {offsets = [19, 0], sizes = [1, 128], strides = [1, 1]} : vector<27x128xf32> to vector<1x128xf32>
    %185 = vector.shape_cast %184 : vector<1x128xf32> to vector<128xf32>
    %186 = vector.shape_cast %185 : vector<128xf32> to vector<1x1x128xf32>
    %187 = arith.extf %183 : vector<2x2x128xbf16> to vector<2x2x128xf32>
    %188 = vector.broadcast %186 : vector<1x1x128xf32> to vector<2x2x128xf32>
    %189 = arith.mulf %187, %188 : vector<2x2x128xf32>
    %190 = arith.addf %182, %189 : vector<2x2x128xf32>
    %191 = vector.extract_strided_slice %174 {offsets = [0, 1, 0], sizes = [2, 2, 128], strides = [1, 1, 1]} : vector<2x3x256xbf16> to vector<2x2x128xbf16>
    %192 = vector.extract_strided_slice %0 {offsets = [20, 0], sizes = [1, 128], strides = [1, 1]} : vector<27x128xf32> to vector<1x128xf32>
    %193 = vector.shape_cast %192 : vector<1x128xf32> to vector<128xf32>
    %194 = vector.shape_cast %193 : vector<128xf32> to vector<1x1x128xf32>
    %195 = arith.extf %191 : vector<2x2x128xbf16> to vector<2x2x128xf32>
    %196 = vector.broadcast %194 : vector<1x1x128xf32> to vector<2x2x128xf32>
    %197 = arith.mulf %195, %196 : vector<2x2x128xf32>
    %198 = arith.addf %190, %197 : vector<2x2x128xf32>
    %199 = vector.extract_strided_slice %172 {offsets = [0, 1, 0, 0], sizes = [2, 1, 3, 256], strides = [1, 1, 1, 1]} : vector<3x2x3x256xbf16> to vector<2x1x3x256xbf16>
    %200 = vector.shape_cast %199 : vector<2x1x3x256xbf16> to vector<2x3x256xbf16>
    %201 = vector.extract_strided_slice %200 {offsets = [0, 0, 0], sizes = [2, 2, 128], strides = [1, 1, 1]} : vector<2x3x256xbf16> to vector<2x2x128xbf16>
    %202 = vector.extract_strided_slice %0 {offsets = [21, 0], sizes = [1, 128], strides = [1, 1]} : vector<27x128xf32> to vector<1x128xf32>
    %203 = vector.shape_cast %202 : vector<1x128xf32> to vector<128xf32>
    %204 = vector.shape_cast %203 : vector<128xf32> to vector<1x1x128xf32>
    %205 = arith.extf %201 : vector<2x2x128xbf16> to vector<2x2x128xf32>
    %206 = vector.broadcast %204 : vector<1x1x128xf32> to vector<2x2x128xf32>
    %207 = arith.mulf %205, %206 : vector<2x2x128xf32>
    %208 = arith.addf %198, %207 : vector<2x2x128xf32>
    %209 = vector.extract_strided_slice %200 {offsets = [0, 0, 128], sizes = [2, 2, 128], strides = [1, 1, 1]} : vector<2x3x256xbf16> to vector<2x2x128xbf16>
    %210 = vector.extract_strided_slice %0 {offsets = [22, 0], sizes = [1, 128], strides = [1, 1]} : vector<27x128xf32> to vector<1x128xf32>
    %211 = vector.shape_cast %210 : vector<1x128xf32> to vector<128xf32>
    %212 = vector.shape_cast %211 : vector<128xf32> to vector<1x1x128xf32>
    %213 = arith.extf %209 : vector<2x2x128xbf16> to vector<2x2x128xf32>
    %214 = vector.broadcast %212 : vector<1x1x128xf32> to vector<2x2x128xf32>
    %215 = arith.mulf %213, %214 : vector<2x2x128xf32>
    %216 = arith.addf %208, %215 : vector<2x2x128xf32>
    %217 = vector.extract_strided_slice %200 {offsets = [0, 1, 0], sizes = [2, 2, 128], strides = [1, 1, 1]} : vector<2x3x256xbf16> to vector<2x2x128xbf16>
    %218 = vector.extract_strided_slice %0 {offsets = [23, 0], sizes = [1, 128], strides = [1, 1]} : vector<27x128xf32> to vector<1x128xf32>
    %219 = vector.shape_cast %218 : vector<1x128xf32> to vector<128xf32>
    %220 = vector.shape_cast %219 : vector<128xf32> to vector<1x1x128xf32>
    %221 = arith.extf %217 : vector<2x2x128xbf16> to vector<2x2x128xf32>
    %222 = vector.broadcast %220 : vector<1x1x128xf32> to vector<2x2x128xf32>
    %223 = arith.mulf %221, %222 : vector<2x2x128xf32>
    %224 = arith.addf %216, %223 : vector<2x2x128xf32>
    %225 = vector.extract_strided_slice %172 {offsets = [1, 0, 0, 0], sizes = [2, 1, 3, 256], strides = [1, 1, 1, 1]} : vector<3x2x3x256xbf16> to vector<2x1x3x256xbf16>
    %226 = vector.shape_cast %225 : vector<2x1x3x256xbf16> to vector<2x3x256xbf16>
    %227 = vector.extract_strided_slice %226 {offsets = [0, 0, 0], sizes = [2, 2, 128], strides = [1, 1, 1]} : vector<2x3x256xbf16> to vector<2x2x128xbf16>
    %228 = vector.extract_strided_slice %0 {offsets = [24, 0], sizes = [1, 128], strides = [1, 1]} : vector<27x128xf32> to vector<1x128xf32>
    %229 = vector.shape_cast %228 : vector<1x128xf32> to vector<128xf32>
    %230 = vector.shape_cast %229 : vector<128xf32> to vector<1x1x128xf32>
    %231 = arith.extf %227 : vector<2x2x128xbf16> to vector<2x2x128xf32>
    %232 = vector.broadcast %230 : vector<1x1x128xf32> to vector<2x2x128xf32>
    %233 = arith.mulf %231, %232 : vector<2x2x128xf32>
    %234 = arith.addf %224, %233 : vector<2x2x128xf32>
    %235 = vector.extract_strided_slice %226 {offsets = [0, 0, 128], sizes = [2, 2, 128], strides = [1, 1, 1]} : vector<2x3x256xbf16> to vector<2x2x128xbf16>
    %236 = vector.extract_strided_slice %0 {offsets = [25, 0], sizes = [1, 128], strides = [1, 1]} : vector<27x128xf32> to vector<1x128xf32>
    %237 = vector.shape_cast %236 : vector<1x128xf32> to vector<128xf32>
    %238 = vector.shape_cast %237 : vector<128xf32> to vector<1x1x128xf32>
    %239 = arith.extf %235 : vector<2x2x128xbf16> to vector<2x2x128xf32>
    %240 = vector.broadcast %238 : vector<1x1x128xf32> to vector<2x2x128xf32>
    %241 = arith.mulf %239, %240 : vector<2x2x128xf32>
    %242 = arith.addf %234, %241 : vector<2x2x128xf32>
    %243 = vector.extract_strided_slice %226 {offsets = [0, 1, 0], sizes = [2, 2, 128], strides = [1, 1, 1]} : vector<2x3x256xbf16> to vector<2x2x128xbf16>
    %244 = vector.extract_strided_slice %0 {offsets = [26, 0], sizes = [1, 128], strides = [1, 1]} : vector<27x128xf32> to vector<1x128xf32>
    %245 = vector.shape_cast %244 : vector<1x128xf32> to vector<128xf32>
    %246 = vector.shape_cast %245 : vector<128xf32> to vector<1x1x128xf32>
    %247 = arith.extf %243 : vector<2x2x128xbf16> to vector<2x2x128xf32>
    %248 = vector.broadcast %246 : vector<1x1x128xf32> to vector<2x2x128xf32>
    %249 = arith.mulf %247, %248 : vector<2x2x128xf32>
    %250 = arith.addf %242, %249 : vector<2x2x128xf32>
    %251 = arith.truncf %250 : vector<2x2x128xf32> to vector<2x2x128xbf16>
    %c0_16 = arith.constant 0 : index
    %c0_17 = arith.constant 0 : index
    %c0_18 = arith.constant 0 : index
    %c0_19 = arith.constant 0 : index
    %252 = vector.load %arg3[%c0_16, %c0_17, %c0_18, %c0_19] : memref<1x2x2x128xbf16, #tpu.memory_space<vmem>>, vector<1x2x2x128xbf16>
    %253 = vector.shape_cast %252 : vector<1x2x2x128xbf16> to vector<2x2x128xbf16>
    %254 = vector.shape_cast %251 : vector<2x2x128xbf16> to vector<1x2x2x128xbf16>
    tpu.vector_store %arg3[%c0_16, %c0_17, %c0_18, %c0_19], %254 {strides = array<i32>} : memref<1x2x2x128xbf16, #tpu.memory_space<vmem>>, vector<1x2x2x128xbf16>,
    return
  }
  func.func @transform_0(%arg0: i32) -> (i32, i32, i32, i32, i32) {
    %c0_i32 = arith.constant 0 : i32
    %c0_i32_0 = arith.constant 0 : i32
    %c0_i32_1 = arith.constant 0 : i32
    %c0_i32_2 = arith.constant 0 : i32
    %c0_i32_3 = arith.constant 0 : i32
    %c0_i32_4 = arith.constant 0 : i32
    return %c0_i32, %c0_i32_0, %c0_i32_1, %c0_i32_2, %c0_i32_3 : i32, i32, i32, i32, i32
  }
  func.func @transform_1(%arg0: i32) -> (i32, i32) {
    %c0_i32 = arith.constant 0 : i32
    %c0_i32_0 = arith.constant 0 : i32
    %c0_i32_1 = arith.constant 0 : i32
    return %c0_i32, %c0_i32_0 : i32, i32
  }
  func.func @transform_2(%arg0: i32) -> (i32, i32, i32, i32) {
    %c0_i32 = arith.constant 0 : i32
    %c0_i32_0 = arith.constant 0 : i32
    %c0_i32_1 = arith.constant 0 : i32
    %c0_i32_2 = arith.constant 0 : i32
    return %arg0, %c0_i32, %c0_i32_0, %c0_i32_1 : i32, i32, i32, i32
  }
}

module attributes {stable_mosaic.version = 11 : i64} {
  func.func @_dwconv_kernel(%arg0: i32, %arg1: memref<6x6x1x6x64xbf16, #tpu.memory_space<vmem>>, %arg2: memref<27x64xf32, #tpu.memory_space<vmem>>, %arg3: memref<1x4x4x64xbf16, #tpu.memory_space<vmem>>) attributes {dimension_semantics = [#tpu.dimension_semantics<parallel>], iteration_bounds = array<i64: 4>, scalar_prefetch = 0 : i64, scratch_operands = 0 : i64, tpu.core_type = #tpu.core_type<tc>, window_params = [{pipeline_mode = #tpu.pipeline_mode<synchronous>, transform_indices = @transform_0, window_bounds = array<i64: 6, 6, 1, 6, 64>}, {pipeline_mode = #tpu.pipeline_mode<synchronous>, transform_indices = @transform_1, window_bounds = array<i64: 27, 64>}, {transform_indices = @transform_2, window_bounds = array<i64: 1, 4, 4, 64>}]} {
    %c0 = arith.constant 0 : index
    %c0_0 = arith.constant 0 : index
    %0 = vector.load %arg2[%c0, %c0_0] : memref<27x64xf32, #tpu.memory_space<vmem>>, vector<27x64xf32>
    %cst = arith.constant 0.000000e+00 : f32
    %1 = vector.broadcast %cst : f32 to vector<4x4x64xf32>
    %c1_i32 = arith.constant 1 : i32
    %2 = arith.muli %arg0, %c1_i32 : i32
    %c0_i32 = arith.constant 0 : i32
    %3 = arith.addi %2, %c0_i32 : i32
    %4 = arith.index_cast %3 : i32 to index
    %c0_1 = arith.constant 0 : index
    %c0_2 = arith.constant 0 : index
    %c0_3 = arith.constant 0 : index
    %c0_4 = arith.constant 0 : index
    %5 = vector.load %arg1[%4, %c0_1, %c0_2, %c0_3, %c0_4] : memref<6x6x1x6x64xbf16, #tpu.memory_space<vmem>>, vector<1x6x1x6x64xbf16>
    %6 = vector.shape_cast %5 : vector<1x6x1x6x64xbf16> to vector<6x1x6x64xbf16>
    %7 = vector.extract_strided_slice %6 {offsets = [0, 0, 0, 0], sizes = [4, 1, 6, 64], strides = [1, 1, 1, 1]} : vector<6x1x6x64xbf16> to vector<4x1x6x64xbf16>
    %8 = vector.shape_cast %7 : vector<4x1x6x64xbf16> to vector<4x6x64xbf16>
    %9 = vector.extract_strided_slice %8 {offsets = [0, 0, 0], sizes = [4, 4, 64], strides = [1, 1, 1]} : vector<4x6x64xbf16> to vector<4x4x64xbf16>
    %10 = vector.extract_strided_slice %0 {offsets = [0, 0], sizes = [1, 64], strides = [1, 1]} : vector<27x64xf32> to vector<1x64xf32>
    %11 = vector.shape_cast %10 : vector<1x64xf32> to vector<64xf32>
    %12 = vector.shape_cast %11 : vector<64xf32> to vector<1x1x64xf32>
    %13 = arith.extf %9 : vector<4x4x64xbf16> to vector<4x4x64xf32>
    %14 = vector.broadcast %12 : vector<1x1x64xf32> to vector<4x4x64xf32>
    %15 = arith.mulf %13, %14 : vector<4x4x64xf32>
    %16 = arith.addf %1, %15 : vector<4x4x64xf32>
    %17 = vector.extract_strided_slice %8 {offsets = [0, 1, 0], sizes = [4, 4, 64], strides = [1, 1, 1]} : vector<4x6x64xbf16> to vector<4x4x64xbf16>
    %18 = vector.extract_strided_slice %0 {offsets = [1, 0], sizes = [1, 64], strides = [1, 1]} : vector<27x64xf32> to vector<1x64xf32>
    %19 = vector.shape_cast %18 : vector<1x64xf32> to vector<64xf32>
    %20 = vector.shape_cast %19 : vector<64xf32> to vector<1x1x64xf32>
    %21 = arith.extf %17 : vector<4x4x64xbf16> to vector<4x4x64xf32>
    %22 = vector.broadcast %20 : vector<1x1x64xf32> to vector<4x4x64xf32>
    %23 = arith.mulf %21, %22 : vector<4x4x64xf32>
    %24 = arith.addf %16, %23 : vector<4x4x64xf32>
    %25 = vector.extract_strided_slice %8 {offsets = [0, 2, 0], sizes = [4, 4, 64], strides = [1, 1, 1]} : vector<4x6x64xbf16> to vector<4x4x64xbf16>
    %26 = vector.extract_strided_slice %0 {offsets = [2, 0], sizes = [1, 64], strides = [1, 1]} : vector<27x64xf32> to vector<1x64xf32>
    %27 = vector.shape_cast %26 : vector<1x64xf32> to vector<64xf32>
    %28 = vector.shape_cast %27 : vector<64xf32> to vector<1x1x64xf32>
    %29 = arith.extf %25 : vector<4x4x64xbf16> to vector<4x4x64xf32>
    %30 = vector.broadcast %28 : vector<1x1x64xf32> to vector<4x4x64xf32>
    %31 = arith.mulf %29, %30 : vector<4x4x64xf32>
    %32 = arith.addf %24, %31 : vector<4x4x64xf32>
    %33 = vector.extract_strided_slice %6 {offsets = [1, 0, 0, 0], sizes = [4, 1, 6, 64], strides = [1, 1, 1, 1]} : vector<6x1x6x64xbf16> to vector<4x1x6x64xbf16>
    %34 = vector.shape_cast %33 : vector<4x1x6x64xbf16> to vector<4x6x64xbf16>
    %35 = vector.extract_strided_slice %34 {offsets = [0, 0, 0], sizes = [4, 4, 64], strides = [1, 1, 1]} : vector<4x6x64xbf16> to vector<4x4x64xbf16>
    %36 = vector.extract_strided_slice %0 {offsets = [3, 0], sizes = [1, 64], strides = [1, 1]} : vector<27x64xf32> to vector<1x64xf32>
    %37 = vector.shape_cast %36 : vector<1x64xf32> to vector<64xf32>
    %38 = vector.shape_cast %37 : vector<64xf32> to vector<1x1x64xf32>
    %39 = arith.extf %35 : vector<4x4x64xbf16> to vector<4x4x64xf32>
    %40 = vector.broadcast %38 : vector<1x1x64xf32> to vector<4x4x64xf32>
    %41 = arith.mulf %39, %40 : vector<4x4x64xf32>
    %42 = arith.addf %32, %41 : vector<4x4x64xf32>
    %43 = vector.extract_strided_slice %34 {offsets = [0, 1, 0], sizes = [4, 4, 64], strides = [1, 1, 1]} : vector<4x6x64xbf16> to vector<4x4x64xbf16>
    %44 = vector.extract_strided_slice %0 {offsets = [4, 0], sizes = [1, 64], strides = [1, 1]} : vector<27x64xf32> to vector<1x64xf32>
    %45 = vector.shape_cast %44 : vector<1x64xf32> to vector<64xf32>
    %46 = vector.shape_cast %45 : vector<64xf32> to vector<1x1x64xf32>
    %47 = arith.extf %43 : vector<4x4x64xbf16> to vector<4x4x64xf32>
    %48 = vector.broadcast %46 : vector<1x1x64xf32> to vector<4x4x64xf32>
    %49 = arith.mulf %47, %48 : vector<4x4x64xf32>
    %50 = arith.addf %42, %49 : vector<4x4x64xf32>
    %51 = vector.extract_strided_slice %34 {offsets = [0, 2, 0], sizes = [4, 4, 64], strides = [1, 1, 1]} : vector<4x6x64xbf16> to vector<4x4x64xbf16>
    %52 = vector.extract_strided_slice %0 {offsets = [5, 0], sizes = [1, 64], strides = [1, 1]} : vector<27x64xf32> to vector<1x64xf32>
    %53 = vector.shape_cast %52 : vector<1x64xf32> to vector<64xf32>
    %54 = vector.shape_cast %53 : vector<64xf32> to vector<1x1x64xf32>
    %55 = arith.extf %51 : vector<4x4x64xbf16> to vector<4x4x64xf32>
    %56 = vector.broadcast %54 : vector<1x1x64xf32> to vector<4x4x64xf32>
    %57 = arith.mulf %55, %56 : vector<4x4x64xf32>
    %58 = arith.addf %50, %57 : vector<4x4x64xf32>
    %59 = vector.extract_strided_slice %6 {offsets = [2, 0, 0, 0], sizes = [4, 1, 6, 64], strides = [1, 1, 1, 1]} : vector<6x1x6x64xbf16> to vector<4x1x6x64xbf16>
    %60 = vector.shape_cast %59 : vector<4x1x6x64xbf16> to vector<4x6x64xbf16>
    %61 = vector.extract_strided_slice %60 {offsets = [0, 0, 0], sizes = [4, 4, 64], strides = [1, 1, 1]} : vector<4x6x64xbf16> to vector<4x4x64xbf16>
    %62 = vector.extract_strided_slice %0 {offsets = [6, 0], sizes = [1, 64], strides = [1, 1]} : vector<27x64xf32> to vector<1x64xf32>
    %63 = vector.shape_cast %62 : vector<1x64xf32> to vector<64xf32>
    %64 = vector.shape_cast %63 : vector<64xf32> to vector<1x1x64xf32>
    %65 = arith.extf %61 : vector<4x4x64xbf16> to vector<4x4x64xf32>
    %66 = vector.broadcast %64 : vector<1x1x64xf32> to vector<4x4x64xf32>
    %67 = arith.mulf %65, %66 : vector<4x4x64xf32>
    %68 = arith.addf %58, %67 : vector<4x4x64xf32>
    %69 = vector.extract_strided_slice %60 {offsets = [0, 1, 0], sizes = [4, 4, 64], strides = [1, 1, 1]} : vector<4x6x64xbf16> to vector<4x4x64xbf16>
    %70 = vector.extract_strided_slice %0 {offsets = [7, 0], sizes = [1, 64], strides = [1, 1]} : vector<27x64xf32> to vector<1x64xf32>
    %71 = vector.shape_cast %70 : vector<1x64xf32> to vector<64xf32>
    %72 = vector.shape_cast %71 : vector<64xf32> to vector<1x1x64xf32>
    %73 = arith.extf %69 : vector<4x4x64xbf16> to vector<4x4x64xf32>
    %74 = vector.broadcast %72 : vector<1x1x64xf32> to vector<4x4x64xf32>
    %75 = arith.mulf %73, %74 : vector<4x4x64xf32>
    %76 = arith.addf %68, %75 : vector<4x4x64xf32>
    %77 = vector.extract_strided_slice %60 {offsets = [0, 2, 0], sizes = [4, 4, 64], strides = [1, 1, 1]} : vector<4x6x64xbf16> to vector<4x4x64xbf16>
    %78 = vector.extract_strided_slice %0 {offsets = [8, 0], sizes = [1, 64], strides = [1, 1]} : vector<27x64xf32> to vector<1x64xf32>
    %79 = vector.shape_cast %78 : vector<1x64xf32> to vector<64xf32>
    %80 = vector.shape_cast %79 : vector<64xf32> to vector<1x1x64xf32>
    %81 = arith.extf %77 : vector<4x4x64xbf16> to vector<4x4x64xf32>
    %82 = vector.broadcast %80 : vector<1x1x64xf32> to vector<4x4x64xf32>
    %83 = arith.mulf %81, %82 : vector<4x4x64xf32>
    %84 = arith.addf %76, %83 : vector<4x4x64xf32>
    %c1_i32_5 = arith.constant 1 : i32
    %85 = arith.muli %arg0, %c1_i32_5 : i32
    %c1_i32_6 = arith.constant 1 : i32
    %86 = arith.addi %85, %c1_i32_6 : i32
    %87 = arith.index_cast %86 : i32 to index
    %c0_7 = arith.constant 0 : index
    %c0_8 = arith.constant 0 : index
    %c0_9 = arith.constant 0 : index
    %c0_10 = arith.constant 0 : index
    %88 = vector.load %arg1[%87, %c0_7, %c0_8, %c0_9, %c0_10] : memref<6x6x1x6x64xbf16, #tpu.memory_space<vmem>>, vector<1x6x1x6x64xbf16>
    %89 = vector.shape_cast %88 : vector<1x6x1x6x64xbf16> to vector<6x1x6x64xbf16>
    %90 = vector.extract_strided_slice %89 {offsets = [0, 0, 0, 0], sizes = [4, 1, 6, 64], strides = [1, 1, 1, 1]} : vector<6x1x6x64xbf16> to vector<4x1x6x64xbf16>
    %91 = vector.shape_cast %90 : vector<4x1x6x64xbf16> to vector<4x6x64xbf16>
    %92 = vector.extract_strided_slice %91 {offsets = [0, 0, 0], sizes = [4, 4, 64], strides = [1, 1, 1]} : vector<4x6x64xbf16> to vector<4x4x64xbf16>
    %93 = vector.extract_strided_slice %0 {offsets = [9, 0], sizes = [1, 64], strides = [1, 1]} : vector<27x64xf32> to vector<1x64xf32>
    %94 = vector.shape_cast %93 : vector<1x64xf32> to vector<64xf32>
    %95 = vector.shape_cast %94 : vector<64xf32> to vector<1x1x64xf32>
    %96 = arith.extf %92 : vector<4x4x64xbf16> to vector<4x4x64xf32>
    %97 = vector.broadcast %95 : vector<1x1x64xf32> to vector<4x4x64xf32>
    %98 = arith.mulf %96, %97 : vector<4x4x64xf32>
    %99 = arith.addf %84, %98 : vector<4x4x64xf32>
    %100 = vector.extract_strided_slice %91 {offsets = [0, 1, 0], sizes = [4, 4, 64], strides = [1, 1, 1]} : vector<4x6x64xbf16> to vector<4x4x64xbf16>
    %101 = vector.extract_strided_slice %0 {offsets = [10, 0], sizes = [1, 64], strides = [1, 1]} : vector<27x64xf32> to vector<1x64xf32>
    %102 = vector.shape_cast %101 : vector<1x64xf32> to vector<64xf32>
    %103 = vector.shape_cast %102 : vector<64xf32> to vector<1x1x64xf32>
    %104 = arith.extf %100 : vector<4x4x64xbf16> to vector<4x4x64xf32>
    %105 = vector.broadcast %103 : vector<1x1x64xf32> to vector<4x4x64xf32>
    %106 = arith.mulf %104, %105 : vector<4x4x64xf32>
    %107 = arith.addf %99, %106 : vector<4x4x64xf32>
    %108 = vector.extract_strided_slice %91 {offsets = [0, 2, 0], sizes = [4, 4, 64], strides = [1, 1, 1]} : vector<4x6x64xbf16> to vector<4x4x64xbf16>
    %109 = vector.extract_strided_slice %0 {offsets = [11, 0], sizes = [1, 64], strides = [1, 1]} : vector<27x64xf32> to vector<1x64xf32>
    %110 = vector.shape_cast %109 : vector<1x64xf32> to vector<64xf32>
    %111 = vector.shape_cast %110 : vector<64xf32> to vector<1x1x64xf32>
    %112 = arith.extf %108 : vector<4x4x64xbf16> to vector<4x4x64xf32>
    %113 = vector.broadcast %111 : vector<1x1x64xf32> to vector<4x4x64xf32>
    %114 = arith.mulf %112, %113 : vector<4x4x64xf32>
    %115 = arith.addf %107, %114 : vector<4x4x64xf32>
    %116 = vector.extract_strided_slice %89 {offsets = [1, 0, 0, 0], sizes = [4, 1, 6, 64], strides = [1, 1, 1, 1]} : vector<6x1x6x64xbf16> to vector<4x1x6x64xbf16>
    %117 = vector.shape_cast %116 : vector<4x1x6x64xbf16> to vector<4x6x64xbf16>
    %118 = vector.extract_strided_slice %117 {offsets = [0, 0, 0], sizes = [4, 4, 64], strides = [1, 1, 1]} : vector<4x6x64xbf16> to vector<4x4x64xbf16>
    %119 = vector.extract_strided_slice %0 {offsets = [12, 0], sizes = [1, 64], strides = [1, 1]} : vector<27x64xf32> to vector<1x64xf32>
    %120 = vector.shape_cast %119 : vector<1x64xf32> to vector<64xf32>
    %121 = vector.shape_cast %120 : vector<64xf32> to vector<1x1x64xf32>
    %122 = arith.extf %118 : vector<4x4x64xbf16> to vector<4x4x64xf32>
    %123 = vector.broadcast %121 : vector<1x1x64xf32> to vector<4x4x64xf32>
    %124 = arith.mulf %122, %123 : vector<4x4x64xf32>
    %125 = arith.addf %115, %124 : vector<4x4x64xf32>
    %126 = vector.extract_strided_slice %117 {offsets = [0, 1, 0], sizes = [4, 4, 64], strides = [1, 1, 1]} : vector<4x6x64xbf16> to vector<4x4x64xbf16>
    %127 = vector.extract_strided_slice %0 {offsets = [13, 0], sizes = [1, 64], strides = [1, 1]} : vector<27x64xf32> to vector<1x64xf32>
    %128 = vector.shape_cast %127 : vector<1x64xf32> to vector<64xf32>
    %129 = vector.shape_cast %128 : vector<64xf32> to vector<1x1x64xf32>
    %130 = arith.extf %126 : vector<4x4x64xbf16> to vector<4x4x64xf32>
    %131 = vector.broadcast %129 : vector<1x1x64xf32> to vector<4x4x64xf32>
    %132 = arith.mulf %130, %131 : vector<4x4x64xf32>
    %133 = arith.addf %125, %132 : vector<4x4x64xf32>
    %134 = vector.extract_strided_slice %117 {offsets = [0, 2, 0], sizes = [4, 4, 64], strides = [1, 1, 1]} : vector<4x6x64xbf16> to vector<4x4x64xbf16>
    %135 = vector.extract_strided_slice %0 {offsets = [14, 0], sizes = [1, 64], strides = [1, 1]} : vector<27x64xf32> to vector<1x64xf32>
    %136 = vector.shape_cast %135 : vector<1x64xf32> to vector<64xf32>
    %137 = vector.shape_cast %136 : vector<64xf32> to vector<1x1x64xf32>
    %138 = arith.extf %134 : vector<4x4x64xbf16> to vector<4x4x64xf32>
    %139 = vector.broadcast %137 : vector<1x1x64xf32> to vector<4x4x64xf32>
    %140 = arith.mulf %138, %139 : vector<4x4x64xf32>
    %141 = arith.addf %133, %140 : vector<4x4x64xf32>
    %142 = vector.extract_strided_slice %89 {offsets = [2, 0, 0, 0], sizes = [4, 1, 6, 64], strides = [1, 1, 1, 1]} : vector<6x1x6x64xbf16> to vector<4x1x6x64xbf16>
    %143 = vector.shape_cast %142 : vector<4x1x6x64xbf16> to vector<4x6x64xbf16>
    %144 = vector.extract_strided_slice %143 {offsets = [0, 0, 0], sizes = [4, 4, 64], strides = [1, 1, 1]} : vector<4x6x64xbf16> to vector<4x4x64xbf16>
    %145 = vector.extract_strided_slice %0 {offsets = [15, 0], sizes = [1, 64], strides = [1, 1]} : vector<27x64xf32> to vector<1x64xf32>
    %146 = vector.shape_cast %145 : vector<1x64xf32> to vector<64xf32>
    %147 = vector.shape_cast %146 : vector<64xf32> to vector<1x1x64xf32>
    %148 = arith.extf %144 : vector<4x4x64xbf16> to vector<4x4x64xf32>
    %149 = vector.broadcast %147 : vector<1x1x64xf32> to vector<4x4x64xf32>
    %150 = arith.mulf %148, %149 : vector<4x4x64xf32>
    %151 = arith.addf %141, %150 : vector<4x4x64xf32>
    %152 = vector.extract_strided_slice %143 {offsets = [0, 1, 0], sizes = [4, 4, 64], strides = [1, 1, 1]} : vector<4x6x64xbf16> to vector<4x4x64xbf16>
    %153 = vector.extract_strided_slice %0 {offsets = [16, 0], sizes = [1, 64], strides = [1, 1]} : vector<27x64xf32> to vector<1x64xf32>
    %154 = vector.shape_cast %153 : vector<1x64xf32> to vector<64xf32>
    %155 = vector.shape_cast %154 : vector<64xf32> to vector<1x1x64xf32>
    %156 = arith.extf %152 : vector<4x4x64xbf16> to vector<4x4x64xf32>
    %157 = vector.broadcast %155 : vector<1x1x64xf32> to vector<4x4x64xf32>
    %158 = arith.mulf %156, %157 : vector<4x4x64xf32>
    %159 = arith.addf %151, %158 : vector<4x4x64xf32>
    %160 = vector.extract_strided_slice %143 {offsets = [0, 2, 0], sizes = [4, 4, 64], strides = [1, 1, 1]} : vector<4x6x64xbf16> to vector<4x4x64xbf16>
    %161 = vector.extract_strided_slice %0 {offsets = [17, 0], sizes = [1, 64], strides = [1, 1]} : vector<27x64xf32> to vector<1x64xf32>
    %162 = vector.shape_cast %161 : vector<1x64xf32> to vector<64xf32>
    %163 = vector.shape_cast %162 : vector<64xf32> to vector<1x1x64xf32>
    %164 = arith.extf %160 : vector<4x4x64xbf16> to vector<4x4x64xf32>
    %165 = vector.broadcast %163 : vector<1x1x64xf32> to vector<4x4x64xf32>
    %166 = arith.mulf %164, %165 : vector<4x4x64xf32>
    %167 = arith.addf %159, %166 : vector<4x4x64xf32>
    %c1_i32_11 = arith.constant 1 : i32
    %168 = arith.muli %arg0, %c1_i32_11 : i32
    %c2_i32 = arith.constant 2 : i32
    %169 = arith.addi %168, %c2_i32 : i32
    %170 = arith.index_cast %169 : i32 to index
    %c0_12 = arith.constant 0 : index
    %c0_13 = arith.constant 0 : index
    %c0_14 = arith.constant 0 : index
    %c0_15 = arith.constant 0 : index
    %171 = vector.load %arg1[%170, %c0_12, %c0_13, %c0_14, %c0_15] : memref<6x6x1x6x64xbf16, #tpu.memory_space<vmem>>, vector<1x6x1x6x64xbf16>
    %172 = vector.shape_cast %171 : vector<1x6x1x6x64xbf16> to vector<6x1x6x64xbf16>
    %173 = vector.extract_strided_slice %172 {offsets = [0, 0, 0, 0], sizes = [4, 1, 6, 64], strides = [1, 1, 1, 1]} : vector<6x1x6x64xbf16> to vector<4x1x6x64xbf16>
    %174 = vector.shape_cast %173 : vector<4x1x6x64xbf16> to vector<4x6x64xbf16>
    %175 = vector.extract_strided_slice %174 {offsets = [0, 0, 0], sizes = [4, 4, 64], strides = [1, 1, 1]} : vector<4x6x64xbf16> to vector<4x4x64xbf16>
    %176 = vector.extract_strided_slice %0 {offsets = [18, 0], sizes = [1, 64], strides = [1, 1]} : vector<27x64xf32> to vector<1x64xf32>
    %177 = vector.shape_cast %176 : vector<1x64xf32> to vector<64xf32>
    %178 = vector.shape_cast %177 : vector<64xf32> to vector<1x1x64xf32>
    %179 = arith.extf %175 : vector<4x4x64xbf16> to vector<4x4x64xf32>
    %180 = vector.broadcast %178 : vector<1x1x64xf32> to vector<4x4x64xf32>
    %181 = arith.mulf %179, %180 : vector<4x4x64xf32>
    %182 = arith.addf %167, %181 : vector<4x4x64xf32>
    %183 = vector.extract_strided_slice %174 {offsets = [0, 1, 0], sizes = [4, 4, 64], strides = [1, 1, 1]} : vector<4x6x64xbf16> to vector<4x4x64xbf16>
    %184 = vector.extract_strided_slice %0 {offsets = [19, 0], sizes = [1, 64], strides = [1, 1]} : vector<27x64xf32> to vector<1x64xf32>
    %185 = vector.shape_cast %184 : vector<1x64xf32> to vector<64xf32>
    %186 = vector.shape_cast %185 : vector<64xf32> to vector<1x1x64xf32>
    %187 = arith.extf %183 : vector<4x4x64xbf16> to vector<4x4x64xf32>
    %188 = vector.broadcast %186 : vector<1x1x64xf32> to vector<4x4x64xf32>
    %189 = arith.mulf %187, %188 : vector<4x4x64xf32>
    %190 = arith.addf %182, %189 : vector<4x4x64xf32>
    %191 = vector.extract_strided_slice %174 {offsets = [0, 2, 0], sizes = [4, 4, 64], strides = [1, 1, 1]} : vector<4x6x64xbf16> to vector<4x4x64xbf16>
    %192 = vector.extract_strided_slice %0 {offsets = [20, 0], sizes = [1, 64], strides = [1, 1]} : vector<27x64xf32> to vector<1x64xf32>
    %193 = vector.shape_cast %192 : vector<1x64xf32> to vector<64xf32>
    %194 = vector.shape_cast %193 : vector<64xf32> to vector<1x1x64xf32>
    %195 = arith.extf %191 : vector<4x4x64xbf16> to vector<4x4x64xf32>
    %196 = vector.broadcast %194 : vector<1x1x64xf32> to vector<4x4x64xf32>
    %197 = arith.mulf %195, %196 : vector<4x4x64xf32>
    %198 = arith.addf %190, %197 : vector<4x4x64xf32>
    %199 = vector.extract_strided_slice %172 {offsets = [1, 0, 0, 0], sizes = [4, 1, 6, 64], strides = [1, 1, 1, 1]} : vector<6x1x6x64xbf16> to vector<4x1x6x64xbf16>
    %200 = vector.shape_cast %199 : vector<4x1x6x64xbf16> to vector<4x6x64xbf16>
    %201 = vector.extract_strided_slice %200 {offsets = [0, 0, 0], sizes = [4, 4, 64], strides = [1, 1, 1]} : vector<4x6x64xbf16> to vector<4x4x64xbf16>
    %202 = vector.extract_strided_slice %0 {offsets = [21, 0], sizes = [1, 64], strides = [1, 1]} : vector<27x64xf32> to vector<1x64xf32>
    %203 = vector.shape_cast %202 : vector<1x64xf32> to vector<64xf32>
    %204 = vector.shape_cast %203 : vector<64xf32> to vector<1x1x64xf32>
    %205 = arith.extf %201 : vector<4x4x64xbf16> to vector<4x4x64xf32>
    %206 = vector.broadcast %204 : vector<1x1x64xf32> to vector<4x4x64xf32>
    %207 = arith.mulf %205, %206 : vector<4x4x64xf32>
    %208 = arith.addf %198, %207 : vector<4x4x64xf32>
    %209 = vector.extract_strided_slice %200 {offsets = [0, 1, 0], sizes = [4, 4, 64], strides = [1, 1, 1]} : vector<4x6x64xbf16> to vector<4x4x64xbf16>
    %210 = vector.extract_strided_slice %0 {offsets = [22, 0], sizes = [1, 64], strides = [1, 1]} : vector<27x64xf32> to vector<1x64xf32>
    %211 = vector.shape_cast %210 : vector<1x64xf32> to vector<64xf32>
    %212 = vector.shape_cast %211 : vector<64xf32> to vector<1x1x64xf32>
    %213 = arith.extf %209 : vector<4x4x64xbf16> to vector<4x4x64xf32>
    %214 = vector.broadcast %212 : vector<1x1x64xf32> to vector<4x4x64xf32>
    %215 = arith.mulf %213, %214 : vector<4x4x64xf32>
    %216 = arith.addf %208, %215 : vector<4x4x64xf32>
    %217 = vector.extract_strided_slice %200 {offsets = [0, 2, 0], sizes = [4, 4, 64], strides = [1, 1, 1]} : vector<4x6x64xbf16> to vector<4x4x64xbf16>
    %218 = vector.extract_strided_slice %0 {offsets = [23, 0], sizes = [1, 64], strides = [1, 1]} : vector<27x64xf32> to vector<1x64xf32>
    %219 = vector.shape_cast %218 : vector<1x64xf32> to vector<64xf32>
    %220 = vector.shape_cast %219 : vector<64xf32> to vector<1x1x64xf32>
    %221 = arith.extf %217 : vector<4x4x64xbf16> to vector<4x4x64xf32>
    %222 = vector.broadcast %220 : vector<1x1x64xf32> to vector<4x4x64xf32>
    %223 = arith.mulf %221, %222 : vector<4x4x64xf32>
    %224 = arith.addf %216, %223 : vector<4x4x64xf32>
    %225 = vector.extract_strided_slice %172 {offsets = [2, 0, 0, 0], sizes = [4, 1, 6, 64], strides = [1, 1, 1, 1]} : vector<6x1x6x64xbf16> to vector<4x1x6x64xbf16>
    %226 = vector.shape_cast %225 : vector<4x1x6x64xbf16> to vector<4x6x64xbf16>
    %227 = vector.extract_strided_slice %226 {offsets = [0, 0, 0], sizes = [4, 4, 64], strides = [1, 1, 1]} : vector<4x6x64xbf16> to vector<4x4x64xbf16>
    %228 = vector.extract_strided_slice %0 {offsets = [24, 0], sizes = [1, 64], strides = [1, 1]} : vector<27x64xf32> to vector<1x64xf32>
    %229 = vector.shape_cast %228 : vector<1x64xf32> to vector<64xf32>
    %230 = vector.shape_cast %229 : vector<64xf32> to vector<1x1x64xf32>
    %231 = arith.extf %227 : vector<4x4x64xbf16> to vector<4x4x64xf32>
    %232 = vector.broadcast %230 : vector<1x1x64xf32> to vector<4x4x64xf32>
    %233 = arith.mulf %231, %232 : vector<4x4x64xf32>
    %234 = arith.addf %224, %233 : vector<4x4x64xf32>
    %235 = vector.extract_strided_slice %226 {offsets = [0, 1, 0], sizes = [4, 4, 64], strides = [1, 1, 1]} : vector<4x6x64xbf16> to vector<4x4x64xbf16>
    %236 = vector.extract_strided_slice %0 {offsets = [25, 0], sizes = [1, 64], strides = [1, 1]} : vector<27x64xf32> to vector<1x64xf32>
    %237 = vector.shape_cast %236 : vector<1x64xf32> to vector<64xf32>
    %238 = vector.shape_cast %237 : vector<64xf32> to vector<1x1x64xf32>
    %239 = arith.extf %235 : vector<4x4x64xbf16> to vector<4x4x64xf32>
    %240 = vector.broadcast %238 : vector<1x1x64xf32> to vector<4x4x64xf32>
    %241 = arith.mulf %239, %240 : vector<4x4x64xf32>
    %242 = arith.addf %234, %241 : vector<4x4x64xf32>
    %243 = vector.extract_strided_slice %226 {offsets = [0, 2, 0], sizes = [4, 4, 64], strides = [1, 1, 1]} : vector<4x6x64xbf16> to vector<4x4x64xbf16>
    %244 = vector.extract_strided_slice %0 {offsets = [26, 0], sizes = [1, 64], strides = [1, 1]} : vector<27x64xf32> to vector<1x64xf32>
    %245 = vector.shape_cast %244 : vector<1x64xf32> to vector<64xf32>
    %246 = vector.shape_cast %245 : vector<64xf32> to vector<1x1x64xf32>
    %247 = arith.extf %243 : vector<4x4x64xbf16> to vector<4x4x64xf32>
    %248 = vector.broadcast %246 : vector<1x1x64xf32> to vector<4x4x64xf32>
    %249 = arith.mulf %247, %248 : vector<4x4x64xf32>
    %250 = arith.addf %242, %249 : vector<4x4x64xf32>
    %251 = arith.truncf %250 : vector<4x4x64xf32> to vector<4x4x64xbf16>
    %c0_16 = arith.constant 0 : index
    %c0_17 = arith.constant 0 : index
    %c0_18 = arith.constant 0 : index
    %c0_19 = arith.constant 0 : index
    %252 = vector.load %arg3[%c0_16, %c0_17, %c0_18, %c0_19] : memref<1x4x4x64xbf16, #tpu.memory_space<vmem>>, vector<1x4x4x64xbf16>
    %253 = vector.shape_cast %252 : vector<1x4x4x64xbf16> to vector<4x4x64xbf16>
    %254 = vector.shape_cast %251 : vector<4x4x64xbf16> to vector<1x4x4x64xbf16>
    tpu.vector_store %arg3[%c0_16, %c0_17, %c0_18, %c0_19], %254 {strides = array<i32>} : memref<1x4x4x64xbf16, #tpu.memory_space<vmem>>, vector<1x4x4x64xbf16>,
    return
  }
  func.func @transform_0(%arg0: i32) -> (i32, i32, i32, i32, i32) {
    %c0_i32 = arith.constant 0 : i32
    %c0_i32_0 = arith.constant 0 : i32
    %c0_i32_1 = arith.constant 0 : i32
    %c0_i32_2 = arith.constant 0 : i32
    %c0_i32_3 = arith.constant 0 : i32
    %c0_i32_4 = arith.constant 0 : i32
    return %c0_i32, %c0_i32_0, %c0_i32_1, %c0_i32_2, %c0_i32_3 : i32, i32, i32, i32, i32
  }
  func.func @transform_1(%arg0: i32) -> (i32, i32) {
    %c0_i32 = arith.constant 0 : i32
    %c0_i32_0 = arith.constant 0 : i32
    %c0_i32_1 = arith.constant 0 : i32
    return %c0_i32, %c0_i32_0 : i32, i32
  }
  func.func @transform_2(%arg0: i32) -> (i32, i32, i32, i32) {
    %c0_i32 = arith.constant 0 : i32
    %c0_i32_0 = arith.constant 0 : i32
    %c0_i32_1 = arith.constant 0 : i32
    %c0_i32_2 = arith.constant 0 : i32
    return %arg0, %c0_i32, %c0_i32_0, %c0_i32_1 : i32, i32, i32, i32
  }
}

module attributes {stable_mosaic.version = 11 : i64} {
  func.func @_attn_kernel(%arg0: i32, %arg1: memref<1x65x8xbf16, #tpu.memory_space<vmem>>, %arg2: memref<1x9x8xbf16, #tpu.memory_space<vmem>>, %arg3: memref<1x9x8xbf16, #tpu.memory_space<vmem>>, %arg4: memref<6x8xf32, #tpu.memory_space<vmem>>, %arg5: memref<1x65x8xbf16, #tpu.memory_space<vmem>>) attributes {dimension_semantics = [#tpu.dimension_semantics<parallel>], iteration_bounds = array<i64: 8>, scalar_prefetch = 0 : i64, scratch_operands = 0 : i64, tpu.core_type = #tpu.core_type<tc>, window_params = [{transform_indices = @transform_0, window_bounds = array<i64: 1, 65, 8>}, {transform_indices = @transform_1, window_bounds = array<i64: 1, 9, 8>}, {transform_indices = @transform_2, window_bounds = array<i64: 1, 9, 8>}, {pipeline_mode = #tpu.pipeline_mode<synchronous>, transform_indices = @transform_3, window_bounds = array<i64: 6, 8>}, {transform_indices = @transform_4, window_bounds = array<i64: 1, 65, 8>}]} {
    %c0 = arith.constant 0 : index
    %c0_0 = arith.constant 0 : index
    %0 = vector.load %arg4[%c0, %c0_0] : memref<6x8xf32, #tpu.memory_space<vmem>>, vector<6x8xf32>
    %c0_1 = arith.constant 0 : index
    %c0_2 = arith.constant 0 : index
    %c0_3 = arith.constant 0 : index
    %1 = vector.load %arg1[%c0_1, %c0_2, %c0_3] : memref<1x65x8xbf16, #tpu.memory_space<vmem>>, vector<1x65x8xbf16>
    %2 = vector.shape_cast %1 : vector<1x65x8xbf16> to vector<65x8xbf16>
    %3 = arith.extf %2 : vector<65x8xbf16> to vector<65x8xf32>
    %4 = vector.extract_strided_slice %0 {offsets = [0, 0], sizes = [1, 8], strides = [1, 1]} : vector<6x8xf32> to vector<1x8xf32>
    %5 = vector.extract_strided_slice %0 {offsets = [1, 0], sizes = [1, 8], strides = [1, 1]} : vector<6x8xf32> to vector<1x8xf32>
    %cst = arith.constant dense<0.000000e+00> : vector<65xf32>
    %6 = vector.multi_reduction <add>, %3, %cst [1] : vector<65x8xf32> to vector<65xf32>
    %7 = vector.shape_cast %6 : vector<65xf32> to vector<65x1xf32>
    %cst_4 = arith.constant 8.000000e+00 : f32
    %8 = vector.broadcast %cst_4 : f32 to vector<65x1xf32>
    %9 = arith.divf %7, %8 : vector<65x1xf32>
    %10 = vector.broadcast %9 : vector<65x1xf32> to vector<65x8xf32>
    %11 = arith.subf %3, %10 : vector<65x8xf32>
    %12 = arith.mulf %11, %11 : vector<65x8xf32>
    %cst_5 = arith.constant dense<0.000000e+00> : vector<65xf32>
    %13 = vector.multi_reduction <add>, %12, %cst_5 [1] : vector<65x8xf32> to vector<65xf32>
    %14 = vector.shape_cast %13 : vector<65xf32> to vector<65x1xf32>
    %cst_6 = arith.constant 8.000000e+00 : f32
    %15 = vector.broadcast %cst_6 : f32 to vector<65x1xf32>
    %16 = arith.divf %14, %15 : vector<65x1xf32>
    %17 = vector.broadcast %9 : vector<65x1xf32> to vector<65x8xf32>
    %18 = arith.subf %3, %17 : vector<65x8xf32>
    %cst_7 = arith.constant 9.99999974E-6 : f32
    %19 = vector.broadcast %cst_7 : f32 to vector<65x1xf32>
    %20 = arith.addf %16, %19 : vector<65x1xf32>
    %21 = math.rsqrt %20 : vector<65x1xf32>
    %22 = vector.broadcast %21 : vector<65x1xf32> to vector<65x8xf32>
    %23 = arith.mulf %18, %22 : vector<65x8xf32>
    %24 = vector.broadcast %4 : vector<1x8xf32> to vector<65x8xf32>
    %25 = arith.mulf %23, %24 : vector<65x8xf32>
    %26 = vector.broadcast %5 : vector<1x8xf32> to vector<65x8xf32>
    %27 = arith.addf %25, %26 : vector<65x8xf32>
    %c0_8 = arith.constant 0 : index
    %c0_9 = arith.constant 0 : index
    %c0_10 = arith.constant 0 : index
    %28 = vector.load %arg2[%c0_8, %c0_9, %c0_10] : memref<1x9x8xbf16, #tpu.memory_space<vmem>>, vector<1x9x8xbf16>
    %29 = vector.shape_cast %28 : vector<1x9x8xbf16> to vector<9x8xbf16>
    %30 = arith.extf %29 : vector<9x8xbf16> to vector<9x8xf32>
    %31 = vector.extract_strided_slice %0 {offsets = [2, 0], sizes = [1, 8], strides = [1, 1]} : vector<6x8xf32> to vector<1x8xf32>
    %32 = vector.extract_strided_slice %0 {offsets = [3, 0], sizes = [1, 8], strides = [1, 1]} : vector<6x8xf32> to vector<1x8xf32>
    %cst_11 = arith.constant dense<0.000000e+00> : vector<9xf32>
    %33 = vector.multi_reduction <add>, %30, %cst_11 [1] : vector<9x8xf32> to vector<9xf32>
    %34 = vector.shape_cast %33 : vector<9xf32> to vector<9x1xf32>
    %cst_12 = arith.constant 8.000000e+00 : f32
    %35 = vector.broadcast %cst_12 : f32 to vector<9x1xf32>
    %36 = arith.divf %34, %35 : vector<9x1xf32>
    %37 = vector.broadcast %36 : vector<9x1xf32> to vector<9x8xf32>
    %38 = arith.subf %30, %37 : vector<9x8xf32>
    %39 = arith.mulf %38, %38 : vector<9x8xf32>
    %cst_13 = arith.constant dense<0.000000e+00> : vector<9xf32>
    %40 = vector.multi_reduction <add>, %39, %cst_13 [1] : vector<9x8xf32> to vector<9xf32>
    %41 = vector.shape_cast %40 : vector<9xf32> to vector<9x1xf32>
    %cst_14 = arith.constant 8.000000e+00 : f32
    %42 = vector.broadcast %cst_14 : f32 to vector<9x1xf32>
    %43 = arith.divf %41, %42 : vector<9x1xf32>
    %44 = vector.broadcast %36 : vector<9x1xf32> to vector<9x8xf32>
    %45 = arith.subf %30, %44 : vector<9x8xf32>
    %cst_15 = arith.constant 9.99999974E-6 : f32
    %46 = vector.broadcast %cst_15 : f32 to vector<9x1xf32>
    %47 = arith.addf %43, %46 : vector<9x1xf32>
    %48 = math.rsqrt %47 : vector<9x1xf32>
    %49 = vector.broadcast %48 : vector<9x1xf32> to vector<9x8xf32>
    %50 = arith.mulf %45, %49 : vector<9x8xf32>
    %51 = vector.broadcast %31 : vector<1x8xf32> to vector<9x8xf32>
    %52 = arith.mulf %50, %51 : vector<9x8xf32>
    %53 = vector.broadcast %32 : vector<1x8xf32> to vector<9x8xf32>
    %54 = arith.addf %52, %53 : vector<9x8xf32>
    %c0_16 = arith.constant 0 : index
    %c0_17 = arith.constant 0 : index
    %c0_18 = arith.constant 0 : index
    %55 = vector.load %arg3[%c0_16, %c0_17, %c0_18] : memref<1x9x8xbf16, #tpu.memory_space<vmem>>, vector<1x9x8xbf16>
    %56 = vector.shape_cast %55 : vector<1x9x8xbf16> to vector<9x8xbf16>
    %57 = arith.extf %56 : vector<9x8xbf16> to vector<9x8xf32>
    %58 = vector.extract_strided_slice %0 {offsets = [4, 0], sizes = [1, 8], strides = [1, 1]} : vector<6x8xf32> to vector<1x8xf32>
    %59 = vector.extract_strided_slice %0 {offsets = [5, 0], sizes = [1, 8], strides = [1, 1]} : vector<6x8xf32> to vector<1x8xf32>
    %cst_19 = arith.constant dense<0.000000e+00> : vector<9xf32>
    %60 = vector.multi_reduction <add>, %57, %cst_19 [1] : vector<9x8xf32> to vector<9xf32>
    %61 = vector.shape_cast %60 : vector<9xf32> to vector<9x1xf32>
    %cst_20 = arith.constant 8.000000e+00 : f32
    %62 = vector.broadcast %cst_20 : f32 to vector<9x1xf32>
    %63 = arith.divf %61, %62 : vector<9x1xf32>
    %64 = vector.broadcast %63 : vector<9x1xf32> to vector<9x8xf32>
    %65 = arith.subf %57, %64 : vector<9x8xf32>
    %66 = arith.mulf %65, %65 : vector<9x8xf32>
    %cst_21 = arith.constant dense<0.000000e+00> : vector<9xf32>
    %67 = vector.multi_reduction <add>, %66, %cst_21 [1] : vector<9x8xf32> to vector<9xf32>
    %68 = vector.shape_cast %67 : vector<9xf32> to vector<9x1xf32>
    %cst_22 = arith.constant 8.000000e+00 : f32
    %69 = vector.broadcast %cst_22 : f32 to vector<9x1xf32>
    %70 = arith.divf %68, %69 : vector<9x1xf32>
    %71 = vector.broadcast %63 : vector<9x1xf32> to vector<9x8xf32>
    %72 = arith.subf %57, %71 : vector<9x8xf32>
    %cst_23 = arith.constant 9.99999974E-6 : f32
    %73 = vector.broadcast %cst_23 : f32 to vector<9x1xf32>
    %74 = arith.addf %70, %73 : vector<9x1xf32>
    %75 = math.rsqrt %74 : vector<9x1xf32>
    %76 = vector.broadcast %75 : vector<9x1xf32> to vector<9x8xf32>
    %77 = arith.mulf %72, %76 : vector<9x8xf32>
    %78 = vector.broadcast %58 : vector<1x8xf32> to vector<9x8xf32>
    %79 = arith.mulf %77, %78 : vector<9x8xf32>
    %80 = vector.broadcast %59 : vector<1x8xf32> to vector<9x8xf32>
    %81 = arith.addf %79, %80 : vector<9x8xf32>
    %82 = arith.truncf %27 : vector<65x8xf32> to vector<65x8xbf16>
    %83 = arith.truncf %54 : vector<9x8xf32> to vector<9x8xbf16>
    %cst_24 = arith.constant dense<0.000000e+00> : vector<65x9xf32>
    %84 = tpu.matmul %82, %83, %cst_24 {dimension_numbers = #tpu.dot_dimension_numbers<[1], [1], [0], [0], [0, 0, 1, 0], [], []>} : vector<65x8xbf16>, vector<9x8xbf16>, vector<65x9xf32> -> vector<65x9xf32>
    %cst_25 = arith.constant dense<0xFF800000> : vector<65xf32>
    %85 = vector.multi_reduction <maximumf>, %84, %cst_25 [1] : vector<65x9xf32> to vector<65xf32>
    %86 = vector.shape_cast %85 : vector<65xf32> to vector<65x1xf32>
    %87 = vector.broadcast %86 : vector<65x1xf32> to vector<65x9xf32>
    %88 = arith.subf %84, %87 : vector<65x9xf32>
    %89 = math.exp %88 : vector<65x9xf32>
    %cst_26 = arith.constant dense<0.000000e+00> : vector<65xf32>
    %90 = vector.multi_reduction <add>, %89, %cst_26 [1] : vector<65x9xf32> to vector<65xf32>
    %91 = vector.shape_cast %90 : vector<65xf32> to vector<65x1xf32>
    %92 = tpu.reciprocal %91 {approx = true} : vector<65x1xf32> -> vector<65x1xf32>
    %93 = vector.broadcast %92 : vector<65x1xf32> to vector<65x9xf32>
    %94 = arith.mulf %89, %93 : vector<65x9xf32>
    %95 = arith.truncf %94 : vector<65x9xf32> to vector<65x9xbf16>
    %96 = arith.truncf %81 : vector<9x8xf32> to vector<9x8xbf16>
    %cst_27 = arith.constant dense<0.000000e+00> : vector<65x8xf32>
    %97 = tpu.matmul %95, %96, %cst_27 {dimension_numbers = #tpu.dot_dimension_numbers<[1], [0], [0], [1], [0, 0, 1, 1], [], []>} : vector<65x9xbf16>, vector<9x8xbf16>, vector<65x8xf32> -> vector<65x8xf32>
    %98 = arith.addf %97, %27 : vector<65x8xf32>
    %99 = arith.truncf %98 : vector<65x8xf32> to vector<65x8xbf16>
    %c0_28 = arith.constant 0 : index
    %c0_29 = arith.constant 0 : index
    %c0_30 = arith.constant 0 : index
    %100 = vector.load %arg5[%c0_28, %c0_29, %c0_30] : memref<1x65x8xbf16, #tpu.memory_space<vmem>>, vector<1x65x8xbf16>
    %101 = vector.shape_cast %100 : vector<1x65x8xbf16> to vector<65x8xbf16>
    %102 = vector.shape_cast %99 : vector<65x8xbf16> to vector<1x65x8xbf16>
    tpu.vector_store %arg5[%c0_28, %c0_29, %c0_30], %102 {strides = array<i32>} : memref<1x65x8xbf16, #tpu.memory_space<vmem>>, vector<1x65x8xbf16>,
    return
  }
  func.func @transform_0(%arg0: i32) -> (i32, i32, i32) {
    %c0_i32 = arith.constant 0 : i32
    %c0_i32_0 = arith.constant 0 : i32
    %c0_i32_1 = arith.constant 0 : i32
    return %arg0, %c0_i32, %c0_i32_0 : i32, i32, i32
  }
  func.func @transform_1(%arg0: i32) -> (i32, i32, i32) {
    %c0_i32 = arith.constant 0 : i32
    %c0_i32_0 = arith.constant 0 : i32
    %c0_i32_1 = arith.constant 0 : i32
    return %arg0, %c0_i32, %c0_i32_0 : i32, i32, i32
  }
  func.func @transform_2(%arg0: i32) -> (i32, i32, i32) {
    %c0_i32 = arith.constant 0 : i32
    %c0_i32_0 = arith.constant 0 : i32
    %c0_i32_1 = arith.constant 0 : i32
    return %arg0, %c0_i32, %c0_i32_0 : i32, i32, i32
  }
  func.func @transform_3(%arg0: i32) -> (i32, i32) {
    %c0_i32 = arith.constant 0 : i32
    %c0_i32_0 = arith.constant 0 : i32
    %c0_i32_1 = arith.constant 0 : i32
    return %c0_i32, %c0_i32_0 : i32, i32
  }
  func.func @transform_4(%arg0: i32) -> (i32, i32, i32) {
    %c0_i32 = arith.constant 0 : i32
    %c0_i32_0 = arith.constant 0 : i32
    %c0_i32_1 = arith.constant 0 : i32
    return %arg0, %c0_i32, %c0_i32_0 : i32, i32, i32
  }
}

module attributes {stable_mosaic.version = 11 : i64} {
  func.func @_matmul_bias_kernel(%arg0: i32, %arg1: i32, %arg2: memref<130x32xbf16, #tpu.memory_space<vmem>>, %arg3: memref<32x32xbf16, #tpu.memory_space<vmem>>, %arg4: memref<1x32xf32, #tpu.memory_space<vmem>>, %arg5: memref<130x32xf32, #tpu.memory_space<vmem>>) attributes {dimension_semantics = [#tpu.dimension_semantics<parallel>, #tpu.dimension_semantics<parallel>], iteration_bounds = array<i64: 1, 1>, scalar_prefetch = 0 : i64, scratch_operands = 0 : i64, tpu.core_type = #tpu.core_type<tc>, window_params = [{transform_indices = @transform_0, window_bounds = array<i64: 130, 32>}, {transform_indices = @transform_1, window_bounds = array<i64: 32, 32>}, {transform_indices = @transform_2, window_bounds = array<i64: 1, 32>}, {transform_indices = @transform_3, window_bounds = array<i64: 130, 32>}]} {
    %c0 = arith.constant 0 : index
    %c0_0 = arith.constant 0 : index
    %0 = vector.load %arg2[%c0, %c0_0] : memref<130x32xbf16, #tpu.memory_space<vmem>>, vector<130x32xbf16>
    %c0_1 = arith.constant 0 : index
    %c0_2 = arith.constant 0 : index
    %1 = vector.load %arg3[%c0_1, %c0_2] : memref<32x32xbf16, #tpu.memory_space<vmem>>, vector<32x32xbf16>
    %cst = arith.constant dense<0.000000e+00> : vector<130x32xf32>
    %2 = tpu.matmul %0, %1, %cst {dimension_numbers = #tpu.dot_dimension_numbers<[1], [0], [0], [1], [0, 0, 1, 1], [], []>} : vector<130x32xbf16>, vector<32x32xbf16>, vector<130x32xf32> -> vector<130x32xf32>
    %c0_3 = arith.constant 0 : index
    %c0_4 = arith.constant 0 : index
    %3 = vector.load %arg4[%c0_3, %c0_4] : memref<1x32xf32, #tpu.memory_space<vmem>>, vector<1x32xf32>
    %4 = vector.broadcast %3 : vector<1x32xf32> to vector<130x32xf32>
    %5 = arith.addf %2, %4 : vector<130x32xf32>
    %c0_5 = arith.constant 0 : index
    %c0_6 = arith.constant 0 : index
    %6 = vector.load %arg5[%c0_5, %c0_6] : memref<130x32xf32, #tpu.memory_space<vmem>>, vector<130x32xf32>
    tpu.vector_store %arg5[%c0_5, %c0_6], %5 {strides = array<i32>} : memref<130x32xf32, #tpu.memory_space<vmem>>, vector<130x32xf32>,
    return
  }
  func.func @transform_0(%arg0: i32, %arg1: i32) -> (i32, i32) {
    %c0_i32 = arith.constant 0 : i32
    %c0_i32_0 = arith.constant 0 : i32
    return %arg0, %c0_i32 : i32, i32
  }
  func.func @transform_1(%arg0: i32, %arg1: i32) -> (i32, i32) {
    %c0_i32 = arith.constant 0 : i32
    %c0_i32_0 = arith.constant 0 : i32
    return %c0_i32, %arg1 : i32, i32
  }
  func.func @transform_2(%arg0: i32, %arg1: i32) -> (i32, i32) {
    %c0_i32 = arith.constant 0 : i32
    %c0_i32_0 = arith.constant 0 : i32
    return %c0_i32, %arg1 : i32, i32
  }
  func.func @transform_3(%arg0: i32, %arg1: i32) -> (i32, i32) {
    %c0_i32 = arith.constant 0 : i32
    return %arg0, %arg1 : i32, i32
  }
}

</mosaic_0001>

<bundles_post_ra>
// kernel: tile.39
= control target key start
LH: loop header
LB: loop body
LE: loop exit
PB: predicated region body
PF: predicated region fallthrough
CT: control target
= control target key end

     0   :  { %vm137_vm0 = vcmask 1047556   ;;  %vm139_vm1 = vcmask 523264   ;;  %vm172_vm2 = vcmask 1048064   ;;  %s387_s0 = inlined_call_operand.vmem [shape: f32[27,2,64], index: 0, kind: input, shape index: {}]   ;;  %s388_s1 = inlined_call_operand.vmem [shape: f32[27,128], index: 1, kind: output, shape index: {}]  }
   0x1   :  { %v247_v0 = vld [vmem:[%s387_s0 + $0xe] sm:$0x3]  ;;  %v248_v1 = vld [vmem:[%s387_s0 + $0xc] sm:$0x3]  ;;  %v249_v2 = vld [vmem:[%s387_s0 + $0xa] sm:$0x3] }
   0x2   :  { %103 = vst [vmem:[#allocation0 + $0x38] sm:$0x3] %v247_v0  ;;  %108 = vst [vmem:[#allocation0 + $0x30] sm:$0x3] %v248_v1  ;;  %v250_v3 = vld [vmem:[%s387_s0 + $0x8] sm:$0x3] }
   0x3   :  { %113 = vst [vmem:[#allocation0 + $0x28] sm:$0x3] %v249_v2  ;;  %v251_v4 = vld [vmem:[%s387_s0 + $0x6] sm:$0x3]  ;;  %v252_v5 = vld [vmem:[%s387_s0 + $0x4] sm:$0x3] }
   0x4   :  { %118 = vst [vmem:[#allocation0 + $0x20] sm:$0x3] %v250_v3  ;;  %123 = vst [vmem:[#allocation0 + $0x18] sm:$0x3] %v251_v4  ;;  %v253_v6 = vld [vmem:[%s387_s0 + $0x2] sm:$0x3] }
   0x5   :  { %128 = vst [vmem:[#allocation0 + $0x10] sm:$0x3] %v252_v5  ;;  %v133_v7 = vld [vmem:[%s387_s0] sm:$0x3]  ;;  %132 = vst [vmem:[#allocation0 + $0x8] sm:$0x3] %v253_v6 }
   0x6   :  { %134 = vst [vmem:[#allocation0] sm:$0x3] %v133_v7  ;;  %v231_v8 = vld [vmem:[%s387_s0 + $0x2e] sm:$0x3]  ;;  %v232_v9 = vld [vmem:[%s387_s0 + $0x2c] sm:$0x3] }
   0x7   :  { %v233_v10 = vld [vmem:[%s387_s0 + $0x2a] sm:$0x3]  ;;  %23 = vst [vmem:[#allocation0 + $0xb8] sm:$0x3] %v231_v8  ;;  %28 = vst [vmem:[#allocation0 + $0xb0] sm:$0x3] %v232_v9 }
   0x8   :  { %33 = vst [vmem:[#allocation0 + $0xa8] sm:$0x3] %v233_v10  ;;  %v234_v11 = vld [vmem:[%s387_s0 + $0x28] sm:$0x3]  ;;  %v235_v12 = vld [vmem:[%s387_s0 + $0x26] sm:$0x3] }
   0x9   :  { %v236_v13 = vld [vmem:[%s387_s0 + $0x24] sm:$0x3]  ;;  %38 = vst [vmem:[#allocation0 + $0xa0] sm:$0x3] %v234_v11  ;;  %43 = vst [vmem:[#allocation0 + $0x98] sm:$0x3] %v235_v12 }
   0xa   :  { %48 = vst [vmem:[#allocation0 + $0x90] sm:$0x3] %v236_v13  ;;  %v237_v14 = vld [vmem:[%s387_s0 + $0x22] sm:$0x3]  ;;  %v238_v15 = vld [vmem:[%s387_s0 + $0x20] sm:$0x3] }
   0xb   :  { %v239_v16 = vld [vmem:[%s387_s0 + $0x1e] sm:$0x3]  ;;  %53 = vst [vmem:[#allocation0 + $0x88] sm:$0x3] %v237_v14  ;;  %58 = vst [vmem:[#allocation0 + $0x80] sm:$0x3] %v238_v15 }
   0xc   :  { %63 = vst [vmem:[#allocation0 + $0x78] sm:$0x3] %v239_v16  ;;  %v240_v17 = vld [vmem:[%s387_s0 + $0x1c] sm:$0x3]  ;;  %v241_v18 = vld [vmem:[%s387_s0 + $0x1a] sm:$0x3] }
   0xd   :  { %v242_v19 = vld [vmem:[%s387_s0 + $0x18] sm:$0x3]  ;;  %68 = vst [vmem:[#allocation0 + $0x70] sm:$0x3] %v240_v17  ;;  %73 = vst [vmem:[#allocation0 + $0x68] sm:$0x3] %v241_v18 }
   0xe   :  { %78 = vst [vmem:[#allocation0 + $0x60] sm:$0x3] %v242_v19  ;;  %v243_v20 = vld [vmem:[%s387_s0 + $0x16] sm:$0x3]  ;;  %v244_v21 = vld [vmem:[%s387_s0 + $0x14] sm:$0x3] }
   0xf   :  { %v245_v22 = vld [vmem:[%s387_s0 + $0x12] sm:$0x3]  ;;  %83 = vst [vmem:[#allocation0 + $0x58] sm:$0x3] %v243_v20  ;;  %88 = vst [vmem:[#allocation0 + $0x50] sm:$0x3] %v244_v21 }
  0x10   :  { %93 = vst [vmem:[#allocation0 + $0x48] sm:$0x3] %v245_v22  ;;  %v246_v23 = vld [vmem:[%s387_s0 + $0x10] sm:$0x3]  ;;  %v228_v24 = vld [vmem:[%s387_s0 + $0x34] sm:$0x3] }
  0x11   :  { %v229_v25 = vld [vmem:[%s387_s0 + $0x32] sm:$0x3]  ;;  %v167_v26 = vld [vmem:[#allocation0 + $0x1] ss:$8 sm:$0xf0]  }
  0x12   :  { %98 = vst [vmem:[#allocation0 + $0x40] sm:$0x3] %v246_v23  ;;  %8 = vst [vmem:[#allocation0 + $0xd0] sm:$0x3] %v228_v24  ;;  %v230_v27 = vld [vmem:[%s387_s0 + $0x30] sm:$0x3] }
  0x13   :  { %13 = vst [vmem:[#allocation0 + $0xc8] sm:$0x3] %v229_v25  ;;  %v165_v28 = vld [vmem:[#allocation0 + $0x1] ss:$8 sm:$0xf]   ;;  %s261_s0 = smov 64  }
  0x14   :  { %18 = vst [vmem:[#allocation0 + $0xc0] sm:$0x3] %v230_v27  ;;  %v135_v29 = vld [vmem:[#allocation0] ss:$8 sm:$0xf]   ;;  %v169_v30 = vsel %vm137_vm0, %v167_v26, %v165_v28 }
  0x15   :  { %v136_v31 = vld [vmem:[#allocation0] ss:$8 sm:$0xf0]   ;;  %170 = vrot.lane.b32.xlu0 %v169_v30, %s261_s0  ;;  %v188_v32 = vld [vmem:[#allocation0 + $0x81] ss:$8 sm:$0xf0]  }
  0x16   :  { %v138_v33 = vsel %vm137_vm0, %v136_v31, %v135_v29  ;;  %v153_v34 = vld [vmem:[#allocation0 + $0x80] ss:$8 sm:$0xf0]   ;;  %v186_v35 = vld [vmem:[#allocation0 + $0x81] ss:$8 sm:$0xf]  }
  0x17   :  { %140 = vst.msk [vmem:[%s388_s1] sm:$0xff] %vm139_vm1, %v138_v33   ;;  %v151_v36 = vld [vmem:[#allocation0 + $0x80] ss:$8 sm:$0xf]   ;;  %v190_v37 = vsel %vm137_vm0, %v188_v32, %v186_v35 }
  0x18   :  { %v177_v38 = vld [vmem:[#allocation0 + $0x41] ss:$8 sm:$0xf0]   ;;  %v155_v39 = vsel %vm137_vm0, %v153_v34, %v151_v36  ;;  %v144_v40 = vld [vmem:[#allocation0 + $0x40] ss:$8 sm:$0xf0]   ;;  %191 = vrot.lane.b32.xlu1 %v190_v37, %s261_s0 }
  0x19   :  { %255 = vst.msk [vmem:[%s388_s1 + $0x10] sm:$0xff] %vm139_vm1, %v155_v39   ;;  %v175_v41 = vld [vmem:[#allocation0 + $0x41] ss:$8 sm:$0xf]  }
  0x1a   :  { %v142_v42 = vld [vmem:[#allocation0 + $0x40] ss:$8 sm:$0xf]   ;;  %v179_v43 = vsel %vm137_vm0, %v177_v38, %v175_v41 }
  0x1b   :  { %v197_v44 = vld [vmem:[#allocation0 + $0xc1] ss:$8 sm:$0x7]   ;;  %v146_v45 = vsel %vm137_vm0, %v144_v40, %v142_v42  ;;  %v160_v46 = vld [vmem:[#allocation0 + $0xc0] ss:$8 sm:$0x7]   ;;  %180 = vrot.lane.b32.xlu0 %v179_v43, %s261_s0 }
  0x1c   :  { %254 = vst.msk [vmem:[%s388_s1 + $0x8] sm:$0xff] %vm139_vm1, %v146_v45   ;;  %256 = vst.msk [vmem:[%s388_s1 + $0x18] sm:$0x7] %vm139_vm1, %v160_v46   ;;  %198 = vrot.lane.b32.xlu1 %v197_v44, %s261_s0 }
  0x87   :  { %v171_v47 = vpop.permute.xlu0 %170  }
  0x88   :  { %173 = vst.msk [vmem:[%s388_s1] sm:$0xff] %vm172_vm2, %v171_v47  }
  0x8a   :  { %v192_v48 = vpop.permute.xlu1 %191  }
  0x8b   :  { %258 = vst.msk [vmem:[%s388_s1 + $0x10] sm:$0xff] %vm172_vm2, %v192_v48  }
  0x8d   :  { %v181_v49 = vpop.permute.xlu0 %180  }
  0x8e   :  { %257 = vst.msk [vmem:[%s388_s1 + $0x8] sm:$0xff] %vm172_vm2, %v181_v49   ;;  %v199_v50 = vpop.permute.xlu1 %198  }
  0x8f   :  { %259 = vst.msk [vmem:[%s388_s1 + $0x18] sm:$0x7] %vm172_vm2, %v199_v50  }

// kernel: multiscale_attention_forward.5
= control target key start
LH: loop header
LB: loop body
LE: loop exit
PB: predicated region body
PF: predicated region fallthrough
CT: control target
= control target key end

     0   :  { %v511_v0 = vmov 0.0   ;;  %vm512_vm0 = vmmov 0   ;;  %vm90_vm1 = vcmask 261120   ;;  %vm291_vm2 = vcmask 257024   ;;  %s513_s9 = smov 96   ;;  %s736_s1 = inlined_call_operand.vmem [shape: bf16[32,96], index: 1, kind: input, shape index: {}]   ;;  %s737_s0 = inlined_call_operand.vmem [shape: bf16[130,32], index: 0, kind: input, shape index: {}]   ;;  %s738_s2 = inlined_call_operand.vmem [shape: bf16[130,32], index: 2, kind: output, shape index: {0}]   ;;  %s739_s3 = inlined_call_operand.vmem [shape: bf16[130,64], index: 3, kind: output, shape index: {1}]  }
   0x1   :  { %453 = vmatprep.subr.bf16.mxu0 %v511_v0  ;;  %v500_v1 = vld [vmem:[%s736_s1] sm:$0xff]   ;;  %493 = vmatprep.subr.bf16.mxu1 %v511_v0  ;;  %v501_v2 = vld [vmem:[%s736_s1 + $0x8] sm:$0xff]   ;;  %v505_v6 = vld [vmem:[%s737_s0 + $0x30] sm:$0xff]   ;;  %vm308_vm3 = vcmask 253952   ;;  %vm361_vm4 = vcmask 519168   ;;  %vm378_vm5 = vcmask 516096  }
   0x2   :  { %457 = vmatprep.mubr.msk.bf16.mxu0 %vm512_vm0, %v511_v0  ;;  %477 = vmatprep.mubr.msk.bf16.mxu1 %vm512_vm0, %v511_v0  ;;  %v502_v3 = vld [vmem:[%s737_s0] sm:$0xff]   ;;  %v503_v4 = vld [vmem:[%s737_s0 + $0x28] sm:$0xff]   ;;  %v506_v7 = vld [vmem:[%s737_s0 + $0x10] sm:$0xff]  }
   0x3   :  { %454 = vmatpush3.bf16.msra.mxu0 %v500_v1  ;;  %495 = vmatpush3.bf16.msra.mxu1 %v500_v1  ;;  %v504_v5 = vld [vmem:[%s737_s0 + $0x8] sm:$0xff]   ;;  %v507_v8 = vld [vmem:[%s737_s0 + $0x38] sm:$0xff]   ;;  %v510_v10 = vld [vmem:[%s737_s0 + $0x40] ss:$0 sps:$4 sm:$0x11]  }
   0x4   :  { %455 = vmatprep.subr.bf16.mxu0 %v511_v0  ;;  %494 = vmatprep.subr.bf16.mxu1 %v511_v0  ;;  %v508_v9 = vld [vmem:[%s737_s0 + $0x18] sm:$0xff]   ;;  %v509_v11 = vld [vmem:[%s737_s0 + $0x20] sm:$0xff]  }
   0x7   :  { %456 = vmatpush3.bf16.msra.mxu0 %v501_v2  ;;  %496 = vmatpush3.bf16.msra.mxu1 %v501_v2 }
   0xa   :  { %458 = vmatmul.mubr.msk.bf16.vlgmr.msra.gmra.mrb[0].mxu0 %vm90_vm1, %v502_v3  ;;  %478 = vmatmul.mubr.msk.bf16.vlgmr.msra.gmra.mrb[0].mxu1 %vm90_vm1, %v503_v4 }
   0xb   :  { %461 = vmatprep.mubr.msk.bf16.mxu0 %vm512_vm0, %v511_v0  ;;  %481 = vmatprep.mubr.msk.bf16.mxu1 %vm512_vm0, %v511_v0 }
  0x12   :  { %462 = vmatmul.mubr.msk.bf16.gmra.mrb[4].mxu0 %vm90_vm1, %v504_v5  ;;  %482 = vmatmul.mubr.msk.bf16.gmra.mrb[4].mxu1 %vm90_vm1, %v505_v6 }
  0x13   :  { %465 = vmatprep.mubr.msk.bf16.mxu0 %vm512_vm0, %v511_v0  ;;  %485 = vmatprep.mubr.msk.bf16.mxu1 %vm512_vm0, %v511_v0 }
  0x1a   :  { %466 = vmatmul.mubr.msk.bf16.gmra.mrb[8].mxu0 %vm90_vm1, %v506_v7  ;;  %486 = vmatmul.mubr.msk.bf16.gmra.mrb[8].mxu1 %vm90_vm1, %v507_v8 }
  0x1b   :  { %469 = vmatprep.mubr.msk.bf16.mxu0 %vm512_vm0, %v511_v0  ;;  %489 = vmatprep.mubr.msk.bf16.mxu1 %vm512_vm0, %v511_v0 }
  0x22   :  { %470 = vmatmul.mubr.msk.bf16.gmra.mrb[12].mxu0 %vm90_vm1, %v508_v9  ;;  %490 = vmatmul.mubr.msk.bf16.gmra.mrb[12].mxu1 %vm90_vm1, %v510_v10 }
  0x23   :  { %473 = vmatprep.mubr.msk.bf16.mxu0 %vm512_vm0, %v511_v0 }
  0x2a   :  { %474 = vmatmul.mubr.msk.bf16.gmra.mrb[16].mxu0 %vm90_vm1, %v509_v11 }
  0xdd   :  { %v152_v12 = vpop.f32.mrb[0].mxu0  ;;  %v192_v13 = vpop.f32.mrb[0].mxu1 }
  0xde   :  { %v425_v14 = vpack.c.bf16 %v152_v12, %v152_v12  ;;  %v459_v15 = vpop.f32.mrb[1].mxu0  ;;  %v435_v16 = vpack.c.bf16 %v192_v13, %v192_v13  ;;  %v479_v17 = vpop.f32.mrb[1].mxu1 }
  0xdf   :  { %v155_v18 = vpop.f32.mrb[2].mxu0  ;;  %v195_v19 = vpop.f32.mrb[2].mxu1 }
  0xe0   :  { %292 = vst.msk [vmem:[%s738_s2] sm:$0xf] %vm291_vm2, %v425_v14  ;;  %v426_v20 = vpack.c.bf16 %v155_v18, %v155_v18  ;;  %302 = vst.msk [vmem:[%s738_s2 + $0x28] sm:$0xf] %vm291_vm2, %v435_v16  ;;  %310 = vrot.lane.b32.xlu0 %v425_v14, %s513_s9  ;;  %v460_v21 = vpop.f32.mrb[3].mxu0  ;;  %v436_v22 = vpack.c.bf16 %v195_v19, %v195_v19  ;;  %v480_v23 = vpop.f32.mrb[3].mxu1 }
  0xe2   :  { %293 = vst.msk [vmem:[%s738_s2 + $0x4] sm:$0xf] %vm291_vm2, %v426_v20  ;;  %303 = vst.msk [vmem:[%s738_s2 + $0x2c] sm:$0xf] %vm291_vm2, %v436_v22  ;;  %332 = vrot.lane.b32.xlu1 %v436_v22, %s513_s9 }
  0xe4   :  { %330 = vrot.lane.b32.xlu0 %v435_v16, %s513_s9 }
  0xe5   :  { %v160_v24 = vpop.f32.mrb[4].mxu0  ;;  %v200_v25 = vpop.f32.mrb[4].mxu1 }
  0xe6   :  { %v427_v26 = vpack.c.bf16 %v160_v24, %v160_v24  ;;  %v463_v27 = vpop.f32.mrb[5].mxu0  ;;  %v437_v28 = vpack.c.bf16 %v200_v25, %v200_v25  ;;  %v483_v29 = vpop.f32.mrb[5].mxu1 }
  0xe7   :  { %v163_v30 = vpop.f32.mrb[6].mxu0  ;;  %v203_v31 = vpop.f32.mrb[6].mxu1 }
  0xe8   :  { %294 = vst.msk [vmem:[%s738_s2 + $0x8] sm:$0xf] %vm291_vm2, %v427_v26  ;;  %v428_v32 = vpack.c.bf16 %v163_v30, %v163_v30  ;;  %312 = vrot.lane.b32.xlu0 %v426_v20, %s513_s9  ;;  %314 = vrot.lane.b32.xlu1 %v427_v26, %s513_s9  ;;  %v464_v33 = vpop.f32.mrb[7].mxu0  ;;  %304 = vst.msk [vmem:[%s738_s2 + $0x30] sm:$0xf] %vm291_vm2, %v437_v28  ;;  %v438_v34 = vpack.c.bf16 %v203_v31, %v203_v31  ;;  %v484_v35 = vpop.f32.mrb[7].mxu1 }
  0xea   :  { %295 = vst.msk [vmem:[%s738_s2 + $0xc] sm:$0xf] %vm291_vm2, %v428_v32  ;;  %305 = vst.msk [vmem:[%s738_s2 + $0x34] sm:$0xf] %vm291_vm2, %v438_v34 }
  0xec   :  { %334 = vrot.lane.b32.xlu0 %v437_v28, %s513_s9  ;;  %316 = vrot.lane.b32.xlu1 %v428_v32, %s513_s9 }
  0xed   :  { %v168_v36 = vpop.f32.mrb[8].mxu0  ;;  %v208_v37 = vpop.f32.mrb[8].mxu1 }
  0xee   :  { %v429_v38 = vpack.c.bf16 %v168_v36, %v168_v36  ;;  %v467_v39 = vpop.f32.mrb[9].mxu0  ;;  %v439_v40 = vpack.c.bf16 %v208_v37, %v208_v37  ;;  %v487_v41 = vpop.f32.mrb[9].mxu1 }
  0xef   :  { %v171_v42 = vpop.f32.mrb[10].mxu0  ;;  %v211_v43 = vpop.f32.mrb[10].mxu1 }
  0xf0   :  { %296 = vst.msk [vmem:[%s738_s2 + $0x10] sm:$0xf] %vm291_vm2, %v429_v38  ;;  %v430_v44 = vpack.c.bf16 %v171_v42, %v171_v42  ;;  %336 = vrot.lane.b32.xlu1 %v438_v34, %s513_s9  ;;  %318 = vrot.lane.b32.xlu0 %v429_v38, %s513_s9  ;;  %v468_v45 = vpop.f32.mrb[11].mxu0  ;;  %306 = vst.msk [vmem:[%s738_s2 + $0x38] sm:$0xf] %vm291_vm2, %v439_v40  ;;  %v440_v46 = vpack.c.bf16 %v211_v43, %v211_v43  ;;  %v488_v47 = vpop.f32.mrb[11].mxu1 }
  0xf2   :  { %297 = vst.msk [vmem:[%s738_s2 + $0x14] sm:$0xf] %vm291_vm2, %v430_v44  ;;  %307 = vst.msk [vmem:[%s738_s2 + $0x3c] sm:$0xf] %vm291_vm2, %v440_v46 }
  0xf4   :  { %338 = vrot.lane.b32.xlu0 %v439_v40, %s513_s9  ;;  %320 = vrot.lane.b32.xlu1 %v430_v44, %s513_s9 }
  0xf5   :  { %v176_v48 = vpop.f32.mrb[12].mxu0  ;;  %v216_v49 = vpop.f32.mrb[12].mxu1 }
  0xf6   :  { %v431_v50 = vpack.c.bf16 %v176_v48, %v176_v48  ;;  %v471_v51 = vpop.f32.mrb[13].mxu0  ;;  %v441_v52 = vpack.c.bf16 %v216_v49, %v216_v49  ;;  %v491_v53 = vpop.f32.mrb[13].mxu1 }
  0xf7   :  { %v179_v54 = vpop.f32.mrb[14].mxu0  ;;  %v219_v55 = vpop.f32.mrb[14].mxu1 }
  0xf8   :  { %298 = vst.msk [vmem:[%s738_s2 + $0x18] sm:$0xf] %vm291_vm2, %v431_v50  ;;  %v432_v56 = vpack.c.bf16 %v179_v54, %v179_v54  ;;  %322 = vrot.lane.b32.xlu0 %v431_v50, %s513_s9  ;;  %v472_v57 = vpop.f32.mrb[15].mxu0  ;;  %v492_v58 = vpop.f32.mrb[15].mxu1 }
  0xf9   :  { %309 = vst.msk [vmem:[%s738_s2 + $0x40] sm:$0x1] %vm308_vm3, %v441_v52 }
  0xfa   :  { %299 = vst.msk [vmem:[%s738_s2 + $0x1c] sm:$0xf] %vm291_vm2, %v432_v56  ;;  %324 = vrot.lane.b32.xlu1 %v432_v56, %s513_s9 }
  0xfd   :  { %v184_v59 = vpop.f32.mrb[16].mxu0 }
  0xfe   :  { %v433_v60 = vpack.c.bf16 %v184_v59, %v184_v59  ;;  %v475_v61 = vpop.f32.mrb[17].mxu0 }
  0xff   :  { %v187_v62 = vpop.f32.mrb[18].mxu0 }
 0x100   :  { %300 = vst.msk [vmem:[%s738_s2 + $0x20] sm:$0xf] %vm291_vm2, %v433_v60  ;;  %v434_v63 = vpack.c.bf16 %v187_v62, %v187_v62  ;;  %326 = vrot.lane.b32.xlu0 %v433_v60, %s513_s9  ;;  %v476_v0 = vpop.f32.mrb[19].mxu0 }
 0x102   :  { %301 = vst.msk [vmem:[%s738_s2 + $0x24] sm:$0xf] %vm291_vm2, %v434_v63  ;;  %328 = vrot.lane.b32.xlu1 %v434_v63, %s513_s9 }
 0x104   :  { %342 = vrot.lane.b32.xlu0 %v441_v52, %s513_s9 }
 0x106   :  { %340 = vrot.lane.b32.xlu1 %v440_v46, %s513_s9 }
 0x152   :  { %v311_v1 = vpop.permute.xlu0 %310 }
 0x153   :  { %362 = vst.msk [vmem:[%s739_s3] sm:$0xf] %vm361_vm4, %v311_v1 }
 0x154   :  { %v333_v2 = vpop.permute.xlu1 %332 }
 0x155   :  { %373 = vst.msk [vmem:[%s739_s3 + $0x2c] sm:$0xf] %vm361_vm4, %v333_v2 }
 0x156   :  { %v331_v3 = vpop.permute.xlu0 %330 }
 0x157   :  { %372 = vst.msk [vmem:[%s739_s3 + $0x28] sm:$0xf] %vm361_vm4, %v331_v3 }
 0x15a   :  { %v313_v4 = vpop.permute.xlu0 %312  ;;  %v315_v5 = vpop.permute.xlu1 %314 }
 0x15b   :  { %363 = vst.msk [vmem:[%s739_s3 + $0x4] sm:$0xf] %vm361_vm4, %v313_v4  ;;  %364 = vst.msk [vmem:[%s739_s3 + $0x8] sm:$0xf] %vm361_vm4, %v315_v5 }
 0x15e   :  { %v335_v6 = vpop.permute.xlu0 %334  ;;  %v317_v7 = vpop.permute.xlu1 %316 }
 0x15f   :  { %374 = vst.msk [vmem:[%s739_s3 + $0x30] sm:$0xf] %vm361_vm4, %v335_v6  ;;  %365 = vst.msk [vmem:[%s739_s3 + $0xc] sm:$0xf] %vm361_vm4, %v317_v7 }
 0x162   :  { %v337_v8 = vpop.permute.xlu1 %336  ;;  %v319_v9 = vpop.permute.xlu0 %318 }
 0x163   :  { %375 = vst.msk [vmem:[%s739_s3 + $0x34] sm:$0xf] %vm361_vm4, %v337_v8  ;;  %366 = vst.msk [vmem:[%s739_s3 + $0x10] sm:$0xf] %vm361_vm4, %v319_v9 }
 0x166   :  { %v339_v10 = vpop.permute.xlu0 %338  ;;  %v321_v11 = vpop.permute.xlu1 %320 }
 0x167   :  { %376 = vst.msk [vmem:[%s739_s3 + $0x38] sm:$0xf] %vm361_vm4, %v339_v10  ;;  %367 = vst.msk [vmem:[%s739_s3 + $0x14] sm:$0xf] %vm361_vm4, %v321_v11 }
 0x16a   :  { %v323_v12 = vpop.permute.xlu0 %322 }
 0x16b   :  { %368 = vst.msk [vmem:[%s739_s3 + $0x18] sm:$0xf] %vm361_vm4, %v323_v12 }
 0x16c   :  { %v325_v13 = vpop.permute.xlu1 %324 }
 0x16d   :  { %369 = vst.msk [vmem:[%s739_s3 + $0x1c] sm:$0xf] %vm361_vm4, %v325_v13 }
 0x172   :  { %v327_v14 = vpop.permute.xlu0 %326 }
 0x173   :  { %370 = vst.msk [vmem:[%s739_s3 + $0x20] sm:$0xf] %vm361_vm4, %v327_v14 }
 0x174   :  { %v329_v15 = vpop.permute.xlu1 %328 }
 0x175   :  { %371 = vst.msk [vmem:[%s739_s3 + $0x24] sm:$0xf] %vm361_vm4, %v329_v15 }
 0x176   :  { %v343_v16 = vpop.permute.xlu0 %342 }
 0x177   :  { %379 = vst.msk [vmem:[%s739_s3 + $0x40] sm:$0x1] %vm378_vm5, %v343_v16 }
 0x178   :  { %v341_v17 = vpop.permute.xlu1 %340 }
 0x179   :  { %377 = vst.msk [vmem:[%s739_s3 + $0x3c] sm:$0xf] %vm361_vm4, %v341_v17 }

// kernel: multiscale_attention_forward.7
= control target key start
LH: loop header
LB: loop body
LE: loop exit
PB: predicated region body
PF: predicated region fallthrough
CT: control target
= control target key end

     0   :  { %s645_s9 = smov 0   ;;  %s761_s0 = inlined_call_operand.vmem [shape: bf16[6,3,2,3,256], index: 0, kind: input, shape index: {}]   ;;  %s762_s1 = inlined_call_operand.vmem [shape: f32[27,128], index: 1, kind: input, shape index: {}]   ;;  %s763_s2 = inlined_call_operand.vmem [shape: bf16[2,2,2,128], index: 2, kind: output, shape index: {}]  }
   0x1 LB: > { %s651_s10 = sadd.s32 4294967295, %s628_s9   ;;  %p574_p0 = scmp.ge.s32.totalorder %s628_s9, 1  ;;  %s628_s9 = sphi %s645_s9, %s12_s9  }
   0x2   : > { %p102_p1 = scmp.lt.s32.totalorder %s628_s9, 3 }
   0x4   : > { %p103_p2 = pnand %p574_p0, %p102_p1 }
   0x5   : > { %s613_s11 = smul.u32 (!%p103_p2), 48, %s651_s10  ;;  %v137_v0 = vlaneseq (!%p103_p2)  ;;  %v122_v2 = vld [vmem:[%s762_s1] sm:$0xff] (!%p103_p2)  ;;  %v688_v35 = vld [vmem:[%s762_s1 + $0x8] sm:$0xff] (!%p103_p2)  ;;  %p118_p3 = scmp.lt.s32.totalorder (!%p103_p2), %s651_s10, 1 }
   0x6   : > { %106 = sbr.rel (%p103_p2) target bundleno = 72 (0x48), region = 28 }
   0x7   : > { %v138_v1 = vshrl.u32 (!%p103_p2), %v137_v0, 7  ;;  %s662_s16 = scalar_lea.vmem (!%p103_p2), %s761_s0, %s613_s11 }
   0x8   : > { %v130_v3 = vld [vmem:[%s662_s16] sm:$0xf] (!%p103_p2)  ;;  %v131_v4 = vld [vmem:[%s662_s16 + $0x4] sm:$0xf] (!%p103_p2)  ;;  %v132_v6 = vld [vmem:[%s662_s16 + $0x8] sm:$0xf] (!%p103_p2) }
   0x9   : > { %v666_v5 = vsub.s32 (!%p103_p2), 0, %v138_v1  ;;  %v133_v7 = vld [vmem:[%s662_s16 + $0xc] sm:$0xf] (!%p103_p2)  ;;  %v135_v8 = vunpack.c.l.bf16 (!%p103_p2), %v130_v3  ;;  %v177_v9 = vunpack.c.l.bf16 (!%p103_p2), %v131_v4  ;;  %v136_v10 = vunpack.c.l.bf16 (!%p103_p2), %v132_v6  ;;  %v134_v14 = vld [vmem:[%s662_s16 + $0x10] sm:$0xf] (!%p103_p2) }
   0xa   : > { %v147_v12 = vrot.slane (!%p103_p2), %v130_v3, 2  ;;  %v148_v13 = vrot.slane (!%p103_p2), %v132_v6, 2  ;;  %v672_v15 = vsub.s32 (!%p103_p2), 1, %v138_v1  ;;  %v674_v16 = vsub.s32 (!%p103_p2), 2, %v138_v1  ;;  %v587_v0 = vld [vmem:[%s662_s16 + $0x18] sm:$0xf] (!%p103_p2) }
   0xb   : > { %v140_v11 = vrot.slane (!%p103_p2), %v122_v2, %v666_v5  ;;  %v178_v17 = vunpack.c.l.bf16 (!%p103_p2), %v133_v7  ;;  %v676_v18 = vsub.s32 (!%p103_p2), 3, %v138_v1  ;;  %v189_v26 = vrot.slane (!%p103_p2), %v131_v4, 2 }
   0xc   : > { %v151_v21 = vunpack.c.l.bf16 (!%p103_p2), %v147_v12  ;;  %v152_v22 = vunpack.c.l.bf16 (!%p103_p2), %v148_v13  ;;  %v156_v23 = vrot.slane (!%p103_p2), %v122_v2, %v672_v15  ;;  %v164_v24 = vrot.slane (!%p103_p2), %v122_v2, %v674_v16 }
   0xd   : > { %v141_v19 = vmul.f32 %v140_v11, %v135_v8  ;;  %v142_v20 = vmul.f32 %v140_v11, %v136_v10  ;;  %v182_v25 = vrot.slane %v122_v2, %v676_v18  ;;  %v190_v27 = vrot.slane %v133_v7, 2  ;;  %s765_s10 = smov (!%p118_p3, %s651_s10), 1 }
   0xe   : > { %v681_v28 = vsub.s32 4, %v138_v1  ;;  %v683_v29 = vsub.s32 5, %v138_v1  ;;  %v219_v30 = vunpack.c.l.bf16 %v134_v14  ;;  %v157_v31 = vmul.f32 %v156_v23, %v151_v21  ;;  %s575_s23 = sshll.u32 %s765_s10, 1 }
   0xf   : > { %v158_v32 = vmul.f32 %v156_v23, %v152_v22  ;;  %v165_v33 = vmul.f32 %v164_v24, %v135_v8  ;;  %v166_v34 = vmul.f32 %v164_v24, %v136_v10  ;;  %v183_v36 = vmul.f32 %v182_v25, %v177_v9  ;;  %s121_s26 = scalar_lea.vmem %s763_s2, %s575_s23 }
  0x10   : > { %v184_v37 = vmul.f32 %v182_v25, %v178_v17  ;;  %v193_v38 = vunpack.c.l.bf16 %v189_v26  ;;  %v194_v39 = vunpack.c.l.bf16 %v190_v27  ;;  %v159_v40 = vadd.f32 %v157_v31, %v141_v19  ;;  %v588_v25 = vld [vmem:[%s662_s16 + $0x1c] sm:$0xf]  ;;  %v590_v26 = vld [vmem:[%s662_s16 + $0x24] sm:$0xf] }
  0x11   : > { %v160_v41 = vadd.f32 %v158_v32, %v142_v20  ;;  %v579_v42 = vrot.slane %v165_v33, 9  ;;  %v580_v43 = vrot.slane %v166_v34, 9  ;;  %v198_v44 = vrot.slane %v122_v2, %v681_v28 }
  0x12   : > { %v206_v45 = vrot.slane %v122_v2, %v683_v29  ;;  %v692_v46 = vsub.s32 6, %v138_v1  ;;  %v229_v47 = vrot.slane %v134_v14, 2  ;;  %v694_v50 = vsub.s32 7, %v138_v1  ;;  %v589_v1 = vld [vmem:[%s662_s16 + $0x20] sm:$0xf] }
  0x13   : > { %v175_v48 = vadd.f32 %v579_v42, %v159_v40  ;;  %v176_v49 = vadd.f32 %v580_v43, %v160_v41  ;;  %v243_v51 = vrot.slane %v688_v35, %v666_v5  ;;  %v199_v52 = vmul.f32 %v198_v44, %v193_v38 }
  0x14   : > { %v200_v53 = vmul.f32 %v198_v44, %v194_v39  ;;  %v207_v54 = vmul.f32 %v206_v45, %v177_v9  ;;  %v208_v55 = vmul.f32 %v206_v45, %v178_v17  ;;  %v223_v58 = vrot.slane %v122_v2, %v692_v46 }
  0x15   : > { %v185_v56 = vadd.f32 %v183_v36, %v175_v48  ;;  %v186_v57 = vadd.f32 %v184_v37, %v176_v49  ;;  %v231_v59 = vunpack.c.l.bf16 %v229_v47  ;;  %v235_v62 = vrot.slane %v122_v2, %v694_v50 }
  0x16   : > { %v581_v60 = vrot.slane %v207_v54, 9  ;;  %v582_v61 = vrot.slane %v208_v55, 9  ;;  %v244_v63 = vmul.f32 %v243_v51, %v136_v10  ;;  %v224_v6 = vmul.f32 %v223_v58, %v136_v10 }
  0x17   : > { %v201_v3 = vadd.f32 %v199_v52, %v185_v56  ;;  %v202_v4 = vadd.f32 %v200_v53, %v186_v57  ;;  %v225_v7 = vmul.f32 %v223_v58, %v219_v30  ;;  %v236_v8 = vmul.f32 %v235_v62, %v152_v22  ;;  %v591_v52 = vld [vmem:[%s662_s16 + $0x28] sm:$0xf] }
  0x18   : > { %v237_v9 = vmul.f32 %v235_v62, %v231_v59  ;;  %v245_v11 = vmul.f32 %v243_v51, %v219_v30  ;;  %v583_v12 = vrot.slane %v244_v63, 9  ;;  %v265_v17 = vunpack.c.l.bf16 %v587_v0 }
  0x19   : > { %v217_v13 = vadd.f32 %v581_v60, %v201_v3  ;;  %v218_v14 = vadd.f32 %v582_v61, %v202_v4  ;;  %v702_v19 = vunpack.c.l.bf16 %v589_v1  ;;  %v270_v2 = vrot.slane %v688_v35, %v672_v15 }
  0x1a   : > { %v584_v20 = vrot.slane %v245_v11, 9  ;;  %v277_v21 = vrot.slane %v587_v0, 2  ;;  %v278_v23 = vrot.slane %v589_v1, 2  ;;  %v286_v22 = vrot.slane %v688_v35, %v674_v16  ;;  %v124_v1 = vld [vmem:[%s762_s1 + $0x10] sm:$0xff] }
  0x1b   : > { %v226_v24 = vadd.f32 %v224_v6, %v217_v13  ;;  %v227_v10 = vadd.f32 %v225_v7, %v218_v14  ;;  %v294_v27 = vrot.slane %v688_v35, %v676_v18  ;;  %v271_v30 = vmul.f32 %v270_v2, %v265_v17 }
  0x1c   : > { %v272_v31 = vmul.f32 %v270_v2, %v702_v19  ;;  %v281_v32 = vunpack.c.l.bf16 %v277_v21  ;;  %v282_v33 = vunpack.c.l.bf16 %v278_v23  ;;  %v307_v40 = vunpack.c.l.bf16 %v588_v25 }
  0x1d   : > { %v238_v34 = vadd.f32 %v236_v8, %v226_v24  ;;  %v239_v36 = vadd.f32 %v237_v9, %v227_v10  ;;  %v295_v37 = vmul.f32 %v294_v27, %v265_v17  ;;  %v296_v38 = vmul.f32 %v294_v27, %v702_v19  ;;  %v602_v24 = vld [vmem:[%s662_s16 + $0x38] sm:$0xf] }
  0x1e   : > { %v287_v39 = vmul.f32 %v286_v22, %v281_v32  ;;  %v308_v41 = vunpack.c.l.bf16 %v590_v26  ;;  %v288_v44 = vmul.f32 %v286_v22, %v282_v33  ;;  %v312_v48 = vrot.slane %v688_v35, %v681_v28 }
  0x1f   : > { %v254_v42 = vadd.f32 %v583_v12, %v238_v34  ;;  %v255_v43 = vadd.f32 %v584_v20, %v239_v36  ;;  %v592_v45 = vrot.slane %v295_v37, 9  ;;  %v593_v47 = vrot.slane %v296_v38, 9  ;;  %v600_v12 = vld [vmem:[%s662_s16 + $0x30] sm:$0xf] }
  0x20   : > { %v319_v49 = vrot.slane %v588_v25, 2  ;;  %v320_v51 = vrot.slane %v590_v26, 2  ;;  %v328_v55 = vrot.slane %v688_v35, %v683_v29  ;;  %v336_v56 = vrot.slane %v688_v35, %v692_v46 }
  0x21   : > { %v273_v53 = vadd.f32 %v271_v30, %v254_v42  ;;  %v274_v54 = vadd.f32 %v272_v31, %v255_v43  ;;  %v313_v57 = vmul.f32 %v312_v48, %v307_v40  ;;  %v314_v58 = vmul.f32 %v312_v48, %v308_v41  ;;  %v601_v43 = vld [vmem:[%s662_s16 + $0x34] sm:$0xf]  ;;  %v603_v48 = vld [vmem:[%s662_s16 + $0x3c] sm:$0xf] }
  0x22   : > { %v323_v59 = vunpack.c.l.bf16 %v319_v49  ;;  %v324_v60 = vunpack.c.l.bf16 %v320_v51  ;;  %v337_v63 = vmul.f32 %v336_v56, %v307_v40  ;;  %v338_v0 = vmul.f32 %v336_v56, %v308_v41 }
  0x23   : > { %v289_v61 = vadd.f32 %v287_v39, %v273_v53  ;;  %v290_v62 = vadd.f32 %v288_v44, %v274_v54  ;;  %v349_v3 = vunpack.c.l.bf16 %v591_v52  ;;  %v353_v4 = vrot.slane %v688_v35, %v694_v50 }
  0x24   : > { %v359_v6 = vrot.slane %v591_v52, 2  ;;  %v329_v9 = vmul.f32 %v328_v55, %v323_v59  ;;  %v330_v11 = vmul.f32 %v328_v55, %v324_v60  ;;  %v594_v13 = vrot.slane %v337_v63, 9 }
  0x25   : > { %v305_v7 = vadd.f32 %v592_v45, %v289_v61  ;;  %v306_v8 = vadd.f32 %v593_v47, %v290_v62  ;;  %v595_v14 = vrot.slane %v338_v0, 9  ;;  %v365_v21 = vrot.slane %v124_v1, %v666_v5 }
  0x26   : > { %v361_v17 = vunpack.c.l.bf16 %v359_v6  ;;  %v373_v23 = vrot.slane %v124_v1, %v672_v15  ;;  %v354_v10 = vmul.f32 %v353_v4, %v702_v19  ;;  %v355_v25 = vmul.f32 %v353_v4, %v349_v3 }
  0x27   : > { %v315_v20 = vadd.f32 %v313_v57, %v305_v7  ;;  %v316_v2 = vadd.f32 %v314_v58, %v306_v8  ;;  %v395_v35 = vunpack.c.l.bf16 %v600_v12  ;;  %v732_v31 = vunpack.c.l.bf16 %v602_v24  ;;  %v125_v8 = vld [vmem:[%s762_s1 + $0x18] sm:$0x7] }
  0x28   : > { %v374_v27 = vmul.f32 %v373_v23, %v702_v19  ;;  %v375_v30 = vmul.f32 %v373_v23, %v349_v3  ;;  %v400_v32 = vrot.slane %v124_v1, %v674_v16  ;;  %v407_v34 = vrot.slane %v600_v12, 2 }
  0x29   : > { %v331_v26 = vadd.f32 %v329_v9, %v315_v20  ;;  %v332_v22 = vadd.f32 %v330_v11, %v316_v2  ;;  %v408_v36 = vrot.slane %v602_v24, 2  ;;  %v366_v39 = vmul.f32 %v365_v21, %v282_v33 }
  0x2a   : > { %v367_v40 = vmul.f32 %v365_v21, %v361_v17  ;;  %v596_v41 = vrot.slane %v374_v27, 9  ;;  %v597_v42 = vrot.slane %v375_v30, 9  ;;  %v411_v44 = vunpack.c.l.bf16 %v407_v34 }
  0x2b   : > { %v347_v37 = vadd.f32 %v594_v13, %v331_v26  ;;  %v348_v38 = vadd.f32 %v595_v14, %v332_v22  ;;  %v424_v45 = vrot.slane %v124_v1, %v681_v28  ;;  %v412_v49 = vunpack.c.l.bf16 %v408_v36 }
  0x2c   : > { %v416_v51 = vrot.slane %v124_v1, %v676_v18  ;;  %v401_v52 = vmul.f32 %v400_v32, %v395_v35  ;;  %v402_v53 = vmul.f32 %v400_v32, %v732_v31  ;;  %v449_v57 = vrot.slane %v601_v43, 2  ;;  %v604_v18 = vld [vmem:[%s662_s16 + $0x40] sm:$0xf] }
  0x2d   : > { %v356_v47 = vadd.f32 %v354_v10, %v347_v37  ;;  %v357_v19 = vadd.f32 %v355_v25, %v348_v38  ;;  %v425_v54 = vmul.f32 %v424_v45, %v395_v35  ;;  %v426_v56 = vmul.f32 %v424_v45, %v732_v31 }
  0x2e   : > { %v437_v58 = vunpack.c.l.bf16 %v601_v43  ;;  %v438_v59 = vunpack.c.l.bf16 %v603_v48  ;;  %v442_v28 = vrot.slane %v124_v1, %v683_v29  ;;  %v450_v60 = vrot.slane %v603_v48, 2 }
  0x2f   : > { %v368_v55 = vadd.f32 %v366_v39, %v356_v47  ;;  %v369_v33 = vadd.f32 %v367_v40, %v357_v19  ;;  %v417_v63 = vmul.f32 %v416_v51, %v411_v44  ;;  %v418_v0 = vmul.f32 %v416_v51, %v412_v49 }
  0x30   : > { %v605_v3 = vrot.slane %v425_v54, 9  ;;  %v453_v4 = vunpack.c.l.bf16 %v449_v57  ;;  %v458_v6 = vrot.slane %v124_v1, %v692_v46  ;;  %v466_v7 = vrot.slane %v124_v1, %v694_v50 }
  0x31   : > { %v384_v61 = vadd.f32 %v596_v41, %v368_v55  ;;  %v385_v62 = vadd.f32 %v597_v42, %v369_v33  ;;  %v606_v12 = vrot.slane %v426_v56, 9  ;;  %v454_v29 = vunpack.c.l.bf16 %v450_v60 }
  0x32   : > { %v443_v13 = vmul.f32 %v442_v28, %v437_v58  ;;  %v467_v14 = vmul.f32 %v466_v7, %v437_v58  ;;  %v468_v17 = vmul.f32 %v466_v7, %v438_v59  ;;  %v444_v21 = vmul.f32 %v442_v28, %v438_v59 }
  0x33   : > { %v403_v9 = vadd.f32 %v401_v52, %v384_v61  ;;  %v404_v11 = vadd.f32 %v402_v53, %v385_v62  ;;  %v489_v23 = vrot.slane %v604_v18, 2  ;;  %v459_v24 = vmul.f32 %v458_v6, %v453_v4 }
  0x34   : > { %v479_v46 = vunpack.c.l.bf16 %v604_v18  ;;  %v483_v50 = vrot.slane %v125_v8, %v666_v5  ;;  %v460_v25 = vmul.f32 %v458_v6, %v454_v29  ;;  %v503_v35 = vrot.slane %v125_v8, %v674_v16 }
  0x35   : > { %v419_v20 = vadd.f32 %v417_v63, %v403_v9  ;;  %v420_v2 = vadd.f32 %v418_v0, %v404_v11  ;;  %v607_v26 = vrot.slane %v467_v14, 9  ;;  %v608_v22 = vrot.slane %v468_v17, 9 }
  0x36   : > { %v491_v32 = vunpack.c.l.bf16 %v489_v23  ;;  %v495_v34 = vrot.slane %v125_v8, %v672_v15  ;;  %v484_v36 = vmul.f32 %v483_v50, %v732_v31  ;;  %v485_v37 = vmul.f32 %v483_v50, %v479_v46 }
  0x37   : > { %v435_v1 = vadd.f32 %v605_v3, %v419_v20  ;;  %v436_v10 = vadd.f32 %v606_v12, %v420_v2  ;;  %v504_v5 = vmul.f32 %v503_v35, %v732_v31  ;;  %v505_v40 = vmul.f32 %v503_v35, %v479_v46 }
  0x38   : > { %v496_v16 = vmul.f32 %v495_v34, %v412_v49  ;;  %v497_v43 = vmul.f32 %v495_v34, %v491_v32 }
  0x39   : > { %v445_v27 = vadd.f32 %v443_v13, %v435_v1  ;;  %v446_v30 = vadd.f32 %v444_v21, %v436_v10  ;;  %v609_v47 = vrot.slane %v504_v5, 9  ;;  %v610_v19 = vrot.slane %v505_v40, 9 }
  0x3b   : > { %v461_v38 = vadd.f32 %v459_v24, %v445_v27  ;;  %v462_v39 = vadd.f32 %v460_v25, %v446_v30 }
  0x3d   : > { %v477_v41 = vadd.f32 %v607_v26, %v461_v38  ;;  %v478_v42 = vadd.f32 %v608_v22, %v462_v39 }
  0x3f   : > { %v486_v44 = vadd.f32 %v484_v36, %v477_v41  ;;  %v487_v45 = vadd.f32 %v485_v37, %v478_v42 }
  0x41   : > { %v498_v48 = vadd.f32 %v496_v16, %v486_v44  ;;  %v499_v15 = vadd.f32 %v497_v43, %v487_v45 }
  0x43   : > { %v514_v51 = vadd.f32 %v609_v47, %v498_v48  ;;  %v515_v52 = vadd.f32 %v610_v19, %v499_v15 }
  0x45   : > { %v516_v31 = vpack.c.bf16 %v514_v51, %v514_v51  ;;  %v517_v53 = vpack.c.bf16 %v515_v52, %v515_v52 }
  0x47   : > { %518 = vst [vmem:[%s121_s26] sm:$0x1] %v516_v31  ;;  %519 = vst [vmem:[%s121_s26 + $0x1] sm:$0x1] %v517_v53 }
  0x48 PF: > { %s12_s9 = sadd.s32 1, %s628_s9  }
  0x49   : > { %p9_p4 = scmp.ge.s32.totalorder %s12_s9, 4  }
  0x4b   :  { %11 = sbr.rel (!%p9_p4) target bundleno = 1 (0x1), region = 58 }

// kernel: multiscale_attention_forward.6
= control target key start
LH: loop header
LB: loop body
LE: loop exit
PB: predicated region body
PF: predicated region fallthrough
CT: control target
= control target key end

     0   :  { %s829_s9 = smov 0   ;;  %s1074_s0 = inlined_call_operand.vmem [shape: bf16[6,6,1,6,64], index: 0, kind: input, shape index: {}]   ;;  %s1075_s1 = inlined_call_operand.vmem [shape: f32[27,64], index: 1, kind: input, shape index: {}]   ;;  %s1076_s2 = inlined_call_operand.vmem [shape: bf16[4,4,4,64], index: 2, kind: output, shape index: {}]  }
   0x1 LB: > { %s835_s10 = sadd.s32 4294967295, %s812_s9   ;;  %p778_p0 = scmp.ge.s32.totalorder %s812_s9, 1  ;;  %s812_s9 = sphi %s829_s9, %s12_s9  }
   0x2   : > { %p102_p1 = scmp.lt.s32.totalorder %s812_s9, 5 }
   0x4   : > { %p103_p2 = pnand %p778_p0, %p102_p1 }
   0x5   : > { %s797_s11 = smul.u32 (!%p103_p2), 24, %s835_s10  ;;  %v141_v0 = vlaneseq (!%p103_p2)  ;;  %v848_v2 = vld [vmem:[%s1075_s1] sm:$0xff] (!%p103_p2)  ;;  %v908_v60 = vld [vmem:[%s1075_s1 + $0x8] sm:$0xff] (!%p103_p2)  ;;  %p119_p3 = scmp.lt.s32.totalorder (!%p103_p2), %s835_s10, 3  ;;  %vm719_vm0 = vcmask (!%p103_p2), 517120  }
   0x6   : > { %106 = sbr.rel (%p103_p2) target bundleno = 100 (0x64), region = 28 }
   0x7   : > { %v142_v1 = vshrl.u32 (!%p103_p2), %v141_v0, 7  ;;  %s843_s14 = scalar_lea.vmem (!%p103_p2), %s1074_s0, %s797_s11 }
   0x8   : > { %v131_v3 = vld [vmem:[%s843_s14] sm:$0x7] (!%p103_p2)  ;;  %v132_v4 = vld [vmem:[%s843_s14 + $0x4] sm:$0x7] (!%p103_p2)  ;;  %v133_v6 = vld [vmem:[%s843_s14 + $0x8] sm:$0x7] (!%p103_p2) }
   0x9   : > { %v852_v5 = vsub.s32 (!%p103_p2), 0, %v142_v1  ;;  %v134_v7 = vld [vmem:[%s843_s14 + $0xc] sm:$0x7] (!%p103_p2)  ;;  %v135_v8 = vld [vmem:[%s843_s14 + $0x10] sm:$0x7] (!%p103_p2)  ;;  %v137_v9 = vunpack.c.l.bf16 (!%p103_p2), %v131_v3  ;;  %v857_v10 = vunpack.c.l.bf16 (!%p103_p2), %v132_v4  ;;  %v859_v11 = vunpack.c.l.bf16 (!%p103_p2), %v133_v6 }
   0xa   : > { %v861_v12 = vunpack.c.l.bf16 (!%p103_p2), %v134_v7  ;;  %v865_v14 = vsub.s32 (!%p103_p2), 1, %v142_v1  ;;  %v136_v15 = vld [vmem:[%s843_s14 + $0x14] sm:$0x7] (!%p103_p2)  ;;  %v868_v16 = vsub.s32 (!%p103_p2), 2, %v142_v1  ;;  %v870_v17 = vunpack.c.l.bf16 (!%p103_p2), %v135_v8 }
   0xb   : > { %v144_v13 = vrot.slane (!%p103_p2), %v848_v2, %v852_v5  ;;  %v872_v18 = vsub.s32 (!%p103_p2), 3, %v142_v1  ;;  %v874_v19 = vsub.s32 (!%p103_p2), 4, %v142_v1  ;;  %v887_v28 = vsub.s32 (!%p103_p2), 5, %v142_v1 }
   0xc   : > { %v156_v24 = vrot.slane (!%p103_p2), %v848_v2, %v865_v14  ;;  %v180_v25 = vrot.slane (!%p103_p2), %v848_v2, %v868_v16  ;;  %v889_v29 = vunpack.c.l.bf16 (!%p103_p2), %v136_v15  ;;  %v891_v30 = vsub.s32 (!%p103_p2), 6, %v142_v1 }
   0xd   : > { %v145_v20 = vmul.f32 %v144_v13, %v137_v9  ;;  %v146_v21 = vmul.f32 %v144_v13, %v857_v10  ;;  %v147_v22 = vmul.f32 %v144_v13, %v859_v11  ;;  %v148_v23 = vmul.f32 %v144_v13, %v861_v12  ;;  %s1078_s10 = smov (!%p119_p3, %s835_s10), 3 }
   0xe   : > { %v205_v26 = vrot.slane %v848_v2, %v872_v18  ;;  %v217_v27 = vrot.slane %v848_v2, %v874_v19  ;;  %v893_v31 = vsub.s32 7, %v142_v1  ;;  %v157_v32 = vmul.f32 %v156_v24, %v137_v9  ;;  %s796_s23 = sshll.u32 %s1078_s10, 3 }
   0xf   : > { %v158_v33 = vmul.f32 %v156_v24, %v857_v10  ;;  %v159_v34 = vmul.f32 %v156_v24, %v859_v11  ;;  %v160_v35 = vmul.f32 %v156_v24, %v861_v12  ;;  %v181_v36 = vmul.f32 %v180_v25, %v137_v9  ;;  %s123_s26 = scalar_lea.vmem %s1076_s2, %s796_s23 }
  0x10   : > { %v182_v37 = vmul.f32 %v180_v25, %v857_v10  ;;  %v183_v38 = vmul.f32 %v180_v25, %v859_v11  ;;  %v184_v39 = vmul.f32 %v180_v25, %v861_v12  ;;  %v165_v40 = vrot.slane %v157_v32, 1 }
  0x11   : > { %v166_v41 = vrot.slane %v158_v33, 1  ;;  %v167_v42 = vrot.slane %v159_v34, 1  ;;  %v168_v43 = vrot.slane %v160_v35, 1  ;;  %v189_v44 = vrot.slane %v181_v36, 2 }
  0x12   : > { %v190_v45 = vrot.slane %v182_v37, 2  ;;  %v191_v46 = vrot.slane %v183_v38, 2  ;;  %v192_v47 = vrot.slane %v184_v39, 2  ;;  %v173_v48 = vadd.f32 %v165_v40, %v145_v20 }
  0x13   : > { %v174_v49 = vadd.f32 %v166_v41, %v146_v21  ;;  %v175_v50 = vadd.f32 %v167_v42, %v147_v22  ;;  %v176_v51 = vadd.f32 %v168_v43, %v148_v23  ;;  %v206_v52 = vmul.f32 %v205_v26, %v857_v10 }
  0x14   : > { %v207_v53 = vmul.f32 %v205_v26, %v859_v11  ;;  %v208_v54 = vmul.f32 %v205_v26, %v861_v12  ;;  %v209_v55 = vmul.f32 %v205_v26, %v870_v17  ;;  %v197_v56 = vadd.f32 %v189_v44, %v173_v48 }
  0x15   : > { %v198_v57 = vadd.f32 %v190_v45, %v174_v49  ;;  %v199_v58 = vadd.f32 %v191_v46, %v175_v50  ;;  %v200_v59 = vadd.f32 %v192_v47, %v176_v51  ;;  %v218_v61 = vmul.f32 %v217_v27, %v857_v10 }
  0x16   : > { %v219_v62 = vmul.f32 %v217_v27, %v859_v11  ;;  %v220_v63 = vmul.f32 %v217_v27, %v861_v12  ;;  %v221_v0 = vmul.f32 %v217_v27, %v870_v17  ;;  %v210_v1 = vadd.f32 %v206_v52, %v197_v56 }
  0x17   : > { %v211_v3 = vadd.f32 %v207_v53, %v198_v57  ;;  %v212_v4 = vadd.f32 %v208_v54, %v199_v58  ;;  %v213_v6 = vadd.f32 %v209_v55, %v200_v59  ;;  %v226_v7 = vrot.slane %v218_v61, 1  ;;  %v782_v57 = vld [vmem:[%s843_s14 + $0x18] sm:$0x7] }
  0x18   : > { %v227_v8 = vrot.slane %v219_v62, 1  ;;  %v228_v9 = vrot.slane %v220_v63, 1  ;;  %v229_v13 = vrot.slane %v221_v0, 1  ;;  %v241_v15 = vrot.slane %v848_v2, %v887_v28  ;;  %v783_v63 = vld [vmem:[%s843_s14 + $0x1c] sm:$0x7] }
  0x19   : > { %v266_v20 = vrot.slane %v848_v2, %v891_v30  ;;  %v278_v21 = vrot.slane %v848_v2, %v893_v31  ;;  %v302_v22 = vrot.slane %v908_v60, %v852_v5  ;;  %v234_v23 = vadd.f32 %v226_v7, %v210_v1  ;;  %v784_v0 = vld [vmem:[%s843_s14 + $0x20] sm:$0x7]  ;;  %v785_v1 = vld [vmem:[%s843_s14 + $0x24] sm:$0x7] }
  0x1a   : > { %v235_v24 = vadd.f32 %v227_v8, %v211_v3  ;;  %v236_v25 = vadd.f32 %v228_v9, %v212_v4  ;;  %v237_v26 = vadd.f32 %v229_v13, %v213_v6  ;;  %v242_v27 = vmul.f32 %v241_v15, %v857_v10 }
  0x1b   : > { %v243_v32 = vmul.f32 %v241_v15, %v859_v11  ;;  %v244_v33 = vmul.f32 %v241_v15, %v861_v12  ;;  %v245_v34 = vmul.f32 %v241_v15, %v870_v17  ;;  %v267_v35 = vmul.f32 %v266_v20, %v859_v11 }
  0x1c   : > { %v268_v36 = vmul.f32 %v266_v20, %v861_v12  ;;  %v269_v2 = vmul.f32 %v266_v20, %v870_v17  ;;  %v270_v37 = vmul.f32 %v266_v20, %v889_v29  ;;  %v250_v38 = vrot.slane %v242_v27, 2  ;;  %v786_v20 = vld [vmem:[%s843_s14 + $0x28] sm:$0x7] }
  0x1d   : > { %v251_v39 = vrot.slane %v243_v32, 2  ;;  %v252_v40 = vrot.slane %v244_v33, 2  ;;  %v253_v41 = vrot.slane %v245_v34, 2  ;;  %v279_v10 = vmul.f32 %v278_v21, %v859_v11 }
  0x1e   : > { %v280_v42 = vmul.f32 %v278_v21, %v861_v12  ;;  %v281_v43 = vmul.f32 %v278_v21, %v870_v17  ;;  %v282_v44 = vmul.f32 %v278_v21, %v889_v29  ;;  %v258_v45 = vadd.f32 %v250_v38, %v234_v23 }
  0x1f   : > { %v259_v46 = vadd.f32 %v251_v39, %v235_v24  ;;  %v260_v47 = vadd.f32 %v252_v40, %v236_v25  ;;  %v261_v48 = vadd.f32 %v253_v41, %v237_v26  ;;  %v287_v49 = vrot.slane %v279_v10, 1 }
  0x20   : > { %v288_v50 = vrot.slane %v280_v42, 1  ;;  %v289_v51 = vrot.slane %v281_v43, 1  ;;  %v290_v52 = vrot.slane %v282_v44, 1  ;;  %v271_v53 = vadd.f32 %v267_v35, %v258_v45 }
  0x21   : > { %v272_v54 = vadd.f32 %v268_v36, %v259_v46  ;;  %v273_v55 = vadd.f32 %v269_v2, %v260_v47  ;;  %v274_v56 = vadd.f32 %v270_v37, %v261_v48  ;;  %v303_v58 = vmul.f32 %v302_v22, %v859_v11  ;;  %v787_v11 = vld [vmem:[%s843_s14 + $0x2c] sm:$0x7] }
  0x22   : > { %v304_v59 = vmul.f32 %v302_v22, %v861_v12  ;;  %v305_v61 = vmul.f32 %v302_v22, %v870_v17  ;;  %v306_v62 = vmul.f32 %v302_v22, %v889_v29  ;;  %v295_v3 = vadd.f32 %v287_v49, %v271_v53 }
  0x23   : > { %v296_v4 = vadd.f32 %v288_v50, %v272_v54  ;;  %v297_v6 = vadd.f32 %v289_v51, %v273_v55  ;;  %v298_v7 = vadd.f32 %v290_v52, %v274_v56  ;;  %v311_v8 = vrot.slane %v303_v58, 2 }
  0x24   : > { %v312_v9 = vrot.slane %v304_v59, 2  ;;  %v313_v13 = vrot.slane %v305_v61, 2  ;;  %v314_v15 = vrot.slane %v306_v62, 2  ;;  %v333_v21 = vunpack.c.l.bf16 %v782_v57 }
  0x25   : > { %v944_v23 = vunpack.c.l.bf16 %v783_v63  ;;  %v946_v12 = vunpack.c.l.bf16 %v784_v0  ;;  %v948_v17 = vunpack.c.l.bf16 %v785_v1  ;;  %v319_v29 = vadd.f32 %v311_v8, %v295_v3 }
  0x26   : > { %v320_v22 = vadd.f32 %v312_v9, %v296_v4  ;;  %v321_v24 = vadd.f32 %v313_v13, %v297_v6  ;;  %v322_v25 = vadd.f32 %v314_v15, %v298_v7  ;;  %v340_v26 = vrot.slane %v908_v60, %v865_v14 }
  0x27   : > { %v352_v27 = vrot.slane %v908_v60, %v868_v16  ;;  %v376_v32 = vrot.slane %v908_v60, %v872_v18  ;;  %v956_v33 = vunpack.c.l.bf16 %v786_v20  ;;  %v401_v34 = vrot.slane %v908_v60, %v874_v19 }
  0x28   : > { %v413_v35 = vrot.slane %v908_v60, %v887_v28  ;;  %v437_v36 = vrot.slane %v908_v60, %v891_v30  ;;  %v964_v2 = vunpack.c.l.bf16 %v787_v11  ;;  %v341_v37 = vmul.f32 %v340_v26, %v333_v21 }
  0x29   : > { %v342_v38 = vmul.f32 %v340_v26, %v944_v23  ;;  %v343_v39 = vmul.f32 %v340_v26, %v946_v12  ;;  %v344_v40 = vmul.f32 %v340_v26, %v948_v17  ;;  %v353_v41 = vmul.f32 %v352_v27, %v333_v21 }
  0x2a   : > { %v354_v10 = vmul.f32 %v352_v27, %v944_v23  ;;  %v355_v42 = vmul.f32 %v352_v27, %v946_v12  ;;  %v356_v43 = vmul.f32 %v352_v27, %v948_v17  ;;  %v345_v44 = vadd.f32 %v341_v37, %v319_v29  ;;  %v986_v37 = vld [vmem:[%s1075_s1 + $0x10] sm:$0xff] }
  0x2b   : > { %v346_v45 = vadd.f32 %v342_v38, %v320_v22  ;;  %v347_v46 = vadd.f32 %v343_v39, %v321_v24  ;;  %v348_v47 = vadd.f32 %v344_v40, %v322_v25  ;;  %v361_v48 = vrot.slane %v353_v41, 1  ;;  %v788_v41 = vld [vmem:[%s843_s14 + $0x30] sm:$0x7] }
  0x2c   : > { %v362_v49 = vrot.slane %v354_v10, 1  ;;  %v363_v50 = vrot.slane %v355_v42, 1  ;;  %v364_v51 = vrot.slane %v356_v43, 1  ;;  %v377_v52 = vmul.f32 %v376_v32, %v333_v21 }
  0x2d   : > { %v378_v53 = vmul.f32 %v376_v32, %v944_v23  ;;  %v379_v54 = vmul.f32 %v376_v32, %v946_v12  ;;  %v380_v55 = vmul.f32 %v376_v32, %v948_v17  ;;  %v369_v56 = vadd.f32 %v361_v48, %v345_v44 }
  0x2e   : > { %v370_v57 = vadd.f32 %v362_v49, %v346_v45  ;;  %v371_v58 = vadd.f32 %v363_v50, %v347_v46  ;;  %v372_v59 = vadd.f32 %v364_v51, %v348_v47  ;;  %v385_v61 = vrot.slane %v377_v52, 2 }
  0x2f   : > { %v386_v62 = vrot.slane %v378_v53, 2  ;;  %v387_v63 = vrot.slane %v379_v54, 2  ;;  %v388_v0 = vrot.slane %v380_v55, 2  ;;  %v402_v1 = vmul.f32 %v401_v34, %v944_v23 }
  0x30   : > { %v403_v3 = vmul.f32 %v401_v34, %v946_v12  ;;  %v404_v4 = vmul.f32 %v401_v34, %v948_v17  ;;  %v405_v6 = vmul.f32 %v401_v34, %v956_v33  ;;  %v393_v7 = vadd.f32 %v385_v61, %v369_v56 }
  0x31   : > { %v394_v8 = vadd.f32 %v386_v62, %v370_v57  ;;  %v395_v9 = vadd.f32 %v387_v63, %v371_v58  ;;  %v396_v13 = vadd.f32 %v388_v0, %v372_v59  ;;  %v414_v15 = vmul.f32 %v413_v35, %v944_v23 }
  0x32   : > { %v415_v20 = vmul.f32 %v413_v35, %v946_v12  ;;  %v416_v11 = vmul.f32 %v413_v35, %v948_v17  ;;  %v417_v21 = vmul.f32 %v413_v35, %v956_v33  ;;  %v406_v29 = vadd.f32 %v402_v1, %v393_v7 }
  0x33   : > { %v407_v22 = vadd.f32 %v403_v3, %v394_v8  ;;  %v408_v24 = vadd.f32 %v404_v4, %v395_v9  ;;  %v409_v25 = vadd.f32 %v405_v6, %v396_v13  ;;  %v422_v26 = vrot.slane %v414_v15, 1 }
  0x34   : > { %v423_v27 = vrot.slane %v415_v20, 1  ;;  %v424_v32 = vrot.slane %v416_v11, 1  ;;  %v425_v34 = vrot.slane %v417_v21, 1  ;;  %v438_v38 = vmul.f32 %v437_v36, %v944_v23  ;;  %v789_v11 = vld [vmem:[%s843_s14 + $0x34] sm:$0x7] }
  0x35   : > { %v439_v39 = vmul.f32 %v437_v36, %v946_v12  ;;  %v440_v40 = vmul.f32 %v437_v36, %v948_v17  ;;  %v441_v35 = vmul.f32 %v437_v36, %v956_v33  ;;  %v430_v10 = vadd.f32 %v422_v26, %v406_v29  ;;  %v790_v21 = vld [vmem:[%s843_s14 + $0x38] sm:$0x7]  ;;  %v791_v29 = vld [vmem:[%s843_s14 + $0x3c] sm:$0x7] }
  0x36   : > { %v431_v42 = vadd.f32 %v423_v27, %v407_v22  ;;  %v432_v43 = vadd.f32 %v424_v32, %v408_v24  ;;  %v433_v44 = vadd.f32 %v425_v34, %v409_v25  ;;  %v446_v45 = vrot.slane %v438_v38, 2 }
  0x37   : > { %v447_v46 = vrot.slane %v439_v39, 2  ;;  %v448_v47 = vrot.slane %v440_v40, 2  ;;  %v449_v48 = vrot.slane %v441_v35, 2  ;;  %v462_v49 = vrot.slane %v908_v60, %v893_v31  ;;  %v792_v39 = vld [vmem:[%s843_s14 + $0x40] sm:$0x7] }
  0x38   : > { %v474_v23 = vrot.slane %v986_v37, %v852_v5  ;;  %v498_v50 = vrot.slane %v986_v37, %v865_v14  ;;  %v529_v51 = vunpack.c.l.bf16 %v788_v41  ;;  %v454_v36 = vadd.f32 %v446_v45, %v430_v10 }
  0x39   : > { %v455_v52 = vadd.f32 %v447_v46, %v431_v42  ;;  %v456_v53 = vadd.f32 %v448_v47, %v432_v43  ;;  %v457_v54 = vadd.f32 %v449_v48, %v433_v44  ;;  %v463_v55 = vmul.f32 %v462_v49, %v946_v12 }
  0x3a   : > { %v464_v56 = vmul.f32 %v462_v49, %v948_v17  ;;  %v465_v57 = vmul.f32 %v462_v49, %v956_v33  ;;  %v466_v58 = vmul.f32 %v462_v49, %v964_v2  ;;  %v475_v60 = vmul.f32 %v474_v23, %v946_v12 }
  0x3b   : > { %v476_v59 = vmul.f32 %v474_v23, %v948_v17  ;;  %v477_v61 = vmul.f32 %v474_v23, %v956_v33  ;;  %v478_v62 = vmul.f32 %v474_v23, %v964_v2  ;;  %v467_v63 = vadd.f32 %v463_v55, %v454_v36 }
  0x3c   : > { %v468_v0 = vadd.f32 %v464_v56, %v455_v52  ;;  %v469_v1 = vadd.f32 %v465_v57, %v456_v53  ;;  %v470_v3 = vadd.f32 %v466_v58, %v457_v54  ;;  %v483_v4 = vrot.slane %v475_v60, 1 }
  0x3d   : > { %v484_v6 = vrot.slane %v476_v59, 1  ;;  %v485_v7 = vrot.slane %v477_v61, 1  ;;  %v486_v8 = vrot.slane %v478_v62, 1  ;;  %v499_v9 = vmul.f32 %v498_v50, %v946_v12 }
  0x3e   : > { %v500_v13 = vmul.f32 %v498_v50, %v948_v17  ;;  %v501_v15 = vmul.f32 %v498_v50, %v956_v33  ;;  %v502_v20 = vmul.f32 %v498_v50, %v964_v2  ;;  %v491_v22 = vadd.f32 %v483_v4, %v467_v63  ;;  %v793_v4 = vld [vmem:[%s843_s14 + $0x44] sm:$0x7] }
  0x3f   : > { %v492_v24 = vadd.f32 %v484_v6, %v468_v0  ;;  %v493_v25 = vadd.f32 %v485_v7, %v469_v1  ;;  %v494_v26 = vadd.f32 %v486_v8, %v470_v3  ;;  %v507_v27 = vrot.slane %v499_v9, 2  ;;  %v127_v3 = vld [vmem:[%s1075_s1 + $0x18] sm:$0x7] }
  0x40   : > { %v508_v32 = vrot.slane %v500_v13, 2  ;;  %v509_v34 = vrot.slane %v501_v15, 2  ;;  %v510_v38 = vrot.slane %v502_v20, 2  ;;  %v530_v40 = vunpack.c.l.bf16 %v789_v11 }
  0x41   : > { %v1015_v12 = vunpack.c.l.bf16 %v790_v21  ;;  %v1017_v17 = vunpack.c.l.bf16 %v791_v29  ;;  %v536_v33 = vrot.slane %v986_v37, %v868_v16  ;;  %v515_v2 = vadd.f32 %v507_v27, %v491_v22 }
  0x42   : > { %v516_v35 = vadd.f32 %v508_v32, %v492_v24  ;;  %v517_v41 = vadd.f32 %v509_v34, %v493_v25  ;;  %v518_v10 = vadd.f32 %v510_v38, %v494_v26  ;;  %v548_v46 = vrot.slane %v986_v37, %v872_v18 }
  0x43   : > { %v537_v42 = vmul.f32 %v536_v33, %v529_v51  ;;  %v538_v43 = vmul.f32 %v536_v33, %v530_v40  ;;  %v539_v44 = vmul.f32 %v536_v33, %v1015_v12  ;;  %v540_v45 = vmul.f32 %v536_v33, %v1017_v17 }
  0x44   : > { %v572_v47 = vrot.slane %v986_v37, %v874_v19  ;;  %v1027_v48 = vunpack.c.l.bf16 %v792_v39  ;;  %v597_v49 = vrot.slane %v986_v37, %v887_v28  ;;  %v549_v53 = vmul.f32 %v548_v46, %v529_v51 }
  0x45   : > { %v541_v23 = vadd.f32 %v537_v42, %v515_v2  ;;  %v542_v50 = vadd.f32 %v538_v43, %v516_v35  ;;  %v543_v36 = vadd.f32 %v539_v44, %v517_v41  ;;  %v544_v52 = vadd.f32 %v540_v45, %v518_v10 }
  0x46   : > { %v550_v54 = vmul.f32 %v548_v46, %v530_v40  ;;  %v551_v55 = vmul.f32 %v548_v46, %v1015_v12  ;;  %v552_v56 = vmul.f32 %v548_v46, %v1017_v17  ;;  %v573_v18 = vmul.f32 %v572_v47, %v529_v51 }
  0x47   : > { %v574_v57 = vmul.f32 %v572_v47, %v530_v40  ;;  %v575_v19 = vmul.f32 %v572_v47, %v1015_v12  ;;  %v576_v58 = vmul.f32 %v572_v47, %v1017_v17  ;;  %v557_v60 = vrot.slane %v549_v53, 1 }
  0x48   : > { %v558_v59 = vrot.slane %v550_v54, 1  ;;  %v559_v28 = vrot.slane %v551_v55, 1  ;;  %v560_v61 = vrot.slane %v552_v56, 1  ;;  %v581_v62 = vrot.slane %v573_v18, 2 }
  0x49   : > { %v582_v63 = vrot.slane %v574_v57, 2  ;;  %v583_v0 = vrot.slane %v575_v19, 2  ;;  %v584_v1 = vrot.slane %v576_v58, 2  ;;  %v565_v6 = vadd.f32 %v557_v60, %v541_v23 }
  0x4a   : > { %v566_v51 = vadd.f32 %v558_v59, %v542_v50  ;;  %v567_v7 = vadd.f32 %v559_v28, %v543_v36  ;;  %v568_v8 = vadd.f32 %v560_v61, %v544_v52  ;;  %v598_v9 = vmul.f32 %v597_v49, %v530_v40 }
  0x4b   : > { %v599_v13 = vmul.f32 %v597_v49, %v1015_v12  ;;  %v600_v15 = vmul.f32 %v597_v49, %v1017_v17  ;;  %v601_v20 = vmul.f32 %v597_v49, %v1027_v48  ;;  %v589_v11 = vadd.f32 %v581_v62, %v565_v6 }
  0x4c   : > { %v590_v21 = vadd.f32 %v582_v63, %v566_v51  ;;  %v591_v29 = vadd.f32 %v583_v0, %v567_v7  ;;  %v592_v22 = vadd.f32 %v584_v1, %v568_v8  ;;  %v609_v24 = vrot.slane %v986_v37, %v891_v30 }
  0x4d   : > { %v633_v25 = vrot.slane %v986_v37, %v893_v31  ;;  %v654_v26 = vunpack.c.l.bf16 %v793_v4  ;;  %v658_v27 = vrot.slane %v127_v3, %v852_v5  ;;  %v602_v32 = vadd.f32 %v598_v9, %v589_v11 }
  0x4e   : > { %v603_v34 = vadd.f32 %v599_v13, %v590_v21  ;;  %v604_v38 = vadd.f32 %v600_v15, %v591_v29  ;;  %v605_v39 = vadd.f32 %v601_v20, %v592_v22  ;;  %v610_v33 = vmul.f32 %v609_v24, %v530_v40 }
  0x4f   : > { %v611_v2 = vmul.f32 %v609_v24, %v1015_v12  ;;  %v612_v35 = vmul.f32 %v609_v24, %v1017_v17  ;;  %v613_v41 = vmul.f32 %v609_v24, %v1027_v48  ;;  %v634_v10 = vmul.f32 %v633_v25, %v530_v40 }
  0x50   : > { %v635_v30 = vmul.f32 %v633_v25, %v1015_v12  ;;  %v636_v31 = vmul.f32 %v633_v25, %v1017_v17  ;;  %v637_v37 = vmul.f32 %v633_v25, %v1027_v48  ;;  %v618_v5 = vrot.slane %v610_v33, 1 }
  0x51   : > { %v619_v42 = vrot.slane %v611_v2, 1  ;;  %v620_v43 = vrot.slane %v612_v35, 1  ;;  %v621_v44 = vrot.slane %v613_v41, 1  ;;  %v642_v45 = vrot.slane %v634_v10, 2 }
  0x52   : > { %v643_v46 = vrot.slane %v635_v30, 2  ;;  %v644_v47 = vrot.slane %v636_v31, 2  ;;  %v645_v49 = vrot.slane %v637_v37, 2  ;;  %v626_v23 = vadd.f32 %v618_v5, %v602_v32 }
  0x53   : > { %v627_v50 = vadd.f32 %v619_v42, %v603_v34  ;;  %v628_v36 = vadd.f32 %v620_v43, %v604_v38  ;;  %v629_v52 = vadd.f32 %v621_v44, %v605_v39  ;;  %v659_v40 = vmul.f32 %v658_v27, %v1015_v12 }
  0x54   : > { %v660_v53 = vmul.f32 %v658_v27, %v1017_v17  ;;  %v661_v54 = vmul.f32 %v658_v27, %v1027_v48  ;;  %v662_v55 = vmul.f32 %v658_v27, %v654_v26  ;;  %v650_v56 = vadd.f32 %v642_v45, %v626_v23 }
  0x55   : > { %v651_v18 = vadd.f32 %v643_v46, %v627_v50  ;;  %v652_v57 = vadd.f32 %v644_v47, %v628_v36  ;;  %v653_v19 = vadd.f32 %v645_v49, %v629_v52  ;;  %v670_v58 = vrot.slane %v127_v3, %v865_v14 }
  0x56   : > { %v694_v60 = vrot.slane %v127_v3, %v868_v16  ;;  %v663_v59 = vadd.f32 %v659_v40, %v650_v56 }
  0x57   : > { %v664_v28 = vadd.f32 %v660_v53, %v651_v18  ;;  %v665_v61 = vadd.f32 %v661_v54, %v652_v57  ;;  %v666_v62 = vadd.f32 %v662_v55, %v653_v19  ;;  %v671_v63 = vmul.f32 %v670_v58, %v1015_v12 }
  0x58   : > { %v672_v0 = vmul.f32 %v670_v58, %v1017_v17  ;;  %v673_v1 = vmul.f32 %v670_v58, %v1027_v48  ;;  %v674_v4 = vmul.f32 %v670_v58, %v654_v26  ;;  %v695_v6 = vmul.f32 %v694_v60, %v1015_v12 }
  0x59   : > { %v696_v51 = vmul.f32 %v694_v60, %v1017_v17  ;;  %v697_v14 = vmul.f32 %v694_v60, %v1027_v48  ;;  %v698_v16 = vmul.f32 %v694_v60, %v654_v26  ;;  %v679_v3 = vrot.slane %v671_v63, 1 }
  0x5a   : > { %v680_v7 = vrot.slane %v672_v0, 1  ;;  %v681_v8 = vrot.slane %v673_v1, 1  ;;  %v682_v9 = vrot.slane %v674_v4, 1  ;;  %v703_v13 = vrot.slane %v695_v6, 2 }
  0x5b   : > { %v704_v15 = vrot.slane %v696_v51, 2  ;;  %v705_v20 = vrot.slane %v697_v14, 2  ;;  %v706_v11 = vrot.slane %v698_v16, 2  ;;  %v687_v21 = vadd.f32 %v679_v3, %v663_v59 }
  0x5c   : > { %v688_v29 = vadd.f32 %v680_v7, %v664_v28  ;;  %v689_v22 = vadd.f32 %v681_v8, %v665_v61  ;;  %v690_v24 = vadd.f32 %v682_v9, %v666_v62 }
  0x5d   : > { %v711_v25 = vadd.f32 %v703_v13, %v687_v21 }
  0x5e   : > { %v712_v12 = vadd.f32 %v704_v15, %v688_v29  ;;  %v713_v27 = vadd.f32 %v705_v20, %v689_v22  ;;  %v714_v17 = vadd.f32 %v706_v11, %v690_v24 }
  0x5f   : > { %v715_v48 = vpack.c.bf16 %v711_v25, %v711_v25 }
  0x60   : > { %v716_v26 = vpack.c.bf16 %v712_v12, %v712_v12  ;;  %v717_v32 = vpack.c.bf16 %v713_v27, %v713_v27  ;;  %v718_v34 = vpack.c.bf16 %v714_v17, %v714_v17 }
  0x61   : > { %720 = vst.msk [vmem:[%s123_s26] sm:$0x3] %vm719_vm0, %v715_v48 }
  0x62   : > { %721 = vst.msk [vmem:[%s123_s26 + $0x2] sm:$0x3] %vm719_vm0, %v716_v26  ;;  %722 = vst.msk [vmem:[%s123_s26 + $0x4] sm:$0x3] %vm719_vm0, %v717_v32 }
  0x63   : > { %723 = vst.msk [vmem:[%s123_s26 + $0x6] sm:$0x3] %vm719_vm0, %v718_v34 }
  0x64 PF: > { %s12_s9 = sadd.s32 1, %s812_s9  }
  0x65   : > { %p9_p4 = scmp.ge.s32.totalorder %s12_s9, 6  }
  0x67   :  { %11 = sbr.rel (!%p9_p4) target bundleno = 1 (0x1), region = 58 }

// kernel: multiscale_attention_forward.8
= control target key start
LH: loop header
LB: loop body
LE: loop exit
PB: predicated region body
PF: predicated region fallthrough
CT: control target
= control target key end

     0   :  { %s1144_s15 = smov 0   ;;  %s1482_s0 = inlined_call_operand.vmem [shape: bf16[8,65,8], index: 0, kind: input, shape index: {}]   ;;  %s1483_s1 = inlined_call_operand.vmem [shape: bf16[8,9,8], index: 1, kind: input, shape index: {}]   ;;  %s1484_s2 = inlined_call_operand.vmem [shape: bf16[8,9,8], index: 2, kind: input, shape index: {}]   ;;  %s1485_s3 = inlined_call_operand.vmem [shape: f32[6,8], index: 3, kind: input, shape index: {}]   ;;  %s1486_s4 = inlined_call_operand.vmem [shape: bf16[8,65,8], index: 4, kind: output, shape index: {}]  }
   0x1 LB: > { %s916_s16 = sadd.s32 4294967295, %s1114_s15   ;;  %p920_p0 = scmp.ge.s32.totalorder %s1114_s15, 1  ;;  %s1114_s15 = sphi %s1144_s15, %s14_s15  }
   0x2   : > { %p182_p1 = scmp.lt.s32.totalorder %s1114_s15, 9 }
   0x4   : > { %p183_p2 = pnand %p920_p0, %p182_p1 }
   0x5   : > { %p218_p3 = scmp.lt.s32.totalorder (!%p183_p2), %s916_s16, 7  ;;  %vm258_vm0 = vcmask (!%p183_p2), 64512   ;;  %vm283_vm1 = vcmask (!%p183_p2), 57344   ;;  %vm1117_vm2 = vmmov (!%p183_p2), 0   ;;  %vm584_vm3 = vcmask (!%p183_p2), 72704  }
   0x6   : > { %186 = sbr.rel (%p183_p2) target bundleno = 1126 (0x466), region = 36  ;;  %vm609_vm4 = vcmask (!%p183_p2), 65536   ;;  %vm706_vm5 = vcmask (!%p183_p2), 1043456   ;;  %vm707_vm6 = vcmask (!%p183_p2), 1044480   ;;  %vm822_vm7 = vcmask (!%p183_p2), 60416  }
   0x7   : > { %vm832_vm8 = vsmask.f32 (!%p183_p2), 256 }
   0x8   : > { %vm833_vm9 = vmand (!%p183_p2), %vm283_vm1, %vm832_vm8 }
   0xd   : > { %s1488_s16 = smov (!%p218_p3, %s916_s16), 7 }
   0xe   : > { %s948_s17 = sshll.u32 %s1488_s16, 3  ;;  %s1034_s18 = smul.u32 36, %s1488_s16 }
   0xf   : > { %s227_s21 = scalar_lea.vmem %s1483_s1, %s948_s17  ;;  %s232_s27 = scalar_lea.vmem %s1484_s2, %s948_s17 }
  0x10   : > { %v404_v0 = vld [vmem:[%s227_s21] sm:$0xf]  ;;  %v405_v1 = vld [vmem:[%s227_s21 + $0x4] sm:$0x1]  ;;  %s222_s24 = scalar_lea.vmem %s1482_s0, %s1034_s18  ;;  %s1450_s6 = scalar_lea.vmem %s1486_s4, %s1034_s18 }
  0x11   : > { %v406_v2 = vunpack.c.l.bf16 %v404_v0  ;;  %v407_v3 = vunpack.c.l.bf16 %v405_v1  ;;  %v960_v4 = vld [vmem:[%s222_s24] sm:$0xff]   ;;  %v1166_v6 = vld [vmem:[%s222_s24 + $0x8] sm:$0xff]   ;;  %v1173_v13 = vld [vmem:[%s222_s24 + $0x10] sm:$0xff]  }
  0x12   : > { %v961_v5 = vunpack.c.l.bf16 %v960_v4  ;;  %v962_v7 = vunpack.c.h.bf16 %v960_v4  ;;  %v965_v11 = vunpack.c.l.bf16 %v1166_v6  ;;  %v966_v14 = vunpack.c.h.bf16 %v1166_v6  ;;  %v1179_v18 = vld [vmem:[%s222_s24 + $0x18] sm:$0xff]   ;;  %v1185_v23 = vld [vmem:[%s222_s24 + $0x20] sm:$0x1] }
  0x13   : > { %v408_v8 = vsel %vm258_vm0, %v406_v2, 0.0  ;;  %v411_v10 = vsel %vm283_vm1, %v407_v3, 0.0  ;;  %v969_v16 = vunpack.c.l.bf16 %v1173_v13  ;;  %v970_v19 = vunpack.c.h.bf16 %v1173_v13 }
  0x14   : > { %409 = vadd.xlane.f32.xlu0 %v408_v8  ;;  %v259_v9 = vsel %vm258_vm0, %v961_v5, 0.0  ;;  %v262_v12 = vsel %vm258_vm0, %v962_v7, 0.0  ;;  %v265_v15 = vsel %vm258_vm0, %v965_v11, 0.0  ;;  %v268_v17 = vsel %vm258_vm0, %v966_v14, 0.0 }
  0x15   : > { %260 = vadd.xlane.f32.xlu1 %v259_v9  ;;  %v271_v20 = vsel %vm258_vm0, %v969_v16, 0.0  ;;  %v973_v21 = vunpack.c.l.bf16 %v1179_v18  ;;  %v274_v22 = vsel %vm258_vm0, %v970_v19, 0.0  ;;  %v974_v24 = vunpack.c.h.bf16 %v1179_v18 }
  0x16   : > { %v257_v26 = vunpack.c.l.bf16 %v1185_v23 }
  0x17   : > { %v277_v25 = vsel %vm258_vm0, %v973_v21, 0.0  ;;  %v280_v27 = vsel %vm258_vm0, %v974_v24, 0.0 }
  0x18   : > { %412 = vadd.xlane.f32.xlu0 %v411_v10  ;;  %v284_v28 = vsel %vm283_vm1, %v257_v26, 0.0 }
  0x19   : > { %263 = vadd.xlane.f32.xlu1 %v262_v12 }
  0x1c   : > { %266 = vadd.xlane.f32.xlu0 %v265_v15 }
  0x1d   : > { %269 = vadd.xlane.f32.xlu1 %v268_v17 }
  0x20   : > { %272 = vadd.xlane.f32.xlu0 %v271_v20  ;;  %v1116_v20 = vmov 0.0  }
  0x21   : > { %275 = vadd.xlane.f32.xlu1 %v274_v22  ;;  %990 = vmatprep.subr.bf16.mxu0 %v1116_v20  ;;  %v1264_v22 = vld [vmem:[%s232_s27 + $0x4] sm:$0x1] }
  0x22   : > { %1012 = vmatprep.subr.bf16.mxu1 %v1116_v20  ;;  %992 = vmatprep.mubr.msk.bf16.mxu0 %vm1117_vm2, %v1116_v20 }
  0x23   : > { %1014 = vmatprep.mubr.msk.bf16.mxu1 %vm1117_vm2, %v1116_v20 }
  0x24   : > { %278 = vadd.xlane.f32.xlu0 %v277_v25 }
  0x25   : > { %281 = vadd.xlane.f32.xlu1 %v280_v27 }
  0x28   : > { %285 = vadd.xlane.f32.xlu0 %v284_v28 }
  0xa1   : > { %v410_v29 = vpop.xlane.xlu0 %409 }
  0xa2   : > { %v414_v30 = vmul.f32 0.125, %v410_v29  ;;  %v261_v31 = vpop.xlane.xlu1 %260 }
  0xa3   : > { %v288_v32 = vmul.f32 0.125, %v261_v31 }
  0xa4   : > { %v1194_v33 = vsub.f32 %v406_v2, %v414_v30 }
  0xa5   : > { %v413_v34 = vpop.xlane.xlu0 %412  ;;  %v1196_v35 = vsub.f32 %v961_v5, %v288_v32  ;;  %v378_v32 = vlaneseq }
  0xa6   : > { %v415_v36 = vmul.f32 0.125, %v413_v34  ;;  %v418_v37 = vmul.f32 %v1194_v33, %v1194_v33  ;;  %v264_v38 = vpop.xlane.xlu1 %263 }
  0xa7   : > { %v289_v39 = vmul.f32 0.125, %v264_v38  ;;  %v306_v40 = vmul.f32 %v1196_v35, %v1196_v35 }
  0xa8   : > { %v1202_v41 = vsub.f32 %v407_v3, %v415_v36  ;;  %v420_v42 = vsel %vm258_vm0, %v418_v37, 0.0 }
  0xa9   : > { %v267_v43 = vpop.xlane.xlu0 %266  ;;  %421 = vadd.xlane.f32.xlu1 %v420_v42  ;;  %v1205_v44 = vsub.f32 %v962_v7, %v289_v39  ;;  %v315_v47 = vsel %vm258_vm0, %v306_v40, 0.0  ;;  %v1274_v42 = vshrl.u32 %v378_v32, 7 }
  0xaa   : > { %v290_v45 = vmul.f32 0.125, %v267_v43  ;;  %v419_v46 = vmul.f32 %v1202_v41, %v1202_v41  ;;  %v270_v48 = vpop.xlane.xlu1 %269 }
  0xab   : > { %v291_v49 = vmul.f32 0.125, %v270_v48  ;;  %v307_v50 = vmul.f32 %v1205_v44, %v1205_v44  ;;  %v436_v48 = vsub.s32 2, %v1274_v42 }
  0xac   : > { %v1212_v51 = vsub.f32 %v965_v11, %v290_v45  ;;  %v423_v52 = vsel %vm283_vm1, %v419_v46, 0.0 }
  0xad   : > { %424 = vadd.xlane.f32.xlu0 %v423_v52  ;;  %v273_v53 = vpop.xlane.xlu0 %272  ;;  %316 = vadd.xlane.f32.xlu1 %v315_v47  ;;  %v1215_v54 = vsub.f32 %v966_v14, %v291_v49  ;;  %v318_v57 = vsel %vm258_vm0, %v307_v50, 0.0  ;;  %v1280_v50 = vld [vmem:[%s1485_s3] sm:$0x3f] }
  0xae   : > { %v292_v55 = vmul.f32 0.125, %v273_v53  ;;  %v308_v56 = vmul.f32 %v1212_v51, %v1212_v51  ;;  %v276_v58 = vpop.xlane.xlu1 %275 }
  0xaf   : > { %v293_v59 = vmul.f32 0.125, %v276_v58  ;;  %v309_v60 = vmul.f32 %v1215_v54, %v1215_v54 }
  0xb0   : > { %v1222_v61 = vsub.f32 %v969_v16, %v292_v55  ;;  %v321_v62 = vsel %vm258_vm0, %v308_v56, 0.0 }
  0xb1   : > { %v279_v63 = vpop.xlane.xlu0 %278  ;;  %322 = vadd.xlane.f32.xlu1 %v321_v62  ;;  %319 = vadd.xlane.f32.xlu0 %v318_v57  ;;  %v1225_v0 = vsub.f32 %v970_v19, %v293_v59  ;;  %v324_v3 = vsel %vm258_vm0, %v309_v60, 0.0  ;;  %v437_v59 = vrot.slane %v1280_v50, %v436_v48  ;;  %v442_v60 = vsub.s32 3, %v1274_v42 }
  0xb2   : > { %v294_v1 = vmul.f32 0.125, %v279_v63  ;;  %v310_v2 = vmul.f32 %v1222_v61, %v1222_v61  ;;  %v282_v4 = vpop.xlane.xlu1 %281 }
  0xb3   : > { %v295_v5 = vmul.f32 0.125, %v282_v4  ;;  %v311_v6 = vmul.f32 %v1225_v0, %v1225_v0 }
  0xb4   : > { %v1232_v7 = vsub.f32 %v973_v21, %v294_v1  ;;  %v327_v8 = vsel %vm258_vm0, %v310_v2, 0.0  ;;  %v1262_v21 = vld [vmem:[%s232_s27] sm:$0xf]  ;;  %v380_v2 = vsub.s32 0, %v1274_v42 }
  0xb5   : > { %v286_v9 = vpop.xlane.xlu0 %285  ;;  %328 = vadd.xlane.f32.xlu1 %v327_v8  ;;  %325 = vadd.xlane.f32.xlu0 %v324_v3  ;;  %v1235_v10 = vsub.f32 %v974_v24, %v295_v5  ;;  %v330_v13 = vsel %vm258_vm0, %v311_v6, 0.0  ;;  %v448_v23 = vunpack.c.l.bf16 %v1262_v21  ;;  %v449_v24 = vunpack.c.l.bf16 %v1264_v22 }
  0xb6   : > { %v296_v11 = vmul.f32 0.125, %v286_v9  ;;  %v312_v12 = vmul.f32 %v1232_v7, %v1232_v7  ;;  %v443_v5 = vrot.slane %v1280_v50, %v442_v60 }
  0xb7   : > { %v313_v14 = vmul.f32 %v1235_v10, %v1235_v10  ;;  %v450_v25 = vsel %vm258_vm0, %v448_v23, 0.0 }
  0xb8   : > { %v1244_v15 = vsub.f32 %v257_v26, %v296_v11  ;;  %v333_v16 = vsel %vm258_vm0, %v312_v12, 0.0  ;;  %v453_v26 = vsel %vm283_vm1, %v449_v24, 0.0 }
  0xb9   : > { %334 = vadd.xlane.f32.xlu1 %v333_v16  ;;  %331 = vadd.xlane.f32.xlu0 %v330_v13  ;;  %v336_v18 = vsel %vm258_vm0, %v313_v14, 0.0  ;;  %v1289_v13 = vrot.slane %v1280_v50, %v380_v2  ;;  %v393_v14 = vsub.s32 1, %v1274_v42 }
  0xba   : > { %v314_v17 = vmul.f32 %v1244_v15, %v1244_v15 }
  0xbc   : > { %v339_v19 = vsel %vm283_vm1, %v314_v17, 0.0 }
  0xbd   : > { %340 = vadd.xlane.f32.xlu1 %v339_v19  ;;  %337 = vadd.xlane.f32.xlu0 %v336_v18 }
  0xc1   : > { %451 = vadd.xlane.f32.xlu0 %v450_v25  ;;  %454 = vadd.xlane.f32.xlu1 %v453_v26 }
 0x136   : > { %v422_v27 = vpop.xlane.xlu1 %421 }
 0x137   : > { %v426_v28 = vmul.f32 0.125, %v422_v27 }
 0x139   : > { %v428_v29 = vadd.f32 1e-05, %v426_v28 }
 0x13a   : > { %v425_v30 = vpop.xlane.xlu0 %424  ;;  %v317_v31 = vpop.xlane.xlu1 %316 }
 0x13b   : > { %1046 = vrsqrt.f32 %v428_v29  ;;  %v427_v34 = vmul.f32 0.125, %v425_v30  ;;  %v342_v36 = vmul.f32 0.125, %v317_v31  ;;  %v394_v30 = vrot.slane %v1280_v50, %v393_v14 }
 0x13d   : > { %v429_v37 = vadd.f32 1e-05, %v427_v34  ;;  %v351_v38 = vadd.f32 1e-05, %v342_v36 }
 0x13e   : > { %v320_v39 = vpop.xlane.xlu0 %319  ;;  %v323_v40 = vpop.xlane.xlu1 %322 }
 0x13f   : > { %1048 = vrsqrt.f32 %v429_v37  ;;  %v343_v43 = vmul.f32 0.125, %v320_v39  ;;  %v344_v46 = vmul.f32 0.125, %v323_v40 }
 0x140   : > { %1050 = vrsqrt.f32 %v351_v38 }
 0x141   : > { %v352_v45 = vadd.f32 1e-05, %v343_v43  ;;  %v353_v53 = vadd.f32 1e-05, %v344_v46 }
 0x142   : > { %v326_v47 = vpop.xlane.xlu0 %325  ;;  %v329_v56 = vpop.xlane.xlu1 %328 }
 0x143   : > { %1052 = vrsqrt.f32 %v352_v45  ;;  %v345_v49 = vmul.f32 0.125, %v326_v47  ;;  %v346_v1 = vmul.f32 0.125, %v329_v56 }
 0x145   : > { %v1047_v52 = vpop.eup %1046  ;;  %v354_v55 = vadd.f32 1e-05, %v345_v49  ;;  %v355_v12 = vadd.f32 1e-05, %v346_v1 }
 0x146   : > { %v332_v57 = vpop.xlane.xlu0 %331  ;;  %v432_v58 = vmul.f32 %v1047_v52, %v1194_v33  ;;  %v335_v18 = vpop.xlane.xlu1 %334 }
 0x147   : > { %1054 = vrsqrt.f32 %v354_v55  ;;  %v347_v62 = vmul.f32 0.125, %v332_v57  ;;  %v348_v29 = vmul.f32 0.125, %v335_v18 }
 0x148   : > { %1056 = vrsqrt.f32 %v353_v53  ;;  %v438_v4 = vmul.f32 %v437_v59, %v432_v58 }
 0x149   : > { %v1049_v63 = vpop.eup %1048  ;;  %v356_v8 = vadd.f32 1e-05, %v347_v62  ;;  %v357_v38 = vadd.f32 1e-05, %v348_v29 }
 0x14a   : > { %v433_v3 = vmul.f32 %v1049_v63, %v1202_v41  ;;  %v1051_v6 = vpop.eup %1050  ;;  %v338_v9 = vpop.xlane.xlu0 %337  ;;  %v444_v41 = vadd.f32 %v443_v5, %v438_v4 }
 0x14b   : > { %v369_v16 = vmul.f32 %v1051_v6, %v1196_v35  ;;  %1058 = vrsqrt.f32 %v356_v8  ;;  %v349_v25 = vmul.f32 0.125, %v338_v9  ;;  %v341_v36 = vpop.xlane.xlu1 %340 }
 0x14c   : > { %v439_v33 = vmul.f32 %v437_v59, %v433_v3  ;;  %1060 = vrsqrt.f32 %v355_v12  ;;  %v350_v43 = vmul.f32 0.125, %v341_v36 }
 0x14d   : > { %v1053_v11 = vpop.eup %1052  ;;  %v382_v32 = vmul.f32 %v1289_v13, %v369_v16  ;;  %v358_v34 = vadd.f32 1e-05, %v349_v25 }
 0x14e   : > { %v370_v17 = vmul.f32 %v1053_v11, %v1205_v44  ;;  %v445_v19 = vadd.f32 %v443_v5, %v439_v33  ;;  %v359_v49 = vadd.f32 1e-05, %v350_v43 }
 0x14f   : > { %v1302_v40 = vadd.f32 %v394_v30, %v382_v32  ;;  %1062 = vrsqrt.f32 %v358_v34 }
 0x150   : > { %v493_v26 = vpack.c.bf16 %v445_v19, %v444_v41  ;;  %v383_v27 = vmul.f32 %v1289_v13, %v370_v17  ;;  %1064 = vrsqrt.f32 %v357_v38 }
 0x151   : > { %v1055_v28 = vpop.eup %1054  ;;  %1066 = vrsqrt.f32 %v359_v49 }
 0x152   : > { %v510_v31 = vsel %vm258_vm0, %v493_v26, 0  ;;  %v1057_v35 = vpop.eup %1056  ;;  %v372_v44 = vmul.f32 %v1055_v28, %v1215_v54  ;;  %v1299_v37 = vadd.f32 %v394_v30, %v383_v27  ;;  %v452_v27 = vpop.xlane.xlu0 %451 }
 0x153   : > { %991 = vmatpush3.bf16.xpose.msra.mxu0 %v510_v31  ;;  %v371_v39 = vmul.f32 %v1057_v35, %v1212_v51  ;;  %v456_v31 = vmul.f32 0.125, %v452_v27 }
 0x154   : > { %v488_v45 = vpack.c.bf16 %v1299_v37, %v1302_v40  ;;  %v385_v46 = vmul.f32 %v1289_v13, %v372_v44  ;;  %v455_v44 = vpop.xlane.xlu1 %454 }
 0x155   : > { %v1059_v47 = vpop.eup %1058  ;;  %v384_v54 = vmul.f32 %v1289_v13, %v371_v39  ;;  %v1361_v36 = vsub.f32 %v448_v23, %v456_v31  ;;  %v457_v38 = vmul.f32 0.125, %v455_v44 }
 0x156   : > { %v1061_v48 = vpop.eup %1060  ;;  %v374_v51 = vmul.f32 %v1059_v47, %v1225_v0  ;;  %v1312_v52 = vadd.f32 %v394_v30, %v385_v46 }
 0x157   : > { %v373_v53 = vmul.f32 %v1061_v48, %v1222_v61  ;;  %v1315_v55 = vadd.f32 %v394_v30, %v384_v54  ;;  %v460_v46 = vmul.f32 %v1361_v36, %v1361_v36  ;;  %v1369_v49 = vsub.f32 %v449_v24, %v457_v38 }
 0x158   : > { %v387_v57 = vmul.f32 %v1289_v13, %v374_v51 }
 0x159   : > { %v489_v56 = vpack.c.bf16 %v1312_v52, %v1315_v55  ;;  %v1063_v58 = vpop.eup %1062  ;;  %v386_v59 = vmul.f32 %v1289_v13, %v373_v53  ;;  %v462_v21 = vsel %vm258_vm0, %v460_v46, 0.0  ;;  %v461_v23 = vmul.f32 %v1369_v49, %v1369_v49 }
 0x15a   : > { %993 = vmatmul.mubr.msk.bf16.vlgmr.msra.gmra.mrb[0].mxu0 %vm258_vm0, %v488_v45  ;;  %v1065_v60 = vpop.eup %1064  ;;  %v376_v0 = vmul.f32 %v1063_v58, %v1235_v10  ;;  %v1325_v61 = vadd.f32 %v394_v30, %v387_v57 }
 0x15b   : > { %996 = vmatprep.mubr.msk.bf16.mxu0 %vm1117_vm2, %v1116_v20  ;;  %v375_v62 = vmul.f32 %v1065_v60, %v1232_v7  ;;  %v1328_v63 = vadd.f32 %v394_v30, %v386_v59  ;;  %v1067_v3 = vpop.eup %1066  ;;  %v465_v22 = vsel %vm283_vm1, %v461_v23, 0.0 }
 0x15c   : > { %v389_v2 = vmul.f32 %v1289_v13, %v376_v0  ;;  %v377_v10 = vmul.f32 %v1067_v3, %v1244_v15 }
 0x15d   : > { %v490_v1 = vpack.c.bf16 %v1325_v61, %v1328_v63  ;;  %v388_v4 = vmul.f32 %v1289_v13, %v375_v62 }
 0x15e   : > { %v1338_v5 = vadd.f32 %v394_v30, %v389_v2  ;;  %v390_v8 = vmul.f32 %v1289_v13, %v377_v10 }
 0x15f   : > { %v1340_v7 = vadd.f32 %v394_v30, %v388_v4 }
 0x160   : > { %v1348_v9 = vadd.f32 %v394_v30, %v390_v8 }
 0x161   : > { %v491_v6 = vpack.c.bf16 %v1338_v5, %v1340_v7 }
 0x162   : > { %997 = vmatmul.mubr.msk.bf16.gmra.mrb[4].mxu0 %vm258_vm0, %v489_v56  ;;  %v492_v33 = vpack.c.bf16 %v1348_v9, %v1348_v9 }
 0x163   : > { %1000 = vmatprep.mubr.msk.bf16.mxu0 %vm1117_vm2, %v1116_v20 }
 0x16a   : > { %1001 = vmatmul.mubr.msk.bf16.gmra.mrb[8].mxu0 %vm258_vm0, %v490_v1 }
 0x16b   : > { %1004 = vmatprep.mubr.msk.bf16.mxu0 %vm1117_vm2, %v1116_v20 }
 0x172   : > { %1005 = vmatmul.mubr.msk.bf16.gmra.mrb[12].mxu0 %vm258_vm0, %v491_v6 }
 0x173   : > { %1008 = vmatprep.mubr.msk.bf16.mxu0 %vm1117_vm2, %v1116_v20 }
 0x17a   : > { %1009 = vmatmul.mubr.msk.bf16.gmra.mrb[16].mxu0 %vm258_vm0, %v492_v33 }
 0x22d   : > { %v546_v15 = vpop.f32.mrb[0].mxu0 }
 0x22e   : > { %v994_v11 = vpop.f32.mrb[1].mxu0  ;;  %v585_v12 = vsel %vm584_vm3, %v546_v15, -inf }
 0x22f   : > { %586 = vmax.xlane.f32.xlu0 %v585_v12  ;;  %v549_v14 = vpop.f32.mrb[2].mxu0 }
 0x230   : > { %v995_v13 = vpop.f32.mrb[3].mxu0  ;;  %v588_v16 = vsel %vm584_vm3, %v549_v14, -inf }
 0x231   : > { %589 = vmax.xlane.f32.xlu1 %v588_v16 }
 0x235   : > { %v554_v17 = vpop.f32.mrb[4].mxu0 }
 0x236   : > { %v998_v18 = vpop.f32.mrb[5].mxu0  ;;  %v591_v41 = vsel %vm584_vm3, %v554_v17, -inf }
 0x237   : > { %592 = vmax.xlane.f32.xlu0 %v591_v41  ;;  %v557_v19 = vpop.f32.mrb[6].mxu0 }
 0x238   : > { %v999_v25 = vpop.f32.mrb[7].mxu0  ;;  %v594_v26 = vsel %vm584_vm3, %v557_v19, -inf }
 0x239   : > { %595 = vmax.xlane.f32.xlu1 %v594_v26 }
 0x23d   : > { %v562_v28 = vpop.f32.mrb[8].mxu0 }
 0x23e   : > { %v1002_v29 = vpop.f32.mrb[9].mxu0  ;;  %v597_v30 = vsel %vm584_vm3, %v562_v28, -inf }
 0x23f   : > { %598 = vmax.xlane.f32.xlu0 %v597_v30  ;;  %v565_v32 = vpop.f32.mrb[10].mxu0 }
 0x240   : > { %v1003_v35 = vpop.f32.mrb[11].mxu0  ;;  %v600_v34 = vsel %vm584_vm3, %v565_v32, -inf }
 0x241   : > { %601 = vmax.xlane.f32.xlu1 %v600_v34 }
 0x245   : > { %v570_v39 = vpop.f32.mrb[12].mxu0 }
 0x246   : > { %v1006_v43 = vpop.f32.mrb[13].mxu0  ;;  %v603_v45 = vsel %vm584_vm3, %v570_v39, -inf }
 0x247   : > { %604 = vmax.xlane.f32.xlu0 %v603_v45  ;;  %v573_v47 = vpop.f32.mrb[14].mxu0 }
 0x248   : > { %v1007_v54 = vpop.f32.mrb[15].mxu0  ;;  %v606_v48 = vsel %vm584_vm3, %v573_v47, -inf }
 0x249   : > { %607 = vmax.xlane.f32.xlu1 %v606_v48 }
 0x24d   : > { %463 = vadd.xlane.f32.xlu1 %v462_v21  ;;  %v1374_v51 = vpop.f32.mrb[16].mxu0 }
 0x24e   : > { %v1010_v53 = vpop.f32.mrb[17].mxu0  ;;  %v610_v56 = vsel %vm609_vm4, %v1374_v51, -inf }
 0x24f   : > { %611 = vmax.xlane.f32.xlu0 %v610_v56  ;;  %v581_v57 = vpop.f32.mrb[18].mxu0 }
 0x250   : > { %v1011_v58 = vpop.f32.mrb[19].mxu0 }
 0x253   : > { %466 = vadd.xlane.f32.xlu0 %v465_v22  ;;  %v478_v22 = vsub.s32 4, %v1274_v42 }
 0x2bc   : > { %v587_v24 = vpop.xlane.xlu0 %586 }
 0x2bd   : > { %v613_v59 = vsub.f32 %v546_v15, %v587_v24 }
 0x2be   : > { %v590_v60 = vpop.xlane.xlu1 %589 }
 0x2bf   : > { %v622_v0 = vmul.f32 1.442695, %v613_v59  ;;  %v614_v62 = vsub.f32 %v549_v14, %v590_v60 }
 0x2c1   : > { %1068 = vpow2.f32 %v622_v0  ;;  %v624_v1 = vmul.f32 1.442695, %v614_v62  ;;  %v479_v62 = vrot.slane %v1280_v50, %v478_v22 }
 0x2c3   : > { %1070 = vpow2.f32 %v624_v1  ;;  %v484_v1 = vsub.s32 5, %v1274_v42 }
 0x2c4   : > { %v593_v2 = vpop.xlane.xlu0 %592 }
 0x2c5   : > { %v615_v3 = vsub.f32 %v554_v17, %v593_v2 }
 0x2c6   : > { %v596_v4 = vpop.xlane.xlu1 %595 }
 0x2c7   : > { %v626_v10 = vmul.f32 1.442695, %v615_v3  ;;  %v616_v6 = vsub.f32 %v557_v19, %v596_v4 }
 0x2c9   : > { %1072 = vpow2.f32 %v626_v10  ;;  %v628_v8 = vmul.f32 1.442695, %v616_v6  ;;  %v485_v10 = vrot.slane %v1280_v50, %v484_v1 }
 0x2cb   : > { %v1379_v33 = vpop.eup %1068  ;;  %1074 = vpow2.f32 %v628_v8  ;;  %v1118_v8 = vmov 65535  }
 0x2cc   : > { %v599_v11 = vpop.xlane.xlu0 %598  ;;  %v640_v15 = vsel %vm584_vm3, %v1379_v33, 0.0 }
 0x2cd   : > { %v1383_v12 = vpop.eup %1070  ;;  %v617_v14 = vsub.f32 %v562_v28, %v599_v11  ;;  %641 = vadd.xlane.f32.xlu1 %v640_v15  ;;  %v708_v11 = vsel %vm706_vm5, 4294967295, %v1118_v8 }
 0x2ce   : > { %v602_v13 = vpop.xlane.xlu1 %601  ;;  %v643_v16 = vsel %vm584_vm3, %v1383_v12, 0.0 }
 0x2cf   : > { %v630_v17 = vmul.f32 1.442695, %v617_v14  ;;  %v618_v18 = vsub.f32 %v565_v32, %v602_v13  ;;  %644 = vadd.xlane.f32.xlu0 %v643_v16  ;;  %v709_v13 = vsel %vm707_vm6, %v708_v11, 0 }
 0x2d1   : > { %1076 = vpow2.f32 %v630_v17  ;;  %v632_v41 = vmul.f32 1.442695, %v618_v18 }
 0x2d3   : > { %v1387_v19 = vpop.eup %1072  ;;  %1078 = vpow2.f32 %v632_v41 }
 0x2d4   : > { %v605_v25 = vpop.xlane.xlu0 %604  ;;  %v646_v26 = vsel %vm584_vm3, %v1387_v19, 0.0 }
 0x2d5   : > { %v1391_v27 = vpop.eup %1074  ;;  %v619_v28 = vsub.f32 %v570_v39, %v605_v25  ;;  %647 = vadd.xlane.f32.xlu1 %v646_v26 }
 0x2d6   : > { %v608_v29 = vpop.xlane.xlu1 %607  ;;  %v649_v30 = vsel %vm584_vm3, %v1391_v27, 0.0 }
 0x2d7   : > { %v634_v31 = vmul.f32 1.442695, %v619_v28  ;;  %v620_v32 = vsub.f32 %v573_v47, %v608_v29  ;;  %650 = vadd.xlane.f32.xlu0 %v649_v30 }
 0x2d9   : > { %1080 = vpow2.f32 %v634_v31  ;;  %v636_v35 = vmul.f32 1.442695, %v620_v32 }
 0x2da   : > { %v464_v34 = vpop.xlane.xlu1 %463 }
 0x2db   : > { %v1395_v44 = vpop.eup %1076  ;;  %1082 = vpow2.f32 %v636_v35  ;;  %v468_v38 = vmul.f32 0.125, %v464_v34 }
 0x2dc   : > { %v612_v43 = vpop.xlane.xlu0 %611  ;;  %v652_v45 = vsel %vm584_vm3, %v1395_v44, 0.0 }
 0x2dd   : > { %v1399_v39 = vpop.eup %1078  ;;  %v470_v46 = vadd.f32 1e-05, %v468_v38  ;;  %v621_v54 = vsub.f32 %v1374_v51, %v612_v43  ;;  %653 = vadd.xlane.f32.xlu1 %v652_v45 }
 0x2de   : > { %v655_v47 = vsel %vm584_vm3, %v1399_v39, 0.0 }
 0x2df   : > { %1084 = vrsqrt.f32 %v470_v46  ;;  %v638_v48 = vmul.f32 1.442695, %v621_v54  ;;  %656 = vadd.xlane.f32.xlu0 %v655_v47 }
 0x2e0   : > { %v467_v21 = vpop.xlane.xlu0 %466 }
 0x2e1   : > { %1086 = vpow2.f32 %v638_v48  ;;  %v469_v23 = vmul.f32 0.125, %v467_v21 }
 0x2e3   : > { %v1404_v53 = vpop.eup %1080  ;;  %v471_v56 = vadd.f32 1e-05, %v469_v23 }
 0x2e4   : > { %v658_v57 = vsel %vm584_vm3, %v1404_v53, 0.0 }
 0x2e5   : > { %v1408_v58 = vpop.eup %1082  ;;  %1088 = vrsqrt.f32 %v471_v56  ;;  %659 = vadd.xlane.f32.xlu1 %v658_v57 }
 0x2e6   : > { %v661_v51 = vsel %vm584_vm3, %v1408_v58, 0.0 }
 0x2e7   : > { %662 = vadd.xlane.f32.xlu0 %v661_v51 }
 0x2e9   : > { %v1085_v24 = vpop.eup %1084 }
 0x2ea   : > { %v474_v0 = vmul.f32 %v1085_v24, %v1361_v36 }
 0x2eb   : > { %v1413_v59 = vpop.eup %1086 }
 0x2ec   : > { %v664_v60 = vsel %vm609_vm4, %v1413_v59, 0.0  ;;  %v480_v4 = vmul.f32 %v479_v62, %v474_v0 }
 0x2ed   : > { %665 = vadd.xlane.f32.xlu1 %v664_v60 }
 0x2ee   : > { %v486_v15 = vadd.f32 %v485_v10, %v480_v4 }
 0x2ef   : > { %v1089_v2 = vpop.eup %1088 }
 0x2f0   : > { %v475_v3 = vmul.f32 %v1089_v2, %v1369_v49 }
 0x2f2   : > { %v481_v6 = vmul.f32 %v479_v62, %v475_v3 }
 0x2f4   : > { %v487_v14 = vadd.f32 %v485_v10, %v481_v6 }
 0x2f6   : > { %v690_v36 = vpack.c.bf16 %v487_v14, %v486_v15 }
 0x2f8   : > { %v711_v16 = vand.u32 %v709_v13, %v690_v36 }
 0x2fa   : > { %1013 = vmatpush3.bf16.msra.mxu1 %v711_v16 }
 0x35a   : > { %v642_v17 = vpop.xlane.xlu1 %641 }
 0x35b   : > { %1090 = vrcp.f32 %v642_v17 }
 0x35c   : > { %v645_v42 = vpop.xlane.xlu0 %644 }
 0x35d   : > { %1092 = vrcp.f32 %v645_v42 }
 0x362   : > { %v648_v18 = vpop.xlane.xlu1 %647 }
 0x363   : > { %1094 = vrcp.f32 %v648_v18 }
 0x364   : > { %v651_v49 = vpop.xlane.xlu0 %650 }
 0x365   : > { %v1091_v41 = vpop.eup %1090  ;;  %1096 = vrcp.f32 %v651_v49 }
 0x366   : > { %v676_v25 = vmul.f32 %v1091_v41, %v1379_v33 }
 0x367   : > { %v1093_v50 = vpop.eup %1092 }
 0x368   : > { %v677_v26 = vmul.f32 %v1093_v50, %v1383_v12 }
 0x36a   : > { %v654_v28 = vpop.xlane.xlu1 %653  ;;  %v685_v29 = vpack.c.bf16 %v677_v26, %v676_v25 }
 0x36b   : > { %1098 = vrcp.f32 %v654_v28 }
 0x36c   : > { %v657_v30 = vpop.xlane.xlu0 %656  ;;  %1015 = vmatmul.mubr.msk.bf16.vlgmr.msra.gmra.mrb[0].mxu1 %vm584_vm3, %v685_v29 }
 0x36d   : > { %v1095_v31 = vpop.eup %1094  ;;  %1100 = vrcp.f32 %v657_v30  ;;  %1018 = vmatprep.mubr.msk.bf16.mxu1 %vm1117_vm2, %v1116_v20 }
 0x36e   : > { %v678_v35 = vmul.f32 %v1095_v31, %v1387_v19 }
 0x36f   : > { %v1097_v32 = vpop.eup %1096 }
 0x370   : > { %v679_v34 = vmul.f32 %v1097_v32, %v1391_v27 }
 0x372   : > { %v660_v38 = vpop.xlane.xlu1 %659  ;;  %v686_v33 = vpack.c.bf16 %v679_v34, %v678_v35 }
 0x373   : > { %1102 = vrcp.f32 %v660_v38 }
 0x374   : > { %v663_v12 = vpop.xlane.xlu0 %662  ;;  %1019 = vmatmul.mubr.msk.bf16.gmra.mrb[4].mxu1 %vm584_vm3, %v686_v33 }
 0x375   : > { %v1099_v43 = vpop.eup %1098  ;;  %1104 = vrcp.f32 %v663_v12  ;;  %1022 = vmatprep.mubr.msk.bf16.mxu1 %vm1117_vm2, %v1116_v20 }
 0x376   : > { %v680_v46 = vmul.f32 %v1099_v43, %v1395_v44 }
 0x377   : > { %v1101_v45 = vpop.eup %1100 }
 0x378   : > { %v681_v54 = vmul.f32 %v1101_v45, %v1399_v39 }
 0x37a   : > { %v666_v47 = vpop.xlane.xlu1 %665  ;;  %v687_v19 = vpack.c.bf16 %v681_v54, %v680_v46 }
 0x37b   : > { %1106 = vrcp.f32 %v666_v47 }
 0x37c   : > { %1023 = vmatmul.mubr.msk.bf16.gmra.mrb[8].mxu1 %vm584_vm3, %v687_v19 }
 0x37d   : > { %v1103_v27 = vpop.eup %1102  ;;  %1026 = vmatprep.mubr.msk.bf16.mxu1 %vm1117_vm2, %v1116_v20 }
 0x37e   : > { %v682_v21 = vmul.f32 %v1103_v27, %v1404_v53 }
 0x37f   : > { %v1105_v48 = vpop.eup %1104 }
 0x380   : > { %v683_v23 = vmul.f32 %v1105_v48, %v1408_v58 }
 0x382   : > { %v688_v56 = vpack.c.bf16 %v683_v23, %v682_v21 }
 0x384   : > { %1027 = vmatmul.mubr.msk.bf16.gmra.mrb[12].mxu1 %vm584_vm3, %v688_v56 }
 0x385   : > { %v1107_v44 = vpop.eup %1106  ;;  %1030 = vmatprep.mubr.msk.bf16.mxu1 %vm1117_vm2, %v1116_v20 }
 0x386   : > { %v684_v39 = vmul.f32 %v1107_v44, %v1413_v59 }
 0x388   : > { %v689_v57 = vpack.c.bf16 %v684_v39, %v684_v39 }
 0x38c   : > { %1031 = vmatmul.mubr.msk.bf16.gmra.mrb[16].mxu1 %vm584_vm3, %v689_v57 }
 0x43f   : > { %v747_v51 = vpop.f32.mrb[0].mxu1 }
 0x440   : > { %v748_v22 = vadd.f32 %v747_v51, %v1302_v40  ;;  %v1016_v24 = vpop.f32.mrb[1].mxu1 }
 0x441   : > { %v750_v20 = vpop.f32.mrb[2].mxu1 }
 0x442   : > { %v950_v53 = vpack.c.bf16 %v748_v22, %v748_v22  ;;  %v751_v58 = vadd.f32 %v750_v20, %v1299_v37  ;;  %v1017_v59 = vpop.f32.mrb[3].mxu1 }
 0x444   : > { %823 = vst.msk [vmem:[%s1450_s6] sm:$0xf] %vm822_vm7, %v950_v53  ;;  %v951_v40 = vpack.c.bf16 %v751_v58, %v751_v58 }
 0x446   : > { %824 = vst.msk [vmem:[%s1450_s6 + $0x4] sm:$0xf] %vm822_vm7, %v951_v40 }
 0x447   : > { %v755_v60 = vpop.f32.mrb[4].mxu1 }
 0x448   : > { %v756_v0 = vadd.f32 %v755_v60, %v1315_v55  ;;  %v1020_v62 = vpop.f32.mrb[5].mxu1 }
 0x449   : > { %v758_v1 = vpop.f32.mrb[6].mxu1 }
 0x44a   : > { %v952_v2 = vpack.c.bf16 %v756_v0, %v756_v0  ;;  %v759_v3 = vadd.f32 %v758_v1, %v1312_v52  ;;  %v1021_v4 = vpop.f32.mrb[7].mxu1 }
 0x44c   : > { %825 = vst.msk [vmem:[%s1450_s6 + $0x8] sm:$0xf] %vm822_vm7, %v952_v2  ;;  %v953_v37 = vpack.c.bf16 %v759_v3, %v759_v3 }
 0x44e   : > { %826 = vst.msk [vmem:[%s1450_s6 + $0xc] sm:$0xf] %vm822_vm7, %v953_v37 }
 0x44f   : > { %v763_v10 = vpop.f32.mrb[8].mxu1 }
 0x450   : > { %v764_v6 = vadd.f32 %v763_v10, %v1328_v63  ;;  %v1024_v8 = vpop.f32.mrb[9].mxu1 }
 0x451   : > { %v766_v11 = vpop.f32.mrb[10].mxu1 }
 0x452   : > { %v954_v55 = vpack.c.bf16 %v764_v6, %v764_v6  ;;  %v767_v15 = vadd.f32 %v766_v11, %v1325_v61  ;;  %v1025_v14 = vpop.f32.mrb[11].mxu1 }
 0x454   : > { %827 = vst.msk [vmem:[%s1450_s6 + $0x10] sm:$0xf] %vm822_vm7, %v954_v55  ;;  %v955_v52 = vpack.c.bf16 %v767_v15, %v767_v15 }
 0x456   : > { %828 = vst.msk [vmem:[%s1450_s6 + $0x14] sm:$0xf] %vm822_vm7, %v955_v52 }
 0x457   : > { %v771_v13 = vpop.f32.mrb[12].mxu1 }
 0x458   : > { %v772_v36 = vadd.f32 %v771_v13, %v1340_v7  ;;  %v1028_v16 = vpop.f32.mrb[13].mxu1  ;;  %v834_v7 = vld [vmem:[%s1450_s6 + $0x20] sm:$0x1] }
 0x459   : > { %v774_v17 = vpop.f32.mrb[14].mxu1 }
 0x45a   : > { %v956_v63 = vpack.c.bf16 %v772_v36, %v772_v36  ;;  %v775_v42 = vadd.f32 %v774_v17, %v1338_v5  ;;  %v1029_v18 = vpop.f32.mrb[15].mxu1 }
 0x45c   : > { %829 = vst.msk [vmem:[%s1450_s6 + $0x18] sm:$0xf] %vm822_vm7, %v956_v63  ;;  %v957_v61 = vpack.c.bf16 %v775_v42, %v775_v42 }
 0x45e   : > { %830 = vst.msk [vmem:[%s1450_s6 + $0x1c] sm:$0xf] %vm822_vm7, %v957_v61 }
 0x45f   : > { %v779_v49 = vpop.f32.mrb[16].mxu1 }
 0x460   : > { %v780_v41 = vadd.f32 %v779_v49, %v1348_v9  ;;  %v1032_v50 = vpop.f32.mrb[17].mxu1 }
 0x461   : > { %v782_v25 = vpop.f32.mrb[18].mxu1 }
 0x462   : > { %v958_v26 = vpack.c.bf16 %v780_v41, %v780_v41  ;;  %v1033_v28 = vpop.f32.mrb[19].mxu1 }
 0x464   : > { %v835_v29 = vsel %vm833_vm9, %v958_v26, %v834_v7 }
 0x465   : > { %836 = vst [vmem:[%s1450_s6 + $0x20] sm:$0x1] %v835_v29 }
 0x466 PF: > { %s14_s15 = sadd.s32 1, %s1114_s15  }
 0x467   : > { %p11_p4 = scmp.ge.s32.totalorder %s14_s15, 10  }
 0x469   :  { %13 = sbr.rel (!%p11_p4) target bundleno = 1 (0x1), region = 72 }

// kernel: multiscale_attention_forward.9
= control target key start
LH: loop header
LB: loop body
LE: loop exit
PB: predicated region body
PF: predicated region fallthrough
CT: control target
= control target key end

     0   :  { %v341_v0 = vmov 0.0   ;;  %vm342_vm0 = vmmov 0   ;;  %vm98_vm1 = vcmask 261120   ;;  %vm246_vm2 = vcmask 254976   ;;  %s503_s1 = inlined_call_operand.vmem [shape: bf16[32,32], index: 1, kind: input, shape index: {}]   ;;  %s504_s0 = inlined_call_operand.vmem [shape: bf16[130,32], index: 0, kind: input, shape index: {}]   ;;  %s505_s2 = inlined_call_operand.vmem [shape: f32[1,32], index: 2, kind: input, shape index: {}]   ;;  %s506_s3 = inlined_call_operand.vmem [shape: f32[130,32], index: 3, kind: output, shape index: {}]  }
   0x1   :  { %284 = vmatprep.subr.bf16.mxu0 %v341_v0  ;;  %v330_v1 = vld [vmem:[%s503_s1] sm:$0xff]   ;;  %324 = vmatprep.subr.bf16.mxu1 %v341_v0  ;;  %v331_v2 = vld [vmem:[%s503_s1 + $0x8] sm:$0xff]   ;;  %v335_v6 = vld [vmem:[%s504_s0 + $0x30] sm:$0xff]  }
   0x2   :  { %288 = vmatprep.mubr.msk.bf16.mxu0 %vm342_vm0, %v341_v0  ;;  %308 = vmatprep.mubr.msk.bf16.mxu1 %vm342_vm0, %v341_v0  ;;  %v332_v3 = vld [vmem:[%s504_s0] sm:$0xff]   ;;  %v333_v4 = vld [vmem:[%s504_s0 + $0x28] sm:$0xff]   ;;  %v336_v7 = vld [vmem:[%s504_s0 + $0x10] sm:$0xff]  }
   0x3   :  { %285 = vmatpush3.bf16.msra.mxu0 %v330_v1  ;;  %326 = vmatpush3.bf16.msra.mxu1 %v330_v1  ;;  %v334_v5 = vld [vmem:[%s504_s0 + $0x8] sm:$0xff]   ;;  %v337_v8 = vld [vmem:[%s504_s0 + $0x38] sm:$0xff]   ;;  %v339_v10 = vld [vmem:[%s504_s0 + $0x40] ss:$0 sps:$4 sm:$0x11]  }
   0x4   :  { %286 = vmatprep.subr.bf16.mxu0 %v341_v0  ;;  %325 = vmatprep.subr.bf16.mxu1 %v341_v0  ;;  %v338_v9 = vld [vmem:[%s504_s0 + $0x18] sm:$0xff]   ;;  %v340_v11 = vld [vmem:[%s504_s0 + $0x20] sm:$0xff]  }
   0x5   :  { %v417_v12 = vld [vmem:[%s505_s2] ss:$0 sm:$0xff] }
   0x7   :  { %287 = vmatpush3.bf16.msra.mxu0 %v331_v2  ;;  %327 = vmatpush3.bf16.msra.mxu1 %v331_v2 }
   0xa   :  { %289 = vmatmul.mubr.msk.bf16.vlgmr.msra.gmra.mrb[0].mxu0 %vm98_vm1, %v332_v3  ;;  %309 = vmatmul.mubr.msk.bf16.vlgmr.msra.gmra.mrb[0].mxu1 %vm98_vm1, %v333_v4 }
   0xb   :  { %292 = vmatprep.mubr.msk.bf16.mxu0 %vm342_vm0, %v341_v0  ;;  %312 = vmatprep.mubr.msk.bf16.mxu1 %vm342_vm0, %v341_v0 }
  0x12   :  { %293 = vmatmul.mubr.msk.bf16.gmra.mrb[4].mxu0 %vm98_vm1, %v334_v5  ;;  %313 = vmatmul.mubr.msk.bf16.gmra.mrb[4].mxu1 %vm98_vm1, %v335_v6 }
  0x13   :  { %296 = vmatprep.mubr.msk.bf16.mxu0 %vm342_vm0, %v341_v0  ;;  %316 = vmatprep.mubr.msk.bf16.mxu1 %vm342_vm0, %v341_v0 }
  0x1a   :  { %297 = vmatmul.mubr.msk.bf16.gmra.mrb[8].mxu0 %vm98_vm1, %v336_v7  ;;  %317 = vmatmul.mubr.msk.bf16.gmra.mrb[8].mxu1 %vm98_vm1, %v337_v8 }
  0x1b   :  { %300 = vmatprep.mubr.msk.bf16.mxu0 %vm342_vm0, %v341_v0  ;;  %320 = vmatprep.mubr.msk.bf16.mxu1 %vm342_vm0, %v341_v0 }
  0x22   :  { %301 = vmatmul.mubr.msk.bf16.gmra.mrb[12].mxu0 %vm98_vm1, %v338_v9  ;;  %321 = vmatmul.mubr.msk.bf16.gmra.mrb[12].mxu1 %vm98_vm1, %v339_v10 }
  0x23   :  { %304 = vmatprep.mubr.msk.bf16.mxu0 %vm342_vm0, %v341_v0 }
  0x2a   :  { %305 = vmatmul.mubr.msk.bf16.gmra.mrb[16].mxu0 %vm98_vm1, %v340_v11 }
  0xdd   :  { %v160_v13 = vpop.f32.mrb[0].mxu0  ;;  %v200_v14 = vpop.f32.mrb[0].mxu1 }
  0xde   :  { %v161_v15 = vadd.f32 %v417_v12, %v160_v13  ;;  %v290_v16 = vpop.f32.mrb[1].mxu0  ;;  %v201_v17 = vadd.f32 %v417_v12, %v200_v14  ;;  %v310_v18 = vpop.f32.mrb[1].mxu1 }
  0xdf   :  { %v163_v19 = vpop.f32.mrb[2].mxu0  ;;  %v203_v20 = vpop.f32.mrb[2].mxu1 }
  0xe0   :  { %230 = vst.msk [vmem:[%s506_s3] sm:$0xff] %vm98_vm1, %v161_v15  ;;  %v164_v21 = vadd.f32 %v417_v12, %v163_v19  ;;  %v291_v22 = vpop.f32.mrb[3].mxu0  ;;  %240 = vst.msk [vmem:[%s506_s3 + $0x50] sm:$0xff] %vm98_vm1, %v201_v17  ;;  %v204_v23 = vadd.f32 %v417_v12, %v203_v20  ;;  %v311_v24 = vpop.f32.mrb[3].mxu1 }
  0xe2   :  { %231 = vst.msk [vmem:[%s506_s3 + $0x8] sm:$0xff] %vm98_vm1, %v164_v21  ;;  %241 = vst.msk [vmem:[%s506_s3 + $0x58] sm:$0xff] %vm98_vm1, %v204_v23 }
  0xe5   :  { %v168_v25 = vpop.f32.mrb[4].mxu0  ;;  %v208_v26 = vpop.f32.mrb[4].mxu1 }
  0xe6   :  { %v169_v27 = vadd.f32 %v417_v12, %v168_v25  ;;  %v294_v28 = vpop.f32.mrb[5].mxu0  ;;  %v209_v29 = vadd.f32 %v417_v12, %v208_v26  ;;  %v314_v30 = vpop.f32.mrb[5].mxu1 }
  0xe7   :  { %v171_v31 = vpop.f32.mrb[6].mxu0  ;;  %v211_v32 = vpop.f32.mrb[6].mxu1 }
  0xe8   :  { %232 = vst.msk [vmem:[%s506_s3 + $0x10] sm:$0xff] %vm98_vm1, %v169_v27  ;;  %v172_v33 = vadd.f32 %v417_v12, %v171_v31  ;;  %v295_v34 = vpop.f32.mrb[7].mxu0  ;;  %242 = vst.msk [vmem:[%s506_s3 + $0x60] sm:$0xff] %vm98_vm1, %v209_v29  ;;  %v212_v35 = vadd.f32 %v417_v12, %v211_v32  ;;  %v315_v36 = vpop.f32.mrb[7].mxu1 }
  0xea   :  { %233 = vst.msk [vmem:[%s506_s3 + $0x18] sm:$0xff] %vm98_vm1, %v172_v33  ;;  %243 = vst.msk [vmem:[%s506_s3 + $0x68] sm:$0xff] %vm98_vm1, %v212_v35 }
  0xed   :  { %v176_v37 = vpop.f32.mrb[8].mxu0  ;;  %v216_v38 = vpop.f32.mrb[8].mxu1 }
  0xee   :  { %v177_v39 = vadd.f32 %v417_v12, %v176_v37  ;;  %v298_v40 = vpop.f32.mrb[9].mxu0  ;;  %v217_v41 = vadd.f32 %v417_v12, %v216_v38  ;;  %v318_v42 = vpop.f32.mrb[9].mxu1 }
  0xef   :  { %v179_v43 = vpop.f32.mrb[10].mxu0  ;;  %v219_v44 = vpop.f32.mrb[10].mxu1 }
  0xf0   :  { %234 = vst.msk [vmem:[%s506_s3 + $0x20] sm:$0xff] %vm98_vm1, %v177_v39  ;;  %v180_v45 = vadd.f32 %v417_v12, %v179_v43  ;;  %v299_v46 = vpop.f32.mrb[11].mxu0  ;;  %244 = vst.msk [vmem:[%s506_s3 + $0x70] sm:$0xff] %vm98_vm1, %v217_v41  ;;  %v220_v47 = vadd.f32 %v417_v12, %v219_v44  ;;  %v319_v48 = vpop.f32.mrb[11].mxu1 }
  0xf2   :  { %235 = vst.msk [vmem:[%s506_s3 + $0x28] sm:$0xff] %vm98_vm1, %v180_v45  ;;  %245 = vst.msk [vmem:[%s506_s3 + $0x78] sm:$0xff] %vm98_vm1, %v220_v47 }
  0xf5   :  { %v184_v49 = vpop.f32.mrb[12].mxu0  ;;  %v224_v50 = vpop.f32.mrb[12].mxu1 }
  0xf6   :  { %v185_v51 = vadd.f32 %v417_v12, %v184_v49  ;;  %v302_v52 = vpop.f32.mrb[13].mxu0  ;;  %v225_v53 = vadd.f32 %v417_v12, %v224_v50  ;;  %v322_v54 = vpop.f32.mrb[13].mxu1 }
  0xf7   :  { %v187_v55 = vpop.f32.mrb[14].mxu0  ;;  %v227_v56 = vpop.f32.mrb[14].mxu1 }
  0xf8   :  { %236 = vst.msk [vmem:[%s506_s3 + $0x30] sm:$0xff] %vm98_vm1, %v185_v51  ;;  %v188_v57 = vadd.f32 %v417_v12, %v187_v55  ;;  %v303_v58 = vpop.f32.mrb[15].mxu0  ;;  %v323_v59 = vpop.f32.mrb[15].mxu1 }
  0xf9   :  { %247 = vst.msk [vmem:[%s506_s3 + $0x80] sm:$0x3] %vm246_vm2, %v225_v53 }
  0xfa   :  { %237 = vst.msk [vmem:[%s506_s3 + $0x38] sm:$0xff] %vm98_vm1, %v188_v57 }
  0xfd   :  { %v192_v60 = vpop.f32.mrb[16].mxu0 }
  0xfe   :  { %v193_v61 = vadd.f32 %v417_v12, %v192_v60  ;;  %v306_v62 = vpop.f32.mrb[17].mxu0 }
  0xff   :  { %v195_v63 = vpop.f32.mrb[18].mxu0 }
 0x100   :  { %238 = vst.msk [vmem:[%s506_s3 + $0x40] sm:$0xff] %vm98_vm1, %v193_v61  ;;  %v196_v0 = vadd.f32 %v417_v12, %v195_v63  ;;  %v307_v1 = vpop.f32.mrb[19].mxu0 }
 0x102   :  { %239 = vst.msk [vmem:[%s506_s3 + $0x48] sm:$0xff] %vm98_vm1, %v196_v0 }

</bundles_post_ra>
